<compile_context>
chip_gen: v6e
topology: v6e:2x2x1
jax: 0.10.0
libtpu: 0.0.40
codegen_flags: <defaults>
</compile_context>

<pallas_src>
import functools

import jax
import jax.numpy as jnp
from jax.experimental import pallas as pl
from jax.experimental.pallas import tpu as pltpu


# ----------------------------------------------------------------------------
# One conv(3x3, pad=1) + bias + ReLU + maxpool(2,2) block, fully in VMEM.
# ----------------------------------------------------------------------------
def _conv_pool_block(pad_ref, w_ref, b_ref, patch_ref, act_ref, wp_ref,
                     dst_ref, dst_base, dst_stride, H, W, slot,
                     lane_pack_c=None):
    """pad_ref : ((H+4)*(W+2), slot) zero-padded, row-strided input
                 (data for (h, w) at row 2*(W+2) + h*(W+2) + w).
       dst_ref : pooled output target.
                 lane_pack_c is None  -> pooled row hh (W//2 wide) is written
                   at rows [dst_base + hh*dst_stride, ... + W//2).
                 lane_pack_c = C      -> pooled value (hh, ww) is written to
                   lanes [(hh*W//2 + ww)*C, +C) of row 0 (flatten for dense).
    """
    RS = W + 2                      # row stride of the padded layout
    BASE = 2 * RS                   # first real-data row
    HS = H * RS                     # rows of the (strided) conv output
    Wh = W // 2
    RSh = RS // 2                   # = Wh + 1 (last pooled column is junk)

    # --- im2col: pack the 9 shifted taps along lanes -> (HS, 9*slot).
    #     Borders read real zeros; the 2 junk columns per row are harmless
    #     (their outputs are dropped by the pooling below).
    for dy in range(3):
        for dx in range(3):
            k = dy * 3 + dx
            shift = (dy - 1) * RS + (dx - 1)
            patch_ref[:, k * slot:(k + 1) * slot] = (
                pad_ref[pl.ds(BASE + shift, HS), :])

    # --- conv as a single MXU matmul, then bias + ReLU.
    act_ref[...] = jnp.maximum(
        jnp.dot(patch_ref[...], w_ref[...],
                preferred_element_type=jnp.float32) + b_ref[...], 0.0)

    # --- max-pool stage 1 (along W): one strided max over sublane pairs.
    half = HS // 2
    wp_ref[...] = jnp.maximum(act_ref[pl.ds(0, half, 2), :],
                              act_ref[pl.ds(1, half, 2), :])

    # --- max-pool stage 2 (along H): pooled rows go straight into dst_ref
    #     (next layer's padded input, or the lane-packed flatten buffer).
    for hh in range(H // 2):
        top = wp_ref[pl.ds((2 * hh) * RSh, Wh), :]
        bot = wp_ref[pl.ds((2 * hh + 1) * RSh, Wh), :]
        pooled = jnp.maximum(top, bot)                     # (Wh, Cout)
        if lane_pack_c is None:
            dst_ref[pl.ds(dst_base + hh * dst_stride, Wh), :] = pooled
        else:
            C = lane_pack_c
            for ww in range(Wh):
                s = hh * Wh + ww
                dst_ref[0:1, s * C:(s + 1) * C] = pooled[ww:ww + 1, :]


# ----------------------------------------------------------------------------
# Fused forward kernel: conv/relu/pool x3 + flatten + dense + sigmoid.
# ----------------------------------------------------------------------------
def _fused_forward_kernel(x_ref, w1_ref, b1_ref, w2_ref, b2_ref, w3_ref, b3_ref,
                          wd_ref, bd_ref, o_ref,
                          patch1, act1, wp1, pad2,
                          patch2, act2, wp2, pad3,
                          patch3, act3, wp3, pooled_flat,
                          *, H, W, slot1):
    H2, W2 = H // 2, W // 2
    H3, W3 = H2 // 2, W2 // 2
    C3 = act3.shape[-1]

    # Padded intermediate maps must read real zeros at their borders
    # (interior is fully overwritten by the pooled stores below).
    pad2[...] = jnp.zeros_like(pad2)
    pad3[...] = jnp.zeros_like(pad3)

    # conv1 + relu + pool   (pooled rows land in pad2's interior)
    _conv_pool_block(x_ref, w1_ref, b1_ref, patch1, act1, wp1,
                     pad2, 2 * (W2 + 2), W2 + 2, H, W, slot1)
    # conv2 + relu + pool   (pooled rows land in pad3's interior)
    _conv_pool_block(pad2, w2_ref, b2_ref, patch2, act2, wp2,
                     pad3, 2 * (W3 + 2), W3 + 2, H2, W2, pad2.shape[-1])
    # conv3 + relu + pool   (pooled values lane-packed: (hh, ww, c) ->
    #                        lane (hh*W4 + ww)*C3 + c of a single row)
    _conv_pool_block(pad3, w3_ref, b3_ref, patch3, act3, wp3,
                     pooled_flat, 0, 0, H3, W3, pad3.shape[-1],
                     lane_pack_c=C3)

    # flatten + final dense + sigmoid.  PyTorch's (C, H, W) flatten order is
    # pre-folded into wd_ref's (S3*C3, M) layout by the wrapper, so the dense
    # layer is a single MXU matmul with lane-dense output.
    z = bd_ref[...] + jnp.dot(pooled_flat[...], wd_ref[...],
                              preferred_element_type=jnp.float32)
    o_ref[0] = 1.0 / (1.0 + jnp.exp(-z))


# ----------------------------------------------------------------------------
# Wrapper: layout plumbing + single pallas_call.
# ----------------------------------------------------------------------------
def _to_im2col_weights(w_oihw, slot):
    """(Cout, Cin, 3, 3) -> (9*slot, Cout); row index = (dy*3+dx)*slot + ci."""
    cout, cin = w_oihw.shape[0], w_oihw.shape[1]
    w = jnp.pad(w_oihw, ((0, 0), (0, slot - cin), (0, 0), (0, 0)))
    return jnp.transpose(w, (2, 3, 1, 0)).reshape(9 * slot, cout)


def network_forward(x_nchw, params):
    N, C, H, W = x_nchw.shape
    C1 = params["w1"].shape[0]
    C2 = params["w2"].shape[0]
    C3 = params["w3"].shape[0]
    H2, W2 = H // 2, W // 2
    H3, W3 = H2 // 2, W2 // 2
    H4, W4 = H3 // 2, W3 // 2
    S3 = H4 * W4                       # spatial positions after 3rd pool
    M = H * W                          # dense output width (lane-dense)
    slot1 = max(8, ((C + 7) // 8) * 8)  # layer-1 channel slot (8-lane aligned)

    # NCHW -> kernel layout: NHWC, channels zero-padded to slot1, spatially
    # zero-padded so (h, w) sits at row 2*(W+2) + h*(W+2) + w.
    xp = jnp.transpose(x_nchw, (0, 2, 3, 1))
    xp = jnp.pad(xp, ((0, 0), (2, 2), (0, 2), (0, slot1 - C)))
    PR1 = (H + 4) * (W + 2)
    xp = xp.reshape(N * PR1, slot1)

    w1 = _to_im2col_weights(params["w1"], slot1)   # (9*slot1, C1)
    w2 = _to_im2col_weights(params["w2"], C1)      # (9*C1, C2)
    w3 = _to_im2col_weights(params["w3"], C2)      # (9*C2, C3)
    # Dense weight: fold PyTorch's (C, H, W) flatten order into a K-ordering
    # of (h, w, c) so the kernel's lane-packed activation row matches it.
    wd = jnp.transpose(params["wd"].reshape(M, C3, H4, W4),
                       (2, 3, 1, 0)).reshape(S3 * C3, M)

    HS1, HS2, HS3 = H * (W + 2), H2 * (W2 + 2), H3 * (W3 + 2)
    kernel = functools.partial(_fused_forward_kernel, H=H, W=W, slot1=slot1)

    out = pl.pallas_call(
        kernel,
        out_shape=jax.ShapeDtypeStruct((N, 1, M), jnp.float32),
        grid=(N,),
        in_specs=[
            pl.BlockSpec((PR1, slot1), lambda b: (b, 0)),          # padded input
            pl.BlockSpec((9 * slot1, C1), lambda b: (0, 0)),       # w1
            pl.BlockSpec((1, C1), lambda b: (0, 0)),               # b1
            pl.BlockSpec((9 * C1, C2), lambda b: (0, 0)),          # w2
            pl.BlockSpec((1, C2), lambda b: (0, 0)),               # b2
            pl.BlockSpec((9 * C2, C3), lambda b: (0, 0)),          # w3
            pl.BlockSpec((1, C3), lambda b: (0, 0)),               # b3
            pl.BlockSpec((S3 * C3, M), lambda b: (0, 0)),          # wd (flat K)
            pl.BlockSpec((1, M), lambda b: (0, 0)),                # bd
        ],
        out_specs=pl.BlockSpec((1, 1, M), lambda b: (b, 0, 0)),
        scratch_shapes=[
            pltpu.VMEM((HS1, 9 * slot1), jnp.float32),             # patch1
            pltpu.VMEM((HS1, C1), jnp.float32),                    # act1
            pltpu.VMEM((HS1 // 2, C1), jnp.float32),               # wp1
            pltpu.VMEM(((H2 + 4) * (W2 + 2), C1), jnp.float32),    # pad2
            pltpu.VMEM((HS2, 9 * C1), jnp.float32),                # patch2
            pltpu.VMEM((HS2, C2), jnp.float32),                    # act2
            pltpu.VMEM((HS2 // 2, C2), jnp.float32),               # wp2
            pltpu.VMEM(((H3 + 4) * (W3 + 2), C2), jnp.float32),    # pad3
            pltpu.VMEM((HS3, 9 * C2), jnp.float32),                # patch3
            pltpu.VMEM((HS3, C3), jnp.float32),                    # act3
            pltpu.VMEM((HS3 // 2, C3), jnp.float32),               # wp3
            pltpu.VMEM((1, S3 * C3), jnp.float32),                 # pooled_flat
        ],
        compiler_params=pltpu.CompilerParams(
            dimension_semantics=("parallel",)),                    # split batch over TCs
    )(xp, w1, params["b1"][None, :], w2, params["b2"][None, :],
      w3, params["b3"][None, :], wd, params["bd"][None, :])
    return out[:, 0, :]


# ----------------------------------------------------------------------------
# Parameter init (mirrors nn.Conv2d / nn.Linear defaults, deterministic).
# ----------------------------------------------------------------------------
def init_params(key, in_ch, H, W):
    conv_layers = [8, 16, 32]
    dense_in = (H // 8) * (W // 8) * conv_layers[-1]
    dense_out = H * W
    keys = jax.random.split(key, 8)

    def uconv(k, cout, cin):
        bound = 1.0 / jnp.sqrt(cin * 9.0)
        return jax.random.uniform(k, (cout, cin, 3, 3), jnp.float32, -bound, bound)

    def ubias(k, cout, fan_in):
        bound = 1.0 / jnp.sqrt(float(fan_in))
        return jax.random.uniform(k, (cout,), jnp.float32, -bound, bound)

    bd = 1.0 / jnp.sqrt(float(dense_in))
    return {
        "w1": uconv(keys[0], conv_layers[0], in_ch),
        "b1": ubias(keys[1], conv_layers[0], in_ch * 9),
        "w2": uconv(keys[2], conv_layers[1], conv_layers[0]),
        "b2": ubias(keys[3], conv_layers[1], conv_layers[0] * 9),
        "w3": uconv(keys[4], conv_layers[2], conv_layers[1]),
        "b3": ubias(keys[5], conv_layers[2], conv_layers[1] * 9),
        "wd": jax.random.uniform(keys[6], (dense_out, dense_in), jnp.float32, -bd, bd),
        "bd": jax.random.uniform(keys[7], (dense_out,), jnp.float32, -bd, bd),
    }


# Pure-JAX reference mirroring the PyTorch forward (for verification).
def reference_forward(x, p):
    def conv(t, w, b):
        y = jax.lax.conv_general_dilated(
            t, w, window_strides=(1, 1), padding=((1, 1), (1, 1)),
            dimension_numbers=("NCHW", "OIHW", "NCHW"))
        return y + b[None, :, None, None]

    def pool(t):
        return jax.lax.reduce_window(t, -jnp.inf, jax.lax.max,
                                     (1, 1, 2, 2), (1, 1, 2, 2), "VALID")

    t = pool(jax.nn.relu(conv(x, p["w1"], p["b1"])))
    t = pool(jax.nn.relu(conv(t, p["w2"], p["b2"])))
    t = pool(jax.nn.relu(conv(t, p["w3"], p["b3"])))
    t = t.reshape(t.shape[0], -1)
    return jax.nn.sigmoid(t @ p["wd"].T + p["bd"])


if __name__ == "__main__":
    key = jax.random.PRNGKey(0)
    k_x, k_p = jax.random.split(key)

    N, C, H, W = 2, 4, 16, 16          # (N, C, H, W) as in the nn.Module
    x = jax.random.normal(k_x, (N, C, H, W), jnp.float32)
    params = init_params(k_p, C, H, W)

    out = jax.block_until_ready(network_forward(x, params))
    ref = jax.block_until_ready(reference_forward(x, params))

    assert out.shape == (N, H * W), out.shape
    if not jnp.allclose(out, ref, rtol=1e-3, atol=1e-4):
        raise AssertionError("Pallas output does not match JAX reference")

    print("KERNEL_OK")
</pallas_src>

<mosaic_0001>
module attributes {stable_mosaic.version = 11 : i64} {
  func.func @_fused_forward_kernel(%arg0: i32, %arg1: memref<360x8xf32, #tpu.memory_space<vmem>>, %arg2: memref<72x8xf32, #tpu.memory_space<vmem>>, %arg3: memref<1x8xf32, #tpu.memory_space<vmem>>, %arg4: memref<72x16xf32, #tpu.memory_space<vmem>>, %arg5: memref<1x16xf32, #tpu.memory_space<vmem>>, %arg6: memref<144x32xf32, #tpu.memory_space<vmem>>, %arg7: memref<1x32xf32, #tpu.memory_space<vmem>>, %arg8: memref<128x256xf32, #tpu.memory_space<vmem>>, %arg9: memref<1x256xf32, #tpu.memory_space<vmem>>, %arg10: memref<1x1x256xf32, #tpu.memory_space<vmem>>, %arg11: memref<288x72xf32, #tpu.memory_space<vmem>>, %arg12: memref<288x8xf32, #tpu.memory_space<vmem>>, %arg13: memref<144x8xf32, #tpu.memory_space<vmem>>, %arg14: memref<120x8xf32, #tpu.memory_space<vmem>>, %arg15: memref<80x72xf32, #tpu.memory_space<vmem>>, %arg16: memref<80x16xf32, #tpu.memory_space<vmem>>, %arg17: memref<40x16xf32, #tpu.memory_space<vmem>>, %arg18: memref<48x16xf32, #tpu.memory_space<vmem>>, %arg19: memref<24x144xf32, #tpu.memory_space<vmem>>, %arg20: memref<24x32xf32, #tpu.memory_space<vmem>>, %arg21: memref<12x32xf32, #tpu.memory_space<vmem>>, %arg22: memref<1x128xf32, #tpu.memory_space<vmem>>) attributes {dimension_semantics = [#tpu.dimension_semantics<parallel>], iteration_bounds = array<i64: 2>, scalar_prefetch = 0 : i64, scratch_operands = 12 : i64, tpu.core_type = #tpu.core_type<tc>, window_params = [{transform_indices = @transform_0, window_bounds = array<i64: 360, 8>}, {pipeline_mode = #tpu.pipeline_mode<synchronous>, transform_indices = @transform_1, window_bounds = array<i64: 72, 8>}, {pipeline_mode = #tpu.pipeline_mode<synchronous>, transform_indices = @transform_2, window_bounds = array<i64: 1, 8>}, {pipeline_mode = #tpu.pipeline_mode<synchronous>, transform_indices = @transform_3, window_bounds = array<i64: 72, 16>}, {pipeline_mode = #tpu.pipeline_mode<synchronous>, transform_indices = @transform_4, window_bounds = array<i64: 1, 16>}, {pipeline_mode = #tpu.pipeline_mode<synchronous>, transform_indices = @transform_5, window_bounds = array<i64: 144, 32>}, {pipeline_mode = #tpu.pipeline_mode<synchronous>, transform_indices = @transform_6, window_bounds = array<i64: 1, 32>}, {pipeline_mode = #tpu.pipeline_mode<synchronous>, transform_indices = @transform_7, window_bounds = array<i64: 128, 256>}, {pipeline_mode = #tpu.pipeline_mode<synchronous>, transform_indices = @transform_8, window_bounds = array<i64: 1, 256>}, {transform_indices = @transform_9, window_bounds = array<i64: 1, 1, 256>}]} {
    %cst = arith.constant 0.000000e+00 : f32
    %0 = vector.broadcast %cst : f32 to vector<120x8xf32>
    %c0 = arith.constant 0 : index
    %c0_0 = arith.constant 0 : index
    %1 = vector.load %arg14[%c0, %c0_0] : memref<120x8xf32, #tpu.memory_space<vmem>>, vector<120x8xf32>
    tpu.vector_store %arg14[%c0, %c0_0], %0 {strides = array<i32>} : memref<120x8xf32, #tpu.memory_space<vmem>>, vector<120x8xf32>,
    %cst_1 = arith.constant 0.000000e+00 : f32
    %2 = vector.broadcast %cst_1 : f32 to vector<48x16xf32>
    %c0_2 = arith.constant 0 : index
    %c0_3 = arith.constant 0 : index
    %3 = vector.load %arg18[%c0_2, %c0_3] : memref<48x16xf32, #tpu.memory_space<vmem>>, vector<48x16xf32>
    tpu.vector_store %arg18[%c0_2, %c0_3], %2 {strides = array<i32>} : memref<48x16xf32, #tpu.memory_space<vmem>>, vector<48x16xf32>,
    %c17 = arith.constant 17 : index
    %c0_4 = arith.constant 0 : index
    %4 = vector.load %arg1[%c17, %c0_4] : memref<360x8xf32, #tpu.memory_space<vmem>>, vector<288x8xf32>
    %c0_5 = arith.constant 0 : index
    %c0_6 = arith.constant 0 : index
    %5 = vector.load %arg11[%c0_5, %c0_6] : memref<288x72xf32, #tpu.memory_space<vmem>>, vector<288x8xf32>
    tpu.vector_store %arg11[%c0_5, %c0_6], %4 {strides = array<i32>} : memref<288x72xf32, #tpu.memory_space<vmem>>, vector<288x8xf32>,
    %c18 = arith.constant 18 : index
    %c0_7 = arith.constant 0 : index
    %6 = vector.load %arg1[%c18, %c0_7] : memref<360x8xf32, #tpu.memory_space<vmem>>, vector<288x8xf32>
    %c0_8 = arith.constant 0 : index
    %c8 = arith.constant 8 : index
    %7 = vector.load %arg11[%c0_8, %c8] : memref<288x72xf32, #tpu.memory_space<vmem>>, vector<288x8xf32>
    tpu.vector_store %arg11[%c0_8, %c8], %6 {strides = array<i32>} : memref<288x72xf32, #tpu.memory_space<vmem>>, vector<288x8xf32>,
    %c19 = arith.constant 19 : index
    %c0_9 = arith.constant 0 : index
    %8 = vector.load %arg1[%c19, %c0_9] : memref<360x8xf32, #tpu.memory_space<vmem>>, vector<288x8xf32>
    %c0_10 = arith.constant 0 : index
    %c16 = arith.constant 16 : index
    %9 = vector.load %arg11[%c0_10, %c16] : memref<288x72xf32, #tpu.memory_space<vmem>>, vector<288x8xf32>
    tpu.vector_store %arg11[%c0_10, %c16], %8 {strides = array<i32>} : memref<288x72xf32, #tpu.memory_space<vmem>>, vector<288x8xf32>,
    %c35 = arith.constant 35 : index
    %c0_11 = arith.constant 0 : index
    %10 = vector.load %arg1[%c35, %c0_11] : memref<360x8xf32, #tpu.memory_space<vmem>>, vector<288x8xf32>
    %c0_12 = arith.constant 0 : index
    %c24 = arith.constant 24 : index
    %11 = vector.load %arg11[%c0_12, %c24] : memref<288x72xf32, #tpu.memory_space<vmem>>, vector<288x8xf32>
    tpu.vector_store %arg11[%c0_12, %c24], %10 {strides = array<i32>} : memref<288x72xf32, #tpu.memory_space<vmem>>, vector<288x8xf32>,
    %c36 = arith.constant 36 : index
    %c0_13 = arith.constant 0 : index
    %12 = vector.load %arg1[%c36, %c0_13] : memref<360x8xf32, #tpu.memory_space<vmem>>, vector<288x8xf32>
    %c0_14 = arith.constant 0 : index
    %c32 = arith.constant 32 : index
    %13 = vector.load %arg11[%c0_14, %c32] : memref<288x72xf32, #tpu.memory_space<vmem>>, vector<288x8xf32>
    tpu.vector_store %arg11[%c0_14, %c32], %12 {strides = array<i32>} : memref<288x72xf32, #tpu.memory_space<vmem>>, vector<288x8xf32>,
    %c37 = arith.constant 37 : index
    %c0_15 = arith.constant 0 : index
    %14 = vector.load %arg1[%c37, %c0_15] : memref<360x8xf32, #tpu.memory_space<vmem>>, vector<288x8xf32>
    %c0_16 = arith.constant 0 : index
    %c40 = arith.constant 40 : index
    %15 = vector.load %arg11[%c0_16, %c40] : memref<288x72xf32, #tpu.memory_space<vmem>>, vector<288x8xf32>
    tpu.vector_store %arg11[%c0_16, %c40], %14 {strides = array<i32>} : memref<288x72xf32, #tpu.memory_space<vmem>>, vector<288x8xf32>,
    %c53 = arith.constant 53 : index
    %c0_17 = arith.constant 0 : index
    %16 = vector.load %arg1[%c53, %c0_17] : memref<360x8xf32, #tpu.memory_space<vmem>>, vector<288x8xf32>
    %c0_18 = arith.constant 0 : index
    %c48 = arith.constant 48 : index
    %17 = vector.load %arg11[%c0_18, %c48] : memref<288x72xf32, #tpu.memory_space<vmem>>, vector<288x8xf32>
    tpu.vector_store %arg11[%c0_18, %c48], %16 {strides = array<i32>} : memref<288x72xf32, #tpu.memory_space<vmem>>, vector<288x8xf32>,
    %c54 = arith.constant 54 : index
    %c0_19 = arith.constant 0 : index
    %18 = vector.load %arg1[%c54, %c0_19] : memref<360x8xf32, #tpu.memory_space<vmem>>, vector<288x8xf32>
    %c0_20 = arith.constant 0 : index
    %c56 = arith.constant 56 : index
    %19 = vector.load %arg11[%c0_20, %c56] : memref<288x72xf32, #tpu.memory_space<vmem>>, vector<288x8xf32>
    tpu.vector_store %arg11[%c0_20, %c56], %18 {strides = array<i32>} : memref<288x72xf32, #tpu.memory_space<vmem>>, vector<288x8xf32>,
    %c55 = arith.constant 55 : index
    %c0_21 = arith.constant 0 : index
    %20 = vector.load %arg1[%c55, %c0_21] : memref<360x8xf32, #tpu.memory_space<vmem>>, vector<288x8xf32>
    %c0_22 = arith.constant 0 : index
    %c64 = arith.constant 64 : index
    %21 = vector.load %arg11[%c0_22, %c64] : memref<288x72xf32, #tpu.memory_space<vmem>>, vector<288x8xf32>
    tpu.vector_store %arg11[%c0_22, %c64], %20 {strides = array<i32>} : memref<288x72xf32, #tpu.memory_space<vmem>>, vector<288x8xf32>,
    %c0_23 = arith.constant 0 : index
    %c0_24 = arith.constant 0 : index
    %22 = vector.load %arg11[%c0_23, %c0_24] : memref<288x72xf32, #tpu.memory_space<vmem>>, vector<288x72xf32>
    %c0_25 = arith.constant 0 : index
    %c0_26 = arith.constant 0 : index
    %23 = vector.load %arg2[%c0_25, %c0_26] : memref<72x8xf32, #tpu.memory_space<vmem>>, vector<72x8xf32>
    %cst_27 = arith.constant dense<0.000000e+00> : vector<288x8xf32>
    %24 = tpu.matmul %22, %23, %cst_27 {dimension_numbers = #tpu.dot_dimension_numbers<[1], [0], [0], [1], [0, 0, 1, 1], [], []>} : vector<288x72xf32>, vector<72x8xf32>, vector<288x8xf32> -> vector<288x8xf32>
    %c0_28 = arith.constant 0 : index
    %c0_29 = arith.constant 0 : index
    %25 = vector.load %arg3[%c0_28, %c0_29] : memref<1x8xf32, #tpu.memory_space<vmem>>, vector<1x8xf32>
    %26 = vector.broadcast %25 : vector<1x8xf32> to vector<288x8xf32>
    %27 = arith.addf %24, %26 : vector<288x8xf32>
    %cst_30 = arith.constant 0.000000e+00 : f32
    %28 = vector.broadcast %cst_30 : f32 to vector<288x8xf32>
    %29 = arith.maximumf %27, %28 : vector<288x8xf32>
    %c0_31 = arith.constant 0 : index
    %c0_32 = arith.constant 0 : index
    %30 = vector.load %arg12[%c0_31, %c0_32] : memref<288x8xf32, #tpu.memory_space<vmem>>, vector<288x8xf32>
    tpu.vector_store %arg12[%c0_31, %c0_32], %29 {strides = array<i32>} : memref<288x8xf32, #tpu.memory_space<vmem>>, vector<288x8xf32>,
    %c0_33 = arith.constant 0 : index
    %c0_34 = arith.constant 0 : index
    %31 = tpu.strided_load %arg12[%c0_33, %c0_34] {strides = array<i32: 2, 1>} : memref<288x8xf32, #tpu.memory_space<vmem>>, vector<144x8xf32>
    %c1 = arith.constant 1 : index
    %c0_35 = arith.constant 0 : index
    %32 = tpu.strided_load %arg12[%c1, %c0_35] {strides = array<i32: 2, 1>} : memref<288x8xf32, #tpu.memory_space<vmem>>, vector<144x8xf32>
    %33 = arith.maximumf %31, %32 : vector<144x8xf32>
    %c0_36 = arith.constant 0 : index
    %c0_37 = arith.constant 0 : index
    %34 = vector.load %arg13[%c0_36, %c0_37] : memref<144x8xf32, #tpu.memory_space<vmem>>, vector<144x8xf32>
    tpu.vector_store %arg13[%c0_36, %c0_37], %33 {strides = array<i32>} : memref<144x8xf32, #tpu.memory_space<vmem>>, vector<144x8xf32>,
    %c0_38 = arith.constant 0 : index
    %c0_39 = arith.constant 0 : index
    %35 = vector.load %arg13[%c0_38, %c0_39] : memref<144x8xf32, #tpu.memory_space<vmem>>, vector<8x8xf32>
    %c9 = arith.constant 9 : index
    %c0_40 = arith.constant 0 : index
    %36 = vector.load %arg13[%c9, %c0_40] : memref<144x8xf32, #tpu.memory_space<vmem>>, vector<8x8xf32>
    %37 = arith.maximumf %35, %36 : vector<8x8xf32>
    %c20 = arith.constant 20 : index
    %c0_41 = arith.constant 0 : index
    %38 = vector.load %arg14[%c20, %c0_41] : memref<120x8xf32, #tpu.memory_space<vmem>>, vector<8x8xf32>
    tpu.vector_store %arg14[%c20, %c0_41], %37 {strides = array<i32>} : memref<120x8xf32, #tpu.memory_space<vmem>>, vector<8x8xf32>,
    %c18_42 = arith.constant 18 : index
    %c0_43 = arith.constant 0 : index
    %39 = vector.load %arg13[%c18_42, %c0_43] : memref<144x8xf32, #tpu.memory_space<vmem>>, vector<8x8xf32>
    %c27 = arith.constant 27 : index
    %c0_44 = arith.constant 0 : index
    %40 = vector.load %arg13[%c27, %c0_44] : memref<144x8xf32, #tpu.memory_space<vmem>>, vector<8x8xf32>
    %41 = arith.maximumf %39, %40 : vector<8x8xf32>
    %c30 = arith.constant 30 : index
    %c0_45 = arith.constant 0 : index
    %42 = vector.load %arg14[%c30, %c0_45] : memref<120x8xf32, #tpu.memory_space<vmem>>, vector<8x8xf32>
    tpu.vector_store %arg14[%c30, %c0_45], %41 {strides = array<i32>} : memref<120x8xf32, #tpu.memory_space<vmem>>, vector<8x8xf32>,
    %c36_46 = arith.constant 36 : index
    %c0_47 = arith.constant 0 : index
    %43 = vector.load %arg13[%c36_46, %c0_47] : memref<144x8xf32, #tpu.memory_space<vmem>>, vector<8x8xf32>
    %c45 = arith.constant 45 : index
    %c0_48 = arith.constant 0 : index
    %44 = vector.load %arg13[%c45, %c0_48] : memref<144x8xf32, #tpu.memory_space<vmem>>, vector<8x8xf32>
    %45 = arith.maximumf %43, %44 : vector<8x8xf32>
    %c40_49 = arith.constant 40 : index
    %c0_50 = arith.constant 0 : index
    %46 = vector.load %arg14[%c40_49, %c0_50] : memref<120x8xf32, #tpu.memory_space<vmem>>, vector<8x8xf32>
    tpu.vector_store %arg14[%c40_49, %c0_50], %45 {strides = array<i32>} : memref<120x8xf32, #tpu.memory_space<vmem>>, vector<8x8xf32>,
    %c54_51 = arith.constant 54 : index
    %c0_52 = arith.constant 0 : index
    %47 = vector.load %arg13[%c54_51, %c0_52] : memref<144x8xf32, #tpu.memory_space<vmem>>, vector<8x8xf32>
    %c63 = arith.constant 63 : index
    %c0_53 = arith.constant 0 : index
    %48 = vector.load %arg13[%c63, %c0_53] : memref<144x8xf32, #tpu.memory_space<vmem>>, vector<8x8xf32>
    %49 = arith.maximumf %47, %48 : vector<8x8xf32>
    %c50 = arith.constant 50 : index
    %c0_54 = arith.constant 0 : index
    %50 = vector.load %arg14[%c50, %c0_54] : memref<120x8xf32, #tpu.memory_space<vmem>>, vector<8x8xf32>
    tpu.vector_store %arg14[%c50, %c0_54], %49 {strides = array<i32>} : memref<120x8xf32, #tpu.memory_space<vmem>>, vector<8x8xf32>,
    %c72 = arith.constant 72 : index
    %c0_55 = arith.constant 0 : index
    %51 = vector.load %arg13[%c72, %c0_55] : memref<144x8xf32, #tpu.memory_space<vmem>>, vector<8x8xf32>
    %c81 = arith.constant 81 : index
    %c0_56 = arith.constant 0 : index
    %52 = vector.load %arg13[%c81, %c0_56] : memref<144x8xf32, #tpu.memory_space<vmem>>, vector<8x8xf32>
    %53 = arith.maximumf %51, %52 : vector<8x8xf32>
    %c60 = arith.constant 60 : index
    %c0_57 = arith.constant 0 : index
    %54 = vector.load %arg14[%c60, %c0_57] : memref<120x8xf32, #tpu.memory_space<vmem>>, vector<8x8xf32>
    tpu.vector_store %arg14[%c60, %c0_57], %53 {strides = array<i32>} : memref<120x8xf32, #tpu.memory_space<vmem>>, vector<8x8xf32>,
    %c90 = arith.constant 90 : index
    %c0_58 = arith.constant 0 : index
    %55 = vector.load %arg13[%c90, %c0_58] : memref<144x8xf32, #tpu.memory_space<vmem>>, vector<8x8xf32>
    %c99 = arith.constant 99 : index
    %c0_59 = arith.constant 0 : index
    %56 = vector.load %arg13[%c99, %c0_59] : memref<144x8xf32, #tpu.memory_space<vmem>>, vector<8x8xf32>
    %57 = arith.maximumf %55, %56 : vector<8x8xf32>
    %c70 = arith.constant 70 : index
    %c0_60 = arith.constant 0 : index
    %58 = vector.load %arg14[%c70, %c0_60] : memref<120x8xf32, #tpu.memory_space<vmem>>, vector<8x8xf32>
    tpu.vector_store %arg14[%c70, %c0_60], %57 {strides = array<i32>} : memref<120x8xf32, #tpu.memory_space<vmem>>, vector<8x8xf32>,
    %c108 = arith.constant 108 : index
    %c0_61 = arith.constant 0 : index
    %59 = vector.load %arg13[%c108, %c0_61] : memref<144x8xf32, #tpu.memory_space<vmem>>, vector<8x8xf32>
    %c117 = arith.constant 117 : index
    %c0_62 = arith.constant 0 : index
    %60 = vector.load %arg13[%c117, %c0_62] : memref<144x8xf32, #tpu.memory_space<vmem>>, vector<8x8xf32>
    %61 = arith.maximumf %59, %60 : vector<8x8xf32>
    %c80 = arith.constant 80 : index
    %c0_63 = arith.constant 0 : index
    %62 = vector.load %arg14[%c80, %c0_63] : memref<120x8xf32, #tpu.memory_space<vmem>>, vector<8x8xf32>
    tpu.vector_store %arg14[%c80, %c0_63], %61 {strides = array<i32>} : memref<120x8xf32, #tpu.memory_space<vmem>>, vector<8x8xf32>,
    %c126 = arith.constant 126 : index
    %c0_64 = arith.constant 0 : index
    %63 = vector.load %arg13[%c126, %c0_64] : memref<144x8xf32, #tpu.memory_space<vmem>>, vector<8x8xf32>
    %c135 = arith.constant 135 : index
    %c0_65 = arith.constant 0 : index
    %64 = vector.load %arg13[%c135, %c0_65] : memref<144x8xf32, #tpu.memory_space<vmem>>, vector<8x8xf32>
    %65 = arith.maximumf %63, %64 : vector<8x8xf32>
    %c90_66 = arith.constant 90 : index
    %c0_67 = arith.constant 0 : index
    %66 = vector.load %arg14[%c90_66, %c0_67] : memref<120x8xf32, #tpu.memory_space<vmem>>, vector<8x8xf32>
    tpu.vector_store %arg14[%c90_66, %c0_67], %65 {strides = array<i32>} : memref<120x8xf32, #tpu.memory_space<vmem>>, vector<8x8xf32>,
    %c9_68 = arith.constant 9 : index
    %c0_69 = arith.constant 0 : index
    %67 = vector.load %arg14[%c9_68, %c0_69] : memref<120x8xf32, #tpu.memory_space<vmem>>, vector<80x8xf32>
    %c0_70 = arith.constant 0 : index
    %c0_71 = arith.constant 0 : index
    %68 = vector.load %arg15[%c0_70, %c0_71] : memref<80x72xf32, #tpu.memory_space<vmem>>, vector<80x8xf32>
    tpu.vector_store %arg15[%c0_70, %c0_71], %67 {strides = array<i32>} : memref<80x72xf32, #tpu.memory_space<vmem>>, vector<80x8xf32>,
    %c10 = arith.constant 10 : index
    %c0_72 = arith.constant 0 : index
    %69 = vector.load %arg14[%c10, %c0_72] : memref<120x8xf32, #tpu.memory_space<vmem>>, vector<80x8xf32>
    %c0_73 = arith.constant 0 : index
    %c8_74 = arith.constant 8 : index
    %70 = vector.load %arg15[%c0_73, %c8_74] : memref<80x72xf32, #tpu.memory_space<vmem>>, vector<80x8xf32>
    tpu.vector_store %arg15[%c0_73, %c8_74], %69 {strides = array<i32>} : memref<80x72xf32, #tpu.memory_space<vmem>>, vector<80x8xf32>,
    %c11 = arith.constant 11 : index
    %c0_75 = arith.constant 0 : index
    %71 = vector.load %arg14[%c11, %c0_75] : memref<120x8xf32, #tpu.memory_space<vmem>>, vector<80x8xf32>
    %c0_76 = arith.constant 0 : index
    %c16_77 = arith.constant 16 : index
    %72 = vector.load %arg15[%c0_76, %c16_77] : memref<80x72xf32, #tpu.memory_space<vmem>>, vector<80x8xf32>
    tpu.vector_store %arg15[%c0_76, %c16_77], %71 {strides = array<i32>} : memref<80x72xf32, #tpu.memory_space<vmem>>, vector<80x8xf32>,
    %c19_78 = arith.constant 19 : index
    %c0_79 = arith.constant 0 : index
    %73 = vector.load %arg14[%c19_78, %c0_79] : memref<120x8xf32, #tpu.memory_space<vmem>>, vector<80x8xf32>
    %c0_80 = arith.constant 0 : index
    %c24_81 = arith.constant 24 : index
    %74 = vector.load %arg15[%c0_80, %c24_81] : memref<80x72xf32, #tpu.memory_space<vmem>>, vector<80x8xf32>
    tpu.vector_store %arg15[%c0_80, %c24_81], %73 {strides = array<i32>} : memref<80x72xf32, #tpu.memory_space<vmem>>, vector<80x8xf32>,
    %c20_82 = arith.constant 20 : index
    %c0_83 = arith.constant 0 : index
    %75 = vector.load %arg14[%c20_82, %c0_83] : memref<120x8xf32, #tpu.memory_space<vmem>>, vector<80x8xf32>
    %c0_84 = arith.constant 0 : index
    %c32_85 = arith.constant 32 : index
    %76 = vector.load %arg15[%c0_84, %c32_85] : memref<80x72xf32, #tpu.memory_space<vmem>>, vector<80x8xf32>
    tpu.vector_store %arg15[%c0_84, %c32_85], %75 {strides = array<i32>} : memref<80x72xf32, #tpu.memory_space<vmem>>, vector<80x8xf32>,
    %c21 = arith.constant 21 : index
    %c0_86 = arith.constant 0 : index
    %77 = vector.load %arg14[%c21, %c0_86] : memref<120x8xf32, #tpu.memory_space<vmem>>, vector<80x8xf32>
    %c0_87 = arith.constant 0 : index
    %c40_88 = arith.constant 40 : index
    %78 = vector.load %arg15[%c0_87, %c40_88] : memref<80x72xf32, #tpu.memory_space<vmem>>, vector<80x8xf32>
    tpu.vector_store %arg15[%c0_87, %c40_88], %77 {strides = array<i32>} : memref<80x72xf32, #tpu.memory_space<vmem>>, vector<80x8xf32>,
    %c29 = arith.constant 29 : index
    %c0_89 = arith.constant 0 : index
    %79 = vector.load %arg14[%c29, %c0_89] : memref<120x8xf32, #tpu.memory_space<vmem>>, vector<80x8xf32>
    %c0_90 = arith.constant 0 : index
    %c48_91 = arith.constant 48 : index
    %80 = vector.load %arg15[%c0_90, %c48_91] : memref<80x72xf32, #tpu.memory_space<vmem>>, vector<80x8xf32>
    tpu.vector_store %arg15[%c0_90, %c48_91], %79 {strides = array<i32>} : memref<80x72xf32, #tpu.memory_space<vmem>>, vector<80x8xf32>,
    %c30_92 = arith.constant 30 : index
    %c0_93 = arith.constant 0 : index
    %81 = vector.load %arg14[%c30_92, %c0_93] : memref<120x8xf32, #tpu.memory_space<vmem>>, vector<80x8xf32>
    %c0_94 = arith.constant 0 : index
    %c56_95 = arith.constant 56 : index
    %82 = vector.load %arg15[%c0_94, %c56_95] : memref<80x72xf32, #tpu.memory_space<vmem>>, vector<80x8xf32>
    tpu.vector_store %arg15[%c0_94, %c56_95], %81 {strides = array<i32>} : memref<80x72xf32, #tpu.memory_space<vmem>>, vector<80x8xf32>,
    %c31 = arith.constant 31 : index
    %c0_96 = arith.constant 0 : index
    %83 = vector.load %arg14[%c31, %c0_96] : memref<120x8xf32, #tpu.memory_space<vmem>>, vector<80x8xf32>
    %c0_97 = arith.constant 0 : index
    %c64_98 = arith.constant 64 : index
    %84 = vector.load %arg15[%c0_97, %c64_98] : memref<80x72xf32, #tpu.memory_space<vmem>>, vector<80x8xf32>
    tpu.vector_store %arg15[%c0_97, %c64_98], %83 {strides = array<i32>} : memref<80x72xf32, #tpu.memory_space<vmem>>, vector<80x8xf32>,
    %c0_99 = arith.constant 0 : index
    %c0_100 = arith.constant 0 : index
    %85 = vector.load %arg15[%c0_99, %c0_100] : memref<80x72xf32, #tpu.memory_space<vmem>>, vector<80x72xf32>
    %c0_101 = arith.constant 0 : index
    %c0_102 = arith.constant 0 : index
    %86 = vector.load %arg4[%c0_101, %c0_102] : memref<72x16xf32, #tpu.memory_space<vmem>>, vector<72x16xf32>
    %cst_103 = arith.constant dense<0.000000e+00> : vector<80x16xf32>
    %87 = tpu.matmul %85, %86, %cst_103 {dimension_numbers = #tpu.dot_dimension_numbers<[1], [0], [0], [1], [0, 0, 1, 1], [], []>} : vector<80x72xf32>, vector<72x16xf32>, vector<80x16xf32> -> vector<80x16xf32>
    %c0_104 = arith.constant 0 : index
    %c0_105 = arith.constant 0 : index
    %88 = vector.load %arg5[%c0_104, %c0_105] : memref<1x16xf32, #tpu.memory_space<vmem>>, vector<1x16xf32>
    %89 = vector.broadcast %88 : vector<1x16xf32> to vector<80x16xf32>
    %90 = arith.addf %87, %89 : vector<80x16xf32>
    %cst_106 = arith.constant 0.000000e+00 : f32
    %91 = vector.broadcast %cst_106 : f32 to vector<80x16xf32>
    %92 = arith.maximumf %90, %91 : vector<80x16xf32>
    %c0_107 = arith.constant 0 : index
    %c0_108 = arith.constant 0 : index
    %93 = vector.load %arg16[%c0_107, %c0_108] : memref<80x16xf32, #tpu.memory_space<vmem>>, vector<80x16xf32>
    tpu.vector_store %arg16[%c0_107, %c0_108], %92 {strides = array<i32>} : memref<80x16xf32, #tpu.memory_space<vmem>>, vector<80x16xf32>,
    %c0_109 = arith.constant 0 : index
    %c0_110 = arith.constant 0 : index
    %94 = tpu.strided_load %arg16[%c0_109, %c0_110] {strides = array<i32: 2, 1>} : memref<80x16xf32, #tpu.memory_space<vmem>>, vector<40x16xf32>
    %c1_111 = arith.constant 1 : index
    %c0_112 = arith.constant 0 : index
    %95 = tpu.strided_load %arg16[%c1_111, %c0_112] {strides = array<i32: 2, 1>} : memref<80x16xf32, #tpu.memory_space<vmem>>, vector<40x16xf32>
    %96 = arith.maximumf %94, %95 : vector<40x16xf32>
    %c0_113 = arith.constant 0 : index
    %c0_114 = arith.constant 0 : index
    %97 = vector.load %arg17[%c0_113, %c0_114] : memref<40x16xf32, #tpu.memory_space<vmem>>, vector<40x16xf32>
    tpu.vector_store %arg17[%c0_113, %c0_114], %96 {strides = array<i32>} : memref<40x16xf32, #tpu.memory_space<vmem>>, vector<40x16xf32>,
    %c0_115 = arith.constant 0 : index
    %c0_116 = arith.constant 0 : index
    %98 = vector.load %arg17[%c0_115, %c0_116] : memref<40x16xf32, #tpu.memory_space<vmem>>, vector<4x16xf32>
    %c5 = arith.constant 5 : index
    %c0_117 = arith.constant 0 : index
    %99 = vector.load %arg17[%c5, %c0_117] : memref<40x16xf32, #tpu.memory_space<vmem>>, vector<4x16xf32>
    %100 = arith.maximumf %98, %99 : vector<4x16xf32>
    %c12 = arith.constant 12 : index
    %c0_118 = arith.constant 0 : index
    %101 = vector.load %arg18[%c12, %c0_118] : memref<48x16xf32, #tpu.memory_space<vmem>>, vector<4x16xf32>
    tpu.vector_store %arg18[%c12, %c0_118], %100 {strides = array<i32>} : memref<48x16xf32, #tpu.memory_space<vmem>>, vector<4x16xf32>,
    %c10_119 = arith.constant 10 : index
    %c0_120 = arith.constant 0 : index
    %102 = vector.load %arg17[%c10_119, %c0_120] : memref<40x16xf32, #tpu.memory_space<vmem>>, vector<4x16xf32>
    %c15 = arith.constant 15 : index
    %c0_121 = arith.constant 0 : index
    %103 = vector.load %arg17[%c15, %c0_121] : memref<40x16xf32, #tpu.memory_space<vmem>>, vector<4x16xf32>
    %104 = arith.maximumf %102, %103 : vector<4x16xf32>
    %c18_122 = arith.constant 18 : index
    %c0_123 = arith.constant 0 : index
    %105 = vector.load %arg18[%c18_122, %c0_123] : memref<48x16xf32, #tpu.memory_space<vmem>>, vector<4x16xf32>
    tpu.vector_store %arg18[%c18_122, %c0_123], %104 {strides = array<i32>} : memref<48x16xf32, #tpu.memory_space<vmem>>, vector<4x16xf32>,
    %c20_124 = arith.constant 20 : index
    %c0_125 = arith.constant 0 : index
    %106 = vector.load %arg17[%c20_124, %c0_125] : memref<40x16xf32, #tpu.memory_space<vmem>>, vector<4x16xf32>
    %c25 = arith.constant 25 : index
    %c0_126 = arith.constant 0 : index
    %107 = vector.load %arg17[%c25, %c0_126] : memref<40x16xf32, #tpu.memory_space<vmem>>, vector<4x16xf32>
    %108 = arith.maximumf %106, %107 : vector<4x16xf32>
    %c24_127 = arith.constant 24 : index
    %c0_128 = arith.constant 0 : index
    %109 = vector.load %arg18[%c24_127, %c0_128] : memref<48x16xf32, #tpu.memory_space<vmem>>, vector<4x16xf32>
    tpu.vector_store %arg18[%c24_127, %c0_128], %108 {strides = array<i32>} : memref<48x16xf32, #tpu.memory_space<vmem>>, vector<4x16xf32>,
    %c30_129 = arith.constant 30 : index
    %c0_130 = arith.constant 0 : index
    %110 = vector.load %arg17[%c30_129, %c0_130] : memref<40x16xf32, #tpu.memory_space<vmem>>, vector<4x16xf32>
    %c35_131 = arith.constant 35 : index
    %c0_132 = arith.constant 0 : index
    %111 = vector.load %arg17[%c35_131, %c0_132] : memref<40x16xf32, #tpu.memory_space<vmem>>, vector<4x16xf32>
    %112 = arith.maximumf %110, %111 : vector<4x16xf32>
    %c30_133 = arith.constant 30 : index
    %c0_134 = arith.constant 0 : index
    %113 = vector.load %arg18[%c30_133, %c0_134] : memref<48x16xf32, #tpu.memory_space<vmem>>, vector<4x16xf32>
    tpu.vector_store %arg18[%c30_133, %c0_134], %112 {strides = array<i32>} : memref<48x16xf32, #tpu.memory_space<vmem>>, vector<4x16xf32>,
    %c5_135 = arith.constant 5 : index
    %c0_136 = arith.constant 0 : index
    %114 = vector.load %arg18[%c5_135, %c0_136] : memref<48x16xf32, #tpu.memory_space<vmem>>, vector<24x16xf32>
    %c0_137 = arith.constant 0 : index
    %c0_138 = arith.constant 0 : index
    %115 = vector.load %arg19[%c0_137, %c0_138] : memref<24x144xf32, #tpu.memory_space<vmem>>, vector<24x16xf32>
    tpu.vector_store %arg19[%c0_137, %c0_138], %114 {strides = array<i32>} : memref<24x144xf32, #tpu.memory_space<vmem>>, vector<24x16xf32>,
    %c6 = arith.constant 6 : index
    %c0_139 = arith.constant 0 : index
    %116 = vector.load %arg18[%c6, %c0_139] : memref<48x16xf32, #tpu.memory_space<vmem>>, vector<24x16xf32>
    %c0_140 = arith.constant 0 : index
    %c16_141 = arith.constant 16 : index
    %117 = vector.load %arg19[%c0_140, %c16_141] : memref<24x144xf32, #tpu.memory_space<vmem>>, vector<24x16xf32>
    tpu.vector_store %arg19[%c0_140, %c16_141], %116 {strides = array<i32>} : memref<24x144xf32, #tpu.memory_space<vmem>>, vector<24x16xf32>,
    %c7 = arith.constant 7 : index
    %c0_142 = arith.constant 0 : index
    %118 = vector.load %arg18[%c7, %c0_142] : memref<48x16xf32, #tpu.memory_space<vmem>>, vector<24x16xf32>
    %c0_143 = arith.constant 0 : index
    %c32_144 = arith.constant 32 : index
    %119 = vector.load %arg19[%c0_143, %c32_144] : memref<24x144xf32, #tpu.memory_space<vmem>>, vector<24x16xf32>
    tpu.vector_store %arg19[%c0_143, %c32_144], %118 {strides = array<i32>} : memref<24x144xf32, #tpu.memory_space<vmem>>, vector<24x16xf32>,
    %c11_145 = arith.constant 11 : index
    %c0_146 = arith.constant 0 : index
    %120 = vector.load %arg18[%c11_145, %c0_146] : memref<48x16xf32, #tpu.memory_space<vmem>>, vector<24x16xf32>
    %c0_147 = arith.constant 0 : index
    %c48_148 = arith.constant 48 : index
    %121 = vector.load %arg19[%c0_147, %c48_148] : memref<24x144xf32, #tpu.memory_space<vmem>>, vector<24x16xf32>
    tpu.vector_store %arg19[%c0_147, %c48_148], %120 {strides = array<i32>} : memref<24x144xf32, #tpu.memory_space<vmem>>, vector<24x16xf32>,
    %c12_149 = arith.constant 12 : index
    %c0_150 = arith.constant 0 : index
    %122 = vector.load %arg18[%c12_149, %c0_150] : memref<48x16xf32, #tpu.memory_space<vmem>>, vector<24x16xf32>
    %c0_151 = arith.constant 0 : index
    %c64_152 = arith.constant 64 : index
    %123 = vector.load %arg19[%c0_151, %c64_152] : memref<24x144xf32, #tpu.memory_space<vmem>>, vector<24x16xf32>
    tpu.vector_store %arg19[%c0_151, %c64_152], %122 {strides = array<i32>} : memref<24x144xf32, #tpu.memory_space<vmem>>, vector<24x16xf32>,
    %c13 = arith.constant 13 : index
    %c0_153 = arith.constant 0 : index
    %124 = vector.load %arg18[%c13, %c0_153] : memref<48x16xf32, #tpu.memory_space<vmem>>, vector<24x16xf32>
    %c0_154 = arith.constant 0 : index
    %c80_155 = arith.constant 80 : index
    %125 = vector.load %arg19[%c0_154, %c80_155] : memref<24x144xf32, #tpu.memory_space<vmem>>, vector<24x16xf32>
    tpu.vector_store %arg19[%c0_154, %c80_155], %124 {strides = array<i32>} : memref<24x144xf32, #tpu.memory_space<vmem>>, vector<24x16xf32>,
    %c17_156 = arith.constant 17 : index
    %c0_157 = arith.constant 0 : index
    %126 = vector.load %arg18[%c17_156, %c0_157] : memref<48x16xf32, #tpu.memory_space<vmem>>, vector<24x16xf32>
    %c0_158 = arith.constant 0 : index
    %c96 = arith.constant 96 : index
    %127 = vector.load %arg19[%c0_158, %c96] : memref<24x144xf32, #tpu.memory_space<vmem>>, vector<24x16xf32>
    tpu.vector_store %arg19[%c0_158, %c96], %126 {strides = array<i32>} : memref<24x144xf32, #tpu.memory_space<vmem>>, vector<24x16xf32>,
    %c18_159 = arith.constant 18 : index
    %c0_160 = arith.constant 0 : index
    %128 = vector.load %arg18[%c18_159, %c0_160] : memref<48x16xf32, #tpu.memory_space<vmem>>, vector<24x16xf32>
    %c0_161 = arith.constant 0 : index
    %c112 = arith.constant 112 : index
    %129 = vector.load %arg19[%c0_161, %c112] : memref<24x144xf32, #tpu.memory_space<vmem>>, vector<24x16xf32>
    tpu.vector_store %arg19[%c0_161, %c112], %128 {strides = array<i32>} : memref<24x144xf32, #tpu.memory_space<vmem>>, vector<24x16xf32>,
    %c19_162 = arith.constant 19 : index
    %c0_163 = arith.constant 0 : index
    %130 = vector.load %arg18[%c19_162, %c0_163] : memref<48x16xf32, #tpu.memory_space<vmem>>, vector<24x16xf32>
    %c0_164 = arith.constant 0 : index
    %c128 = arith.constant 128 : index
    %131 = vector.load %arg19[%c0_164, %c128] : memref<24x144xf32, #tpu.memory_space<vmem>>, vector<24x16xf32>
    tpu.vector_store %arg19[%c0_164, %c128], %130 {strides = array<i32>} : memref<24x144xf32, #tpu.memory_space<vmem>>, vector<24x16xf32>,
    %c0_165 = arith.constant 0 : index
    %c0_166 = arith.constant 0 : index
    %132 = vector.load %arg19[%c0_165, %c0_166] : memref<24x144xf32, #tpu.memory_space<vmem>>, vector<24x144xf32>
    %c0_167 = arith.constant 0 : index
    %c0_168 = arith.constant 0 : index
    %133 = vector.load %arg6[%c0_167, %c0_168] : memref<144x32xf32, #tpu.memory_space<vmem>>, vector<144x32xf32>
    %cst_169 = arith.constant dense<0.000000e+00> : vector<24x32xf32>
    %134 = tpu.matmul %132, %133, %cst_169 {dimension_numbers = #tpu.dot_dimension_numbers<[1], [0], [0], [1], [0, 0, 1, 1], [], []>} : vector<24x144xf32>, vector<144x32xf32>, vector<24x32xf32> -> vector<24x32xf32>
    %c0_170 = arith.constant 0 : index
    %c0_171 = arith.constant 0 : index
    %135 = vector.load %arg7[%c0_170, %c0_171] : memref<1x32xf32, #tpu.memory_space<vmem>>, vector<1x32xf32>
    %136 = vector.broadcast %135 : vector<1x32xf32> to vector<24x32xf32>
    %137 = arith.addf %134, %136 : vector<24x32xf32>
    %cst_172 = arith.constant 0.000000e+00 : f32
    %138 = vector.broadcast %cst_172 : f32 to vector<24x32xf32>
    %139 = arith.maximumf %137, %138 : vector<24x32xf32>
    %c0_173 = arith.constant 0 : index
    %c0_174 = arith.constant 0 : index
    %140 = vector.load %arg20[%c0_173, %c0_174] : memref<24x32xf32, #tpu.memory_space<vmem>>, vector<24x32xf32>
    tpu.vector_store %arg20[%c0_173, %c0_174], %139 {strides = array<i32>} : memref<24x32xf32, #tpu.memory_space<vmem>>, vector<24x32xf32>,
    %c0_175 = arith.constant 0 : index
    %c0_176 = arith.constant 0 : index
    %141 = tpu.strided_load %arg20[%c0_175, %c0_176] {strides = array<i32: 2, 1>} : memref<24x32xf32, #tpu.memory_space<vmem>>, vector<12x32xf32>
    %c1_177 = arith.constant 1 : index
    %c0_178 = arith.constant 0 : index
    %142 = tpu.strided_load %arg20[%c1_177, %c0_178] {strides = array<i32: 2, 1>} : memref<24x32xf32, #tpu.memory_space<vmem>>, vector<12x32xf32>
    %143 = arith.maximumf %141, %142 : vector<12x32xf32>
    %c0_179 = arith.constant 0 : index
    %c0_180 = arith.constant 0 : index
    %144 = vector.load %arg21[%c0_179, %c0_180] : memref<12x32xf32, #tpu.memory_space<vmem>>, vector<12x32xf32>
    tpu.vector_store %arg21[%c0_179, %c0_180], %143 {strides = array<i32>} : memref<12x32xf32, #tpu.memory_space<vmem>>, vector<12x32xf32>,
    %c0_181 = arith.constant 0 : index
    %c0_182 = arith.constant 0 : index
    %145 = vector.load %arg21[%c0_181, %c0_182] : memref<12x32xf32, #tpu.memory_space<vmem>>, vector<2x32xf32>
    %c3 = arith.constant 3 : index
    %c0_183 = arith.constant 0 : index
    %146 = vector.load %arg21[%c3, %c0_183] : memref<12x32xf32, #tpu.memory_space<vmem>>, vector<2x32xf32>
    %147 = arith.maximumf %145, %146 : vector<2x32xf32>
    %148 = vector.extract_strided_slice %147 {offsets = [0, 0], sizes = [1, 32], strides = [1, 1]} : vector<2x32xf32> to vector<1x32xf32>
    %c0_184 = arith.constant 0 : index
    %c0_185 = arith.constant 0 : index
    %149 = vector.load %arg22[%c0_184, %c0_185] : memref<1x128xf32, #tpu.memory_space<vmem>>, vector<1x32xf32>
    tpu.vector_store %arg22[%c0_184, %c0_185], %148 {strides = array<i32>} : memref<1x128xf32, #tpu.memory_space<vmem>>, vector<1x32xf32>,
    %150 = vector.extract_strided_slice %147 {offsets = [1, 0], sizes = [1, 32], strides = [1, 1]} : vector<2x32xf32> to vector<1x32xf32>
    %c0_186 = arith.constant 0 : index
    %c32_187 = arith.constant 32 : index
    %151 = vector.load %arg22[%c0_186, %c32_187] : memref<1x128xf32, #tpu.memory_space<vmem>>, vector<1x32xf32>
    tpu.vector_store %arg22[%c0_186, %c32_187], %150 {strides = array<i32>} : memref<1x128xf32, #tpu.memory_space<vmem>>, vector<1x32xf32>,
    %c6_188 = arith.constant 6 : index
    %c0_189 = arith.constant 0 : index
    %152 = vector.load %arg21[%c6_188, %c0_189] : memref<12x32xf32, #tpu.memory_space<vmem>>, vector<2x32xf32>
    %c9_190 = arith.constant 9 : index
    %c0_191 = arith.constant 0 : index
    %153 = vector.load %arg21[%c9_190, %c0_191] : memref<12x32xf32, #tpu.memory_space<vmem>>, vector<2x32xf32>
    %154 = arith.maximumf %152, %153 : vector<2x32xf32>
    %155 = vector.extract_strided_slice %154 {offsets = [0, 0], sizes = [1, 32], strides = [1, 1]} : vector<2x32xf32> to vector<1x32xf32>
    %c0_192 = arith.constant 0 : index
    %c64_193 = arith.constant 64 : index
    %156 = vector.load %arg22[%c0_192, %c64_193] : memref<1x128xf32, #tpu.memory_space<vmem>>, vector<1x32xf32>
    tpu.vector_store %arg22[%c0_192, %c64_193], %155 {strides = array<i32>} : memref<1x128xf32, #tpu.memory_space<vmem>>, vector<1x32xf32>,
    %157 = vector.extract_strided_slice %154 {offsets = [1, 0], sizes = [1, 32], strides = [1, 1]} : vector<2x32xf32> to vector<1x32xf32>
    %c0_194 = arith.constant 0 : index
    %c96_195 = arith.constant 96 : index
    %158 = vector.load %arg22[%c0_194, %c96_195] : memref<1x128xf32, #tpu.memory_space<vmem>>, vector<1x32xf32>
    tpu.vector_store %arg22[%c0_194, %c96_195], %157 {strides = array<i32>} : memref<1x128xf32, #tpu.memory_space<vmem>>, vector<1x32xf32>,
    %c0_196 = arith.constant 0 : index
    %c0_197 = arith.constant 0 : index
    %159 = vector.load %arg9[%c0_196, %c0_197] : memref<1x256xf32, #tpu.memory_space<vmem>>, vector<1x256xf32>
    %c0_198 = arith.constant 0 : index
    %c0_199 = arith.constant 0 : index
    %160 = vector.load %arg22[%c0_198, %c0_199] : memref<1x128xf32, #tpu.memory_space<vmem>>, vector<1x128xf32>
    %c0_200 = arith.constant 0 : index
    %c0_201 = arith.constant 0 : index
    %161 = vector.load %arg8[%c0_200, %c0_201] : memref<128x256xf32, #tpu.memory_space<vmem>>, vector<128x256xf32>
    %cst_202 = arith.constant dense<0.000000e+00> : vector<1x256xf32>
    %162 = tpu.matmul %160, %161, %cst_202 {dimension_numbers = #tpu.dot_dimension_numbers<[1], [0], [0], [1], [0, 0, 1, 1], [], []>} : vector<1x128xf32>, vector<128x256xf32>, vector<1x256xf32> -> vector<1x256xf32>
    %163 = arith.addf %159, %162 : vector<1x256xf32>
    %cst_203 = arith.constant 0.000000e+00 : f32
    %164 = vector.broadcast %cst_203 : f32 to vector<1x256xf32>
    %165 = arith.subf %164, %163 : vector<1x256xf32>
    %166 = math.exp %165 : vector<1x256xf32>
    %cst_204 = arith.constant 1.000000e+00 : f32
    %167 = vector.broadcast %cst_204 : f32 to vector<1x256xf32>
    %168 = arith.addf %167, %166 : vector<1x256xf32>
    %cst_205 = arith.constant 1.000000e+00 : f32
    %169 = vector.broadcast %cst_205 : f32 to vector<1x256xf32>
    %170 = arith.divf %169, %168 : vector<1x256xf32>
    %c0_206 = arith.constant 0 : index
    %c0_207 = arith.constant 0 : index
    %c0_208 = arith.constant 0 : index
    %171 = vector.load %arg10[%c0_206, %c0_207, %c0_208] : memref<1x1x256xf32, #tpu.memory_space<vmem>>, vector<1x1x256xf32>
    %172 = vector.shape_cast %171 : vector<1x1x256xf32> to vector<1x256xf32>
    %173 = vector.shape_cast %170 : vector<1x256xf32> to vector<1x1x256xf32>
    tpu.vector_store %arg10[%c0_206, %c0_207, %c0_208], %173 {strides = array<i32>} : memref<1x1x256xf32, #tpu.memory_space<vmem>>, vector<1x1x256xf32>,
    return
  }
  func.func @transform_0(%arg0: i32) -> (i32, i32) {
    %c0_i32 = arith.constant 0 : i32
    %c0_i32_0 = arith.constant 0 : i32
    return %arg0, %c0_i32 : i32, i32
  }
  func.func @transform_1(%arg0: i32) -> (i32, i32) {
    %c0_i32 = arith.constant 0 : i32
    %c0_i32_0 = arith.constant 0 : i32
    %c0_i32_1 = arith.constant 0 : i32
    return %c0_i32, %c0_i32_0 : i32, i32
  }
  func.func @transform_2(%arg0: i32) -> (i32, i32) {
    %c0_i32 = arith.constant 0 : i32
    %c0_i32_0 = arith.constant 0 : i32
    %c0_i32_1 = arith.constant 0 : i32
    return %c0_i32, %c0_i32_0 : i32, i32
  }
  func.func @transform_3(%arg0: i32) -> (i32, i32) {
    %c0_i32 = arith.constant 0 : i32
    %c0_i32_0 = arith.constant 0 : i32
    %c0_i32_1 = arith.constant 0 : i32
    return %c0_i32, %c0_i32_0 : i32, i32
  }
  func.func @transform_4(%arg0: i32) -> (i32, i32) {
    %c0_i32 = arith.constant 0 : i32
    %c0_i32_0 = arith.constant 0 : i32
    %c0_i32_1 = arith.constant 0 : i32
    return %c0_i32, %c0_i32_0 : i32, i32
  }
  func.func @transform_5(%arg0: i32) -> (i32, i32) {
    %c0_i32 = arith.constant 0 : i32
    %c0_i32_0 = arith.constant 0 : i32
    %c0_i32_1 = arith.constant 0 : i32
    return %c0_i32, %c0_i32_0 : i32, i32
  }
  func.func @transform_6(%arg0: i32) -> (i32, i32) {
    %c0_i32 = arith.constant 0 : i32
    %c0_i32_0 = arith.constant 0 : i32
    %c0_i32_1 = arith.constant 0 : i32
    return %c0_i32, %c0_i32_0 : i32, i32
  }
  func.func @transform_7(%arg0: i32) -> (i32, i32) {
    %c0_i32 = arith.constant 0 : i32
    %c0_i32_0 = arith.constant 0 : i32
    %c0_i32_1 = arith.constant 0 : i32
    return %c0_i32, %c0_i32_0 : i32, i32
  }
  func.func @transform_8(%arg0: i32) -> (i32, i32) {
    %c0_i32 = arith.constant 0 : i32
    %c0_i32_0 = arith.constant 0 : i32
    %c0_i32_1 = arith.constant 0 : i32
    return %c0_i32, %c0_i32_0 : i32, i32
  }
  func.func @transform_9(%arg0: i32) -> (i32, i32, i32) {
    %c0_i32 = arith.constant 0 : i32
    %c0_i32_0 = arith.constant 0 : i32
    %c0_i32_1 = arith.constant 0 : i32
    return %arg0, %c0_i32, %c0_i32_0 : i32, i32, i32
  }
}

</mosaic_0001>

<bundles_post_ra>
// kernel: tpu_custom_call.1
= control target key start
LH: loop header
LB: loop body
LE: loop exit
PB: predicated region body
PF: predicated region fallthrough
CT: control target
= control target key end

     0   :  { %14 = vsyncpa [#allocation15], 0  ;;  %s6218_s0 = inlined_call_operand.vmem [shape: f32[720,8], index: 0, kind: input, shape index: {}]   ;;  %s6219_s1 = inlined_call_operand.vmem [shape: f32[72,8], index: 1, kind: input, shape index: {}]   ;;  %s6220_s2 = inlined_call_operand.vmem [shape: f32[1,8], index: 2, kind: input, shape index: {}]   ;;  %s6221_s3 = inlined_call_operand.vmem [shape: f32[72,16], index: 3, kind: input, shape index: {}]   ;;  %s6222_s4 = inlined_call_operand.vmem [shape: f32[1,16], index: 4, kind: input, shape index: {}]   ;;  %s6223_s5 = inlined_call_operand.vmem [shape: f32[144,32], index: 5, kind: input, shape index: {}]   ;;  %s6224_s6 = inlined_call_operand.vmem [shape: f32[1,32], index: 6, kind: input, shape index: {}]   ;;  %s6225_s7 = inlined_call_operand.vmem [shape: f32[128,256], index: 7, kind: input, shape index: {}]   ;;  %s6226_s8 = inlined_call_operand.vmem [shape: f32[1,256], index: 8, kind: input, shape index: {}]   ;;  %s6227_s9 = inlined_call_operand.hbm [shape: f32[2,1,256], index: 9, kind: output, shape index: {}]  }
   0x1   :  { %16 = vsyncpa [#allocation15 + $0x1], 0  ;;  %s4452_s30 = smov 0   ;;  %s4454_s10 = smov 0  }
   0x2   :  { %s4456_s11 = smov 0   ;;  %s4458_s12 = smov 0  }
   0x3 LB: > { %s4473_s13 = sadd.s32 4294967295, %s4386_s12   ;;  %s4036_s14 = sadd.s32 4294967294, %s4386_s12   ;;  %s4386_s12 = sphi %s4458_s12, %s6244_s12   ;;  %s4382_s11 = sphi %s4456_s11, %s6243_s11   ;;  %s4378_s10 = sphi %s4454_s10, %s6242_s10   ;;  %s4374_s30 = sphi %s4452_s30, %s6241_s30  }
   0x4   : > { %s4477_s15 = sadd.s32 1, %s4386_s12   ;;  %s223_s16 = sadd.s32 1, %s4382_s11 }
   0x5   : > { %s220_s17 = ssub.s32 %s4386_s12, %s4477_s15  ;;  %p233_p0 = scmp.ne.s32.totalorder %s4382_s11, %s4378_s10 }
   0x6   : > { %p221_p1 = scmp.eq.s32.totalorder %s220_s17, 0  ;;  %p234_p2 = scmp.eq.s32.totalorder %s4473_s13, 1 }
   0x7   : > { %p239_p3 = scmp.ne.s32.totalorder %s4378_s10, %s4374_s30  ;;  %p240_p4 = scmp.eq.s32.totalorder %s4036_s14, 1 }
   0x8   : > { %s4488_s18 = scalar_select %p221_p1, %s4382_s11, %s223_s16  }
   0x9   : > { %p4490_p5 = por %p234_p2, %p233_p0  ;;  %p4494_p6 = por %p240_p4, %p239_p3 }
   0xa   : > { %p4039_p7 = scmp.ge.s32.totalorder %s4386_s12, 1  ;;  %p291_p8 = scmp.lt.s32.totalorder %s4386_s12, 3 }
   0xc   : > { %p292_p9 = pnand %p4039_p7, %p291_p8 }
   0xd   : > { %s327_s21 = smul.u32 (!%p292_p9), 45, %s4473_s13  ;;  %s6232_s26 = smov (!%p292_p9), 16  }
   0xe   : > { %295 = sbr.rel (%p292_p9) target bundleno = 2057 (0x809), region = 56  ;;  %s4389_s27 = smov (!%p292_p9), 8  }
   0xf   : > { %p328_p10 = scmp.lt.s32.totalorder (!%p292_p9), %s327_s21, 89  ;;  %s4390_s28 = smov (!%p292_p9), 24  }
  0x10   : > { %s4391_s29 = smov (!%p292_p9), 32   ;;  %s6228_s14 = smov (!%p292_p9), 40  }
  0x11   : > { %s6230_s16 = smov (!%p292_p9), 48   ;;  %s4395_s23 = smov (!%p292_p9), 64  }
  0x12   : > { %s6237_s24 = smov (!%p292_p9), 40   ;;  %s6238_s17 = smov (!%p292_p9), 16  }
  0x13   : > { %s6246_s21 = smov (!%p328_p10, %s327_s21), 89  ;;  %vm333_vm0 = vcmask 64512   ;;  %v2208_v17 = vld [vmem:[%s6219_s1 + $0x40] sm:$0xff]  ;;  %v2207_v19 = vld [vmem:[%s6219_s1 + $0x38] sm:$0xff]  ;;  %v2206_v20 = vld [vmem:[%s6219_s1 + $0x30] sm:$0xff]  ;;  %vm608_vm1 = vcmask 130112  }
  0x14   : > { %s4041_s22 = sshll.u32 %s6246_s21, 3  ;;  %4164 = vmatprep.subr.mxu0 %v2208_v17  ;;  %v2205_v24 = vld [vmem:[%s6219_s1 + $0x28] sm:$0xff]  ;;  %v2204_v25 = vld [vmem:[%s6219_s1 + $0x20] sm:$0xff]  ;;  %v2203_v28 = vld [vmem:[%s6219_s1 + $0x18] sm:$0xff]  ;;  %vm825_vm2 = vcmask 195712   ;;  %vm1042_vm3 = vcmask 261312  }
  0x15   : > { %s4504_s25 = scalar_lea.vmem %s6218_s0, %s4041_s22  ;;  %4165 = vmatpush3.msra.mxu0 %v2208_v17  ;;  %s4394_s22 = smov 56   ;;  %v2202_v32 = vld [vmem:[%s6219_s1 + $0x10] sm:$0xff]  ;;  %v2201_v33 = vld [vmem:[%s6219_s1 + $0x8] sm:$0xff]  ;;  %v2200_v36 = vld [vmem:[%s6219_s1] sm:$0xff]  ;;  %vm1259_vm4 = vcmask 326912   ;;  %vm1476_vm5 = vcmask 392512  }
  0x16   : > { %v645_v0 = vld [vmem:[%s4504_s25 + $0x13] sm:$0xff]  ;;  %v646_v2 = vld [vmem:[%s4504_s25 + $0x1b] sm:$0xff]  ;;  %v863_v4 = vld [vmem:[%s4504_s25 + $0x2b] sm:$0xff]  ;;  %4166 = vmatprep.subr.mxu0 %v2207_v19  ;;  %vm1693_vm6 = vcmask 458112   ;;  %vm1910_vm7 = vcmask 523712   ;;  %vm2127_vm8 = vcmask 589312  }
  0x17   : > { %v428_v1 = vld [vmem:[%s4504_s25 + $0x12] sm:$0xff]  ;;  %717 = vrot.lane.b32.xlu1 %v645_v0, %s6232_s26  ;;  %v429_v3 = vld [vmem:[%s4504_s25 + $0x1a] sm:$0xff]  ;;  %v862_v5 = vld [vmem:[%s4504_s25 + $0x23] sm:$0xff]  ;;  %4167 = vmatpush3.msra.mxu0 %v2207_v19  ;;  %vm2216_vm9 = vcmask 588800   ;;  %s6239_s21 = smov 48   ;;  %vm349_vm10 = vcmask 130048  }
  0x18   : > { %500 = vrot.lane.b32.xlu0 %v428_v1, %s4389_s27  ;;  %v430_v6 = vld [vmem:[%s4504_s25 + $0x22] sm:$0xff]  ;;  %v1080_v9 = vld [vmem:[%s4504_s25 + $0x2c] sm:$0xff]  ;;  %v357_v12 = vld [vmem:[%s4504_s25 + $0x19] sm:$0xff]  ;;  %4168 = vmatprep.subr.mxu0 %v2206_v20  ;;  %vm3504_vm11 = vcmask 125952   ;;  %vm3539_vm12 = vcmask 261248   ;;  %vm3558_vm13 = vcmask 392448  }
  0x19   : > { %v1079_v7 = vld [vmem:[%s4504_s25 + $0x24] sm:$0xff]  ;;  %v356_v10 = vld [vmem:[%s4504_s25 + $0x11] sm:$0xff]  ;;  %393 = vst.msk [vmem:[#allocation2 + $0x8] sm:$0xff] %vm333_vm0, %v357_v12  ;;  %4169 = vmatpush3.msra.mxu0 %v2206_v20  ;;  %v865_v27 = vld [vmem:[%s4504_s25 + $0x3b] sm:$0xff]  ;;  %vm3577_vm14 = vcmask 523648   ;;  %vm3596_vm15 = vcmask 654848  }
  0x1a   : > { %v1296_v8 = vld [vmem:[%s4504_s25 + $0x25] sm:$0xff]  ;;  %392 = vst.msk [vmem:[#allocation2] sm:$0xff] %vm333_vm0, %v356_v10  ;;  %v1513_v15 = vld [vmem:[%s4504_s25 + $0x35] sm:$0xff]  ;;  %v1297_v16 = vld [vmem:[%s4504_s25 + $0x2d] sm:$0xff]  ;;  %4170 = vmatprep.subr.mxu0 %v2205_v24 }
  0x1b   : > { %719 = vrot.lane.b32.xlu1 %v646_v2, %s6232_s26  ;;  %v431_v11 = vld [vmem:[%s4504_s25 + $0x2a] sm:$0xff]  ;;  %v358_v13 = vld [vmem:[%s4504_s25 + $0x21] sm:$0xff]  ;;  %v864_v18 = vld [vmem:[%s4504_s25 + $0x33] sm:$0xff]  ;;  %4171 = vmatpush3.msra.mxu0 %v2205_v24 }
  0x1c   : > { %502 = vrot.lane.b32.xlu0 %v429_v3, %s4389_s27  ;;  %394 = vst.msk [vmem:[#allocation2 + $0x10] sm:$0xff] %vm333_vm0, %v358_v13  ;;  %v359_v14 = vld [vmem:[%s4504_s25 + $0x29] sm:$0xff]  ;;  %v1730_v21 = vld [vmem:[%s4504_s25 + $0x36] sm:$0xff]  ;;  %4172 = vmatprep.subr.mxu0 %v2204_v25  ;;  %v1731_v30 = vld [vmem:[%s4504_s25 + $0x3e] sm:$0xff] }
  0x1d   : > { %395 = vst.msk [vmem:[#allocation2 + $0x18] sm:$0xff] %vm333_vm0, %v359_v14  ;;  %v1514_v22 = vld [vmem:[%s4504_s25 + $0x3d] sm:$0xff]  ;;  %v360_v23 = vld [vmem:[%s4504_s25 + $0x31] sm:$0xff]  ;;  %4173 = vmatpush3.msra.mxu0 %v2204_v25  ;;  %v1515_v39 = vld [vmem:[%s4504_s25 + $0x45] sm:$0xff] }
  0x1e   : > { %396 = vst.msk [vmem:[#allocation2 + $0x20] sm:$0xff] %vm333_vm0, %v360_v23  ;;  %v1081_v26 = vld [vmem:[%s4504_s25 + $0x34] sm:$0xff]  ;;  %4174 = vmatprep.subr.mxu0 %v2203_v28  ;;  %v1082_v34 = vld [vmem:[%s4504_s25 + $0x3c] sm:$0xff]  ;;  %v1732_v41 = vld [vmem:[%s4504_s25 + $0x46] sm:$0xff] }
  0x1f   : > { %936 = vrot.lane.b32.xlu1 %v863_v4, %s4390_s28  ;;  %v1947_v29 = vld [vmem:[%s4504_s25 + $0x37] sm:$0xff]  ;;  %4175 = vmatpush3.msra.mxu0 %v2203_v28  ;;  %v1948_v37 = vld [vmem:[%s4504_s25 + $0x3f] sm:$0xff]  ;;  %v1516_v42 = vld [vmem:[%s4504_s25 + $0x4d] sm:$0xff] }
  0x20   : > { %934 = vrot.lane.b32.xlu0 %v862_v5, %s4390_s28  ;;  %v361_v31 = vld [vmem:[%s4504_s25 + $0x39] sm:$0xff]  ;;  %4176 = vmatprep.subr.mxu0 %v2202_v32  ;;  %v866_v40 = vld [vmem:[%s4504_s25 + $0x43] sm:$0xff]  ;;  %v867_v45 = vld [vmem:[%s4504_s25 + $0x4b] sm:$0xff] }
  0x21   : > { %397 = vst.msk [vmem:[#allocation2 + $0x28] sm:$0xff] %vm333_vm0, %v361_v31  ;;  %v432_v35 = vld [vmem:[%s4504_s25 + $0x32] sm:$0xff]  ;;  %4177 = vmatpush3.msra.mxu0 %v2202_v32  ;;  %v433_v38 = vld [vmem:[%s4504_s25 + $0x3a] sm:$0xff]  ;;  %v1083_v44 = vld [vmem:[%s4504_s25 + $0x44] sm:$0xff] }
  0x22   : > { %4178 = vmatprep.subr.mxu0 %v2201_v33  ;;  %v362_v43 = vld [vmem:[%s4504_s25 + $0x41] sm:$0xff]  ;;  %v1733_v47 = vld [vmem:[%s4504_s25 + $0x4e] sm:$0xff]  ;;  %v1734_v55 = vld [vmem:[%s4504_s25 + $0x56] sm:$0xff] }
  0x23   : > { %504 = vrot.lane.b32.xlu1 %v430_v6, %s4389_s27  ;;  %4179 = vmatpush3.msra.mxu0 %v2201_v33  ;;  %398 = vst.msk [vmem:[#allocation2 + $0x30] sm:$0xff] %vm333_vm0, %v362_v43  ;;  %v1949_v46 = vld [vmem:[%s4504_s25 + $0x47] sm:$0xff]  ;;  %v1950_v51 = vld [vmem:[%s4504_s25 + $0x4f] sm:$0xff]  ;;  %v1518_v56 = vld [vmem:[%s4504_s25 + $0x5d] sm:$0xff] }
  0x24   : > { %1151 = vrot.lane.b32.xlu0 %v1079_v7, %s4391_s29  ;;  %4180 = vmatprep.subr.mxu0 %v2200_v36  ;;  %v363_v48 = vld [vmem:[%s4504_s25 + $0x49] sm:$0xff]  ;;  %v1517_v53 = vld [vmem:[%s4504_s25 + $0x55] sm:$0xff]  ;;  %v1735_v61 = vld [vmem:[%s4504_s25 + $0x5e] sm:$0xff] }
  0x25   : > { %4181 = vmatpush3.msra.mxu0 %v2200_v36  ;;  %399 = vst.msk [vmem:[#allocation2 + $0x38] sm:$0xff] %vm333_vm0, %v363_v48  ;;  %v1084_v49 = vld [vmem:[%s4504_s25 + $0x4c] sm:$0xff]  ;;  %v434_v50 = vld [vmem:[%s4504_s25 + $0x42] sm:$0xff]  ;;  %v1085_v58 = vld [vmem:[%s4504_s25 + $0x54] sm:$0xff] }
  0x26   : > { %v435_v52 = vld [vmem:[%s4504_s25 + $0x4a] sm:$0xff]  ;;  %v868_v54 = vld [vmem:[%s4504_s25 + $0x53] sm:$0xff]  ;;  %v869_v59 = vld [vmem:[%s4504_s25 + $0x5b] sm:$0xff] }
  0x27   : > { %1368 = vrot.lane.b32.xlu1 %v1296_v8, %s6228_s14  ;;  %v364_v57 = vld [vmem:[%s4504_s25 + $0x51] sm:$0xff]  ;;  %v365_v62 = vld [vmem:[%s4504_s25 + $0x59] sm:$0xff]  ;;  %v870_v8 = vld [vmem:[%s4504_s25 + $0x63] sm:$0xff] }
  0x28   : > { %1153 = vrot.lane.b32.xlu0 %v1080_v9, %s4391_s29  ;;  %400 = vst.msk [vmem:[#allocation2 + $0x40] sm:$0xff] %vm333_vm0, %v364_v57  ;;  %v1951_v60 = vld [vmem:[%s4504_s25 + $0x57] sm:$0xff]  ;;  %401 = vst.msk [vmem:[#allocation2 + $0x48] sm:$0xff] %vm333_vm0, %v365_v62  ;;  %v1952_v1 = vld [vmem:[%s4504_s25 + $0x5f] sm:$0xff] }
  0x29   : > { %v1086_v63 = vld [vmem:[%s4504_s25 + $0x5c] sm:$0xff]  ;;  %v436_v0 = vld [vmem:[%s4504_s25 + $0x52] sm:$0xff]  ;;  %v1953_v20 = vld [vmem:[%s4504_s25 + $0x67] sm:$0xff] }
  0x2a   : > { %v437_v2 = vld [vmem:[%s4504_s25 + $0x5a] sm:$0xff]  ;;  %v1520_v12 = vld [vmem:[%s4504_s25 + $0x6d] sm:$0xff] }
  0x2b   : > { %721 = vrot.lane.b32.xlu1 %v862_v5, %s6232_s26  ;;  %v1519_v5 = vld [vmem:[%s4504_s25 + $0x65] sm:$0xff]  ;;  %v368_v43 = vld [vmem:[%s4504_s25 + $0x71] sm:$0xff] }
  0x2c   : > { %506 = vrot.lane.b32.xlu0 %v431_v11, %s4389_s27  ;;  %v1736_v11 = vld [vmem:[%s4504_s25 + $0x66] sm:$0xff]  ;;  %404 = vst.msk [vmem:[#allocation2 + $0x60] sm:$0xff] %vm333_vm0, %v368_v43  ;;  %v440_v57 = vld [vmem:[%s4504_s25 + $0x72] sm:$0xff] }
  0x2d   : > { %v366_v13 = vld [vmem:[%s4504_s25 + $0x61] sm:$0xff]  ;;  %v871_v17 = vld [vmem:[%s4504_s25 + $0x6b] sm:$0xff] }
  0x2e   : > { %402 = vst.msk [vmem:[#allocation2 + $0x50] sm:$0xff] %vm333_vm0, %v366_v13  ;;  %v1088_v25 = vld [vmem:[%s4504_s25 + $0x6c] sm:$0xff] }
  0x2f   : > { %1585 = vrot.lane.b32.xlu1 %v1513_v15, %s6230_s16  ;;  %v439_v32 = vld [vmem:[%s4504_s25 + $0x6a] sm:$0xff] }
  0x30   : > { %1370 = vrot.lane.b32.xlu0 %v1297_v16, %s6228_s14  ;;  %v1087_v16 = vld [vmem:[%s4504_s25 + $0x64] sm:$0xff]  ;;  %v372_v43 = vld [vmem:[%s4504_s25 + $0x91] sm:$0xff] }
  0x31   : > { %408 = vst.msk [vmem:[#allocation2 + $0x80] sm:$0xff] %vm333_vm0, %v372_v43  ;;  %v376_v43 = vld [vmem:[%s4504_s25 + $0xb1] sm:$0xff] }
  0x32   : > { %412 = vst.msk [vmem:[#allocation2 + $0xa0] sm:$0xff] %vm333_vm0, %v376_v43  ;;  %v5071_v43 = vld [vmem:[%s4504_s25 + $0xdd] sm:$0xff] }
  0x33   : > { %938 = vrot.lane.b32.xlu1 %v864_v18, %s4390_s28 }
  0x34   : > { %723 = vrot.lane.b32.xlu0 %v863_v4, %s6232_s26 }
  0x37   : > { %1802 = vrot.lane.b32.xlu1 %v1730_v21, %s4394_s22  ;;  %v1737_v21 = vld [vmem:[%s4504_s25 + $0x6e] sm:$0xff] }
  0x38   : > { %1587 = vrot.lane.b32.xlu0 %v1514_v22, %s6230_s16 }
  0x3b   : > { %1155 = vrot.lane.b32.xlu1 %v1081_v26, %s4391_s29  ;;  %v438_v26 = vld [vmem:[%s4504_s25 + $0x62] sm:$0xff] }
  0x3c   : > { %940 = vrot.lane.b32.xlu0 %v865_v27, %s4390_s28 }
  0x3f   : > { %2019 = vrot.lane.b32.xlu1 %v1947_v29, %s4395_s23  ;;  %v1954_v29 = vld [vmem:[%s4504_s25 + $0x6f] sm:$0xff] }
  0x40   : > { %1804 = vrot.lane.b32.xlu0 %v1731_v30, %s4394_s22 }
  0x43   : > { %1157 = vrot.lane.b32.xlu1 %v1082_v34, %s4391_s29 }
  0x44   : > { %508 = vrot.lane.b32.xlu0 %v432_v35, %s4389_s27  ;;  %v1521_v35 = vld [vmem:[%s4504_s25 + $0x75] sm:$0xff] }
  0x47   : > { %2021 = vrot.lane.b32.xlu1 %v1948_v37, %s4395_s23 }
  0x48   : > { %1372 = vrot.lane.b32.xlu0 %v1513_v15, %s6237_s24 }
  0x4b   : > { %725 = vrot.lane.b32.xlu1 %v864_v18, %s6232_s26 }
  0x4c   : > { %510 = vrot.lane.b32.xlu0 %v433_v38, %s4389_s27  ;;  %v872_v38 = vld [vmem:[%s4504_s25 + $0x73] sm:$0xff] }
  0x4f   : > { %1589 = vrot.lane.b32.xlu1 %v1515_v39, %s6230_s16 }
  0x50   : > { %1374 = vrot.lane.b32.xlu0 %v1514_v22, %s6237_s24  ;;  %v367_v22 = vld [vmem:[%s4504_s25 + $0x69] sm:$0xff] }
  0x51   : > { %403 = vst.msk [vmem:[#allocation2 + $0x58] sm:$0xff] %vm333_vm0, %v367_v22 }
  0x53   : > { %942 = vrot.lane.b32.xlu1 %v866_v40, %s4390_s28 }
  0x54   : > { %727 = vrot.lane.b32.xlu0 %v865_v27, %s6232_s26 }
  0x57   : > { %1806 = vrot.lane.b32.xlu1 %v1732_v41, %s4394_s22  ;;  %v1738_v41 = vld [vmem:[%s4504_s25 + $0x76] sm:$0xff] }
  0x58   : > { %1591 = vrot.lane.b32.xlu0 %v1516_v42, %s6230_s16 }
  0x5b   : > { %1159 = vrot.lane.b32.xlu1 %v1083_v44, %s4391_s29 }
  0x5c   : > { %944 = vrot.lane.b32.xlu0 %v867_v45, %s4390_s28 }
  0x5f   : > { %2023 = vrot.lane.b32.xlu1 %v1949_v46, %s4395_s23  ;;  %v1089_v46 = vld [vmem:[%s4504_s25 + $0x74] sm:$0xff] }
  0x60   : > { %1808 = vrot.lane.b32.xlu0 %v1733_v47, %s4394_s22  ;;  %v873_v47 = vld [vmem:[%s4504_s25 + $0x7b] sm:$0xff] }
  0x63   : > { %1161 = vrot.lane.b32.xlu1 %v1084_v49, %s4391_s29 }
  0x64   : > { %512 = vrot.lane.b32.xlu0 %v434_v50, %s4389_s27 }
  0x67   : > { %2025 = vrot.lane.b32.xlu1 %v1950_v51, %s4395_s23  ;;  %v1955_v51 = vld [vmem:[%s4504_s25 + $0x77] sm:$0xff] }
  0x68   : > { %1376 = vrot.lane.b32.xlu0 %v1515_v39, %s6237_s24 }
  0x6b   : > { %729 = vrot.lane.b32.xlu1 %v866_v40, %s6232_s26 }
  0x6c   : > { %514 = vrot.lane.b32.xlu0 %v435_v52, %s4389_s27  ;;  %v1739_v52 = vld [vmem:[%s4504_s25 + $0x7e] sm:$0xff] }
  0x6f   : > { %1593 = vrot.lane.b32.xlu1 %v1517_v53, %s6230_s16 }
  0x70   : > { %1378 = vrot.lane.b32.xlu0 %v1516_v42, %s6237_s24  ;;  %v1522_v42 = vld [vmem:[%s4504_s25 + $0x7d] sm:$0xff] }
  0x73   : > { %946 = vrot.lane.b32.xlu1 %v868_v54, %s4390_s28 }
  0x74   : > { %731 = vrot.lane.b32.xlu0 %v867_v45, %s6232_s26 }
  0x77   : > { %1810 = vrot.lane.b32.xlu1 %v1734_v55, %s4394_s22 }
  0x78   : > { %1595 = vrot.lane.b32.xlu0 %v1518_v56, %s6230_s16 }
  0x7b   : > { %1163 = vrot.lane.b32.xlu1 %v1085_v58, %s4391_s29 }
  0x7c   : > { %948 = vrot.lane.b32.xlu0 %v869_v59, %s4390_s28 }
  0x7f   : > { %2027 = vrot.lane.b32.xlu1 %v1951_v60, %s4395_s23 }
  0x80   : > { %1812 = vrot.lane.b32.xlu0 %v1735_v61, %s4394_s22  ;;  %v1956_v61 = vld [vmem:[%s4504_s25 + $0x7f] sm:$0xff] }
  0x83   : > { %1165 = vrot.lane.b32.xlu1 %v1086_v63, %s4391_s29 }
  0x84   : > { %516 = vrot.lane.b32.xlu0 %v436_v0, %s4389_s27  ;;  %v441_v0 = vld [vmem:[%s4504_s25 + $0x7a] sm:$0xff] }
  0x87   : > { %2029 = vrot.lane.b32.xlu1 %v1952_v1, %s4395_s23 }
  0x88   : > { %1380 = vrot.lane.b32.xlu0 %v1517_v53, %s6237_s24  ;;  %v369_v53 = vld [vmem:[%s4504_s25 + $0x79] sm:$0xff] }
  0x89   : > { %v718_v3 = vpop.permute.xlu1 %717  ;;  %405 = vst.msk [vmem:[#allocation2 + $0x68] sm:$0xff] %vm333_vm0, %v369_v53  ;;  %v373_v53 = vld [vmem:[%s4504_s25 + $0x99] sm:$0xff] }
  0x8a   : > { %v501_v4 = vpop.permute.xlu0 %500  ;;  %409 = vst.msk [vmem:[#allocation2 + $0x88] sm:$0xff] %vm333_vm0, %v373_v53  ;;  %v377_v53 = vld [vmem:[%s4504_s25 + $0xb9] sm:$0xff] }
  0x8b   : > { %609 = vst.msk [vmem:[#allocation2] sm:$0xff] %vm608_vm1, %v501_v4  ;;  %733 = vrot.lane.b32.xlu1 %v868_v54, %s6232_s26 }
  0x8c   : > { %518 = vrot.lane.b32.xlu0 %v437_v2, %s4389_s27  ;;  %826 = vst.msk [vmem:[#allocation2] sm:$0xff] %vm825_vm2, %v718_v3  ;;  %v1523_v3 = vld [vmem:[%s4504_s25 + $0x85] sm:$0xff] }
  0x8d   : > { %v720_v6 = vpop.permute.xlu1 %719  ;;  %413 = vst.msk [vmem:[#allocation2 + $0xa8] sm:$0xff] %vm333_vm0, %v377_v53  ;;  %v1751_v53 = vld [vmem:[%s4504_s25 + $0xde] sm:$0xff] }
  0x8e   : > { %v503_v7 = vpop.permute.xlu0 %502 }
  0x8f   : > { %610 = vst.msk [vmem:[#allocation2 + $0x8] sm:$0xff] %vm608_vm1, %v503_v7  ;;  %1597 = vrot.lane.b32.xlu1 %v1519_v5, %s6230_s16 }
  0x90   : > { %1382 = vrot.lane.b32.xlu0 %v1518_v56, %s6237_s24  ;;  %827 = vst.msk [vmem:[#allocation2 + $0x8] sm:$0xff] %vm825_vm2, %v720_v6  ;;  %v1090_v56 = vld [vmem:[%s4504_s25 + $0x7c] sm:$0xff] }
  0x91   : > { %v937_v9 = vpop.permute.xlu1 %936  ;;  %v874_v6 = vld [vmem:[%s4504_s25 + $0x83] sm:$0xff] }
  0x92   : > { %v935_v10 = vpop.permute.xlu0 %934  ;;  %1044 = vst.msk [vmem:[#allocation2 + $0x8] sm:$0xff] %vm1042_vm3, %v937_v9  ;;  %v1740_v9 = vld [vmem:[%s4504_s25 + $0x86] sm:$0xff] }
  0x93   : > { %1043 = vst.msk [vmem:[#allocation2] sm:$0xff] %vm1042_vm3, %v935_v10  ;;  %950 = vrot.lane.b32.xlu1 %v870_v8, %s4390_s28  ;;  %v1524_v10 = vld [vmem:[%s4504_s25 + $0x8d] sm:$0xff] }
  0x94   : > { %735 = vrot.lane.b32.xlu0 %v869_v59, %s6232_s26 }
  0x95   : > { %v505_v14 = vpop.permute.xlu1 %504 }
  0x96   : > { %v1152_v15 = vpop.permute.xlu0 %1151  ;;  %611 = vst.msk [vmem:[#allocation2 + $0x10] sm:$0xff] %vm608_vm1, %v505_v14  ;;  %v1091_v14 = vld [vmem:[%s4504_s25 + $0x84] sm:$0xff] }
  0x97   : > { %1260 = vst.msk [vmem:[#allocation2] sm:$0xff] %vm1259_vm4, %v1152_v15  ;;  %1814 = vrot.lane.b32.xlu1 %v1736_v11, %s4394_s22  ;;  %v370_v11 = vld [vmem:[%s4504_s25 + $0x81] sm:$0xff]  ;;  %v875_v15 = vld [vmem:[%s4504_s25 + $0x8b] sm:$0xff] }
  0x98   : > { %1599 = vrot.lane.b32.xlu0 %v1520_v12, %s6230_s16  ;;  %406 = vst.msk [vmem:[#allocation2 + $0x70] sm:$0xff] %vm333_vm0, %v370_v11  ;;  %v374_v11 = vld [vmem:[%s4504_s25 + $0xa1] sm:$0xff] }
  0x99   : > { %v1369_v18 = vpop.permute.xlu1 %1368  ;;  %410 = vst.msk [vmem:[#allocation2 + $0x90] sm:$0xff] %vm333_vm0, %v374_v11  ;;  %v378_v11 = vld [vmem:[%s4504_s25 + $0xc1] sm:$0xff] }
  0x9a   : > { %v1154_v19 = vpop.permute.xlu0 %1153  ;;  %1477 = vst.msk [vmem:[#allocation2] sm:$0xff] %vm1476_vm5, %v1369_v18 }
  0x9b   : > { %1261 = vst.msk [vmem:[#allocation2 + $0x8] sm:$0xff] %vm1259_vm4, %v1154_v19  ;;  %1167 = vrot.lane.b32.xlu1 %v1087_v16, %s4391_s29  ;;  %v1957_v19 = vld [vmem:[%s4504_s25 + $0x87] sm:$0xff] }
  0x9c   : > { %952 = vrot.lane.b32.xlu0 %v871_v17, %s4390_s28  ;;  %414 = vst.msk [vmem:[#allocation2 + $0xb0] sm:$0xff] %vm333_vm0, %v378_v11  ;;  %v5127_v11 = vld [vmem:[%s4504_s25 + $0xe5] sm:$0xff] }
  0x9d   : > { %v722_v23 = vpop.permute.xlu1 %721 }
  0x9e   : > { %v507_v24 = vpop.permute.xlu0 %506  ;;  %828 = vst.msk [vmem:[#allocation2 + $0x10] sm:$0xff] %vm825_vm2, %v722_v23 }
  0x9f   : > { %612 = vst.msk [vmem:[#allocation2 + $0x18] sm:$0xff] %vm608_vm1, %v507_v24  ;;  %2031 = vrot.lane.b32.xlu1 %v1953_v20, %s4395_s23  ;;  %v1741_v20 = vld [vmem:[%s4504_s25 + $0x8e] sm:$0xff] }
  0xa0   : > { %1816 = vrot.lane.b32.xlu0 %v1737_v21, %s4394_s22  ;;  %v371_v21 = vld [vmem:[%s4504_s25 + $0x89] sm:$0xff] }
  0xa1   : > { %v1586_v27 = vpop.permute.xlu1 %1585  ;;  %407 = vst.msk [vmem:[#allocation2 + $0x78] sm:$0xff] %vm333_vm0, %v371_v21  ;;  %v1092_v24 = vld [vmem:[%s4504_s25 + $0x8c] sm:$0xff] }
  0xa2   : > { %v1371_v28 = vpop.permute.xlu0 %1370  ;;  %1694 = vst.msk [vmem:[#allocation2] sm:$0xff] %vm1693_vm6, %v1586_v27  ;;  %v375_v21 = vld [vmem:[%s4504_s25 + $0xa9] sm:$0xff] }
  0xa3   : > { %1478 = vst.msk [vmem:[#allocation2 + $0x8] sm:$0xff] %vm1476_vm5, %v1371_v28  ;;  %1169 = vrot.lane.b32.xlu1 %v1088_v25, %s4391_s29  ;;  %v442_v25 = vld [vmem:[%s4504_s25 + $0x82] sm:$0xff] }
  0xa4   : > { %520 = vrot.lane.b32.xlu0 %v438_v26, %s4389_s27  ;;  %411 = vst.msk [vmem:[#allocation2 + $0x98] sm:$0xff] %vm333_vm0, %v375_v21  ;;  %v379_v21 = vld [vmem:[%s4504_s25 + $0xc9] sm:$0xff] }
  0xa5   : > { %v939_v30 = vpop.permute.xlu1 %938  ;;  %415 = vst.msk [vmem:[#allocation2 + $0xb8] sm:$0xff] %vm333_vm0, %v379_v21  ;;  %v5147_v21 = vld [vmem:[%s4504_s25 + $0xed] sm:$0xff] }
  0xa6   : > { %v724_v31 = vpop.permute.xlu0 %723  ;;  %1045 = vst.msk [vmem:[#allocation2 + $0x10] sm:$0xff] %vm1042_vm3, %v939_v30 }
  0xa7   : > { %829 = vst.msk [vmem:[#allocation2 + $0x18] sm:$0xff] %vm825_vm2, %v724_v31  ;;  %2033 = vrot.lane.b32.xlu1 %v1954_v29, %s4395_s23  ;;  %v1958_v29 = vld [vmem:[%s4504_s25 + $0x8f] sm:$0xff] }
  0xa8   : > { %1384 = vrot.lane.b32.xlu0 %v1519_v5, %s6237_s24 }
  0xa9   : > { %v1803_v33 = vpop.permute.xlu1 %1802 }
  0xaa   : > { %v1588_v34 = vpop.permute.xlu0 %1587  ;;  %1911 = vst.msk [vmem:[#allocation2] sm:$0xff] %vm1910_vm7, %v1803_v33 }
  0xab   : > { %1695 = vst.msk [vmem:[#allocation2 + $0x8] sm:$0xff] %vm1693_vm6, %v1588_v34  ;;  %737 = vrot.lane.b32.xlu1 %v870_v8, %s6232_s26 }
  0xac   : > { %522 = vrot.lane.b32.xlu0 %v439_v32, %s4389_s27  ;;  %v443_v32 = vld [vmem:[%s4504_s25 + $0x8a] sm:$0xff] }
  0xad   : > { %v1156_v36 = vpop.permute.xlu1 %1155 }
  0xae   : > { %v941_v37 = vpop.permute.xlu0 %940  ;;  %1262 = vst.msk [vmem:[#allocation2 + $0x10] sm:$0xff] %vm1259_vm4, %v1156_v36 }
  0xaf   : > { %1046 = vst.msk [vmem:[#allocation2 + $0x18] sm:$0xff] %vm1042_vm3, %v941_v37  ;;  %1601 = vrot.lane.b32.xlu1 %v1521_v35, %s6230_s16 }
  0xb0   : > { %1386 = vrot.lane.b32.xlu0 %v1520_v12, %s6237_s24 }
  0xb1   : > { %v2020_v39 = vpop.permute.xlu1 %2019 }
  0xb2   : > { %v1805_v40 = vpop.permute.xlu0 %1804  ;;  %2128 = vst.msk [vmem:[#allocation2] sm:$0xff] %vm2127_vm8, %v2020_v39 }
  0xb3   : > { %1912 = vst.msk [vmem:[#allocation2 + $0x8] sm:$0xff] %vm1910_vm7, %v1805_v40  ;;  %954 = vrot.lane.b32.xlu1 %v872_v38, %s4390_s28 }
  0xb4   : > { %739 = vrot.lane.b32.xlu0 %v871_v17, %s6232_s26 }
  0xb5   : > { %v1158_v44 = vpop.permute.xlu1 %1157 }
  0xb6   : > { %v509_v45 = vpop.permute.xlu0 %508  ;;  %1263 = vst.msk [vmem:[#allocation2 + $0x18] sm:$0xff] %vm1259_vm4, %v1158_v44 }
  0xb7   : > { %613 = vst.msk [vmem:[#allocation2 + $0x20] sm:$0xff] %vm608_vm1, %v509_v45  ;;  %1818 = vrot.lane.b32.xlu1 %v1738_v41, %s4394_s22  ;;  %v1742_v41 = vld [vmem:[%s4504_s25 + $0x96] sm:$0xff] }
  0xb8   : > { %1603 = vrot.lane.b32.xlu0 %v1522_v42, %s6230_s16 }
  0xb9   : > { %v2022_v48 = vpop.permute.xlu1 %2021  ;;  %v2164_v50 = vld [vmem:[#allocation2] sm:$0xff] }
  0xba   : > { %v1373_v49 = vpop.permute.xlu0 %1372  ;;  %2129 = vst.msk [vmem:[#allocation2 + $0x8] sm:$0xff] %vm2127_vm8, %v2022_v48  ;;  %4182 = vmatprep.mubr.msk.f32.mxu0 %vm2216_vm9, %v2164_v50 }
  0xbb   : > { %1479 = vst.msk [vmem:[#allocation2 + $0x10] sm:$0xff] %vm1476_vm5, %v1373_v49  ;;  %1171 = vrot.lane.b32.xlu1 %v1089_v46, %s4391_s29  ;;  %v1093_v46 = vld [vmem:[%s4504_s25 + $0x94] sm:$0xff] }
  0xbc   : > { %956 = vrot.lane.b32.xlu0 %v873_v47, %s4390_s28 }
  0xbd   : > { %v726_v54 = vpop.permute.xlu1 %725 }
  0xbe   : > { %v511_v55 = vpop.permute.xlu0 %510  ;;  %830 = vst.msk [vmem:[#allocation2 + $0x20] sm:$0xff] %vm825_vm2, %v726_v54 }
  0xbf   : > { %614 = vst.msk [vmem:[#allocation2 + $0x28] sm:$0xff] %vm608_vm1, %v511_v55  ;;  %2035 = vrot.lane.b32.xlu1 %v1955_v51, %s4395_s23  ;;  %v1959_v51 = vld [vmem:[%s4504_s25 + $0x97] sm:$0xff] }
  0xc0   : > { %1820 = vrot.lane.b32.xlu0 %v1739_v52, %s4394_s22  ;;  %v1743_v52 = vld [vmem:[%s4504_s25 + $0x9e] sm:$0xff] }
  0xc1   : > { %v1590_v58 = vpop.permute.xlu1 %1589  ;;  %v2165_v60 = vld [vmem:[#allocation2 + $0x8] sm:$0xff] }
  0xc2   : > { %v1375_v59 = vpop.permute.xlu0 %1374  ;;  %1696 = vst.msk [vmem:[#allocation2 + $0x10] sm:$0xff] %vm1693_vm6, %v1590_v58  ;;  %4183 = vmatmul.mubr.msk.f32.vlgmr.msra.gmra.mxu0 %vm2216_vm9, %v2165_v60 }
  0xc3   : > { %1480 = vst.msk [vmem:[#allocation2 + $0x18] sm:$0xff] %vm1476_vm5, %v1375_v59  ;;  %1173 = vrot.lane.b32.xlu1 %v1090_v56, %s4391_s29  ;;  %v1094_v56 = vld [vmem:[%s4504_s25 + $0x9c] sm:$0xff] }
  0xc4   : > { %524 = vrot.lane.b32.xlu0 %v440_v57, %s4389_s27  ;;  %v444_v57 = vld [vmem:[%s4504_s25 + $0x92] sm:$0xff] }
  0xc5   : > { %v943_v62 = vpop.permute.xlu1 %942 }
  0xc6   : > { %v728_v63 = vpop.permute.xlu0 %727  ;;  %1047 = vst.msk [vmem:[#allocation2 + $0x20] sm:$0xff] %vm1042_vm3, %v943_v62 }
  0xc7   : > { %831 = vst.msk [vmem:[#allocation2 + $0x28] sm:$0xff] %vm825_vm2, %v728_v63  ;;  %2037 = vrot.lane.b32.xlu1 %v1956_v61, %s4395_s23  ;;  %v1960_v61 = vld [vmem:[%s4504_s25 + $0x9f] sm:$0xff] }
  0xc8   : > { %1388 = vrot.lane.b32.xlu0 %v1521_v35, %s6237_s24  ;;  %v1525_v35 = vld [vmem:[%s4504_s25 + $0x95] sm:$0xff] }
  0xc9   : > { %v1807_v1 = vpop.permute.xlu1 %1806 }
  0xca   : > { %v1592_v2 = vpop.permute.xlu0 %1591  ;;  %1913 = vst.msk [vmem:[#allocation2 + $0x10] sm:$0xff] %vm1910_vm7, %v1807_v1 }
  0xcb   : > { %1697 = vst.msk [vmem:[#allocation2 + $0x18] sm:$0xff] %vm1693_vm6, %v1592_v2  ;;  %741 = vrot.lane.b32.xlu1 %v872_v38, %s6232_s26  ;;  %v876_v38 = vld [vmem:[%s4504_s25 + $0x93] sm:$0xff] }
  0xcc   : > { %526 = vrot.lane.b32.xlu0 %v441_v0, %s4389_s27  ;;  %v445_v0 = vld [vmem:[%s4504_s25 + $0x9a] sm:$0xff] }
  0xcd   : > { %v1160_v4 = vpop.permute.xlu1 %1159 }
  0xce   : > { %v945_v5 = vpop.permute.xlu0 %944  ;;  %1264 = vst.msk [vmem:[#allocation2 + $0x20] sm:$0xff] %vm1259_vm4, %v1160_v4 }
  0xcf   : > { %1048 = vst.msk [vmem:[#allocation2 + $0x28] sm:$0xff] %vm1042_vm3, %v945_v5  ;;  %1605 = vrot.lane.b32.xlu1 %v1523_v3, %s6230_s16 }
  0xd0   : > { %1390 = vrot.lane.b32.xlu0 %v1522_v42, %s6237_s24  ;;  %v1526_v42 = vld [vmem:[%s4504_s25 + $0x9d] sm:$0xff] }
  0xd1   : > { %v2024_v7 = vpop.permute.xlu1 %2023 }
  0xd2   : > { %v1809_v8 = vpop.permute.xlu0 %1808  ;;  %2130 = vst.msk [vmem:[#allocation2 + $0x10] sm:$0xff] %vm2127_vm8, %v2024_v7 }
  0xd3   : > { %1914 = vst.msk [vmem:[#allocation2 + $0x18] sm:$0xff] %vm1910_vm7, %v1809_v8  ;;  %958 = vrot.lane.b32.xlu1 %v874_v6, %s4390_s28 }
  0xd4   : > { %743 = vrot.lane.b32.xlu0 %v873_v47, %s6232_s26  ;;  %v877_v47 = vld [vmem:[%s4504_s25 + $0x9b] sm:$0xff] }
  0xd5   : > { %v1162_v12 = vpop.permute.xlu1 %1161 }
  0xd6   : > { %v513_v13 = vpop.permute.xlu0 %512  ;;  %1265 = vst.msk [vmem:[#allocation2 + $0x28] sm:$0xff] %vm1259_vm4, %v1162_v12 }
  0xd7   : > { %615 = vst.msk [vmem:[#allocation2 + $0x30] sm:$0xff] %vm608_vm1, %v513_v13  ;;  %1822 = vrot.lane.b32.xlu1 %v1740_v9, %s4394_s22  ;;  %v1744_v9 = vld [vmem:[%s4504_s25 + $0xa6] sm:$0xff] }
  0xd8   : > { %1607 = vrot.lane.b32.xlu0 %v1524_v10, %s6230_s16 }
  0xd9   : > { %v2026_v16 = vpop.permute.xlu1 %2025  ;;  %v2166_v18 = vld [vmem:[#allocation2 + $0x10] sm:$0xff] }
  0xda   : > { %v1377_v17 = vpop.permute.xlu0 %1376  ;;  %2131 = vst.msk [vmem:[#allocation2 + $0x18] sm:$0xff] %vm2127_vm8, %v2026_v16  ;;  %4185 = vmatprep.mubr.msk.f32.mxu0 %vm2216_vm9, %v2166_v18 }
  0xdb   : > { %1481 = vst.msk [vmem:[#allocation2 + $0x20] sm:$0xff] %vm1476_vm5, %v1377_v17  ;;  %1175 = vrot.lane.b32.xlu1 %v1091_v14, %s4391_s29  ;;  %v1095_v14 = vld [vmem:[%s4504_s25 + $0xa4] sm:$0xff] }
  0xdc   : > { %960 = vrot.lane.b32.xlu0 %v875_v15, %s4390_s28 }
  0xdd   : > { %v730_v22 = vpop.permute.xlu1 %729 }
  0xde   : > { %v515_v23 = vpop.permute.xlu0 %514  ;;  %832 = vst.msk [vmem:[#allocation2 + $0x30] sm:$0xff] %vm825_vm2, %v730_v22 }
  0xdf   : > { %616 = vst.msk [vmem:[#allocation2 + $0x38] sm:$0xff] %vm608_vm1, %v515_v23  ;;  %2039 = vrot.lane.b32.xlu1 %v1957_v19, %s4395_s23  ;;  %v1961_v19 = vld [vmem:[%s4504_s25 + $0xa7] sm:$0xff] }
  0xe0   : > { %1824 = vrot.lane.b32.xlu0 %v1741_v20, %s4394_s22  ;;  %v1745_v20 = vld [vmem:[%s4504_s25 + $0xae] sm:$0xff] }
  0xe1   : > { %v1594_v26 = vpop.permute.xlu1 %1593  ;;  %v2167_v28 = vld [vmem:[#allocation2 + $0x18] sm:$0xff] }
  0xe2   : > { %v1379_v27 = vpop.permute.xlu0 %1378  ;;  %1698 = vst.msk [vmem:[#allocation2 + $0x20] sm:$0xff] %vm1693_vm6, %v1594_v26  ;;  %4186 = vmatmul.mubr.msk.f32.gmra.mxu0 %vm2216_vm9, %v2167_v28 }
  0xe3   : > { %1482 = vst.msk [vmem:[#allocation2 + $0x28] sm:$0xff] %vm1476_vm5, %v1379_v27  ;;  %1177 = vrot.lane.b32.xlu1 %v1092_v24, %s4391_s29  ;;  %v1096_v24 = vld [vmem:[%s4504_s25 + $0xac] sm:$0xff] }
  0xe4   : > { %528 = vrot.lane.b32.xlu0 %v442_v25, %s4389_s27  ;;  %v446_v25 = vld [vmem:[%s4504_s25 + $0xa2] sm:$0xff] }
  0xe5   : > { %v947_v30 = vpop.permute.xlu1 %946 }
  0xe6   : > { %v732_v31 = vpop.permute.xlu0 %731  ;;  %1049 = vst.msk [vmem:[#allocation2 + $0x30] sm:$0xff] %vm1042_vm3, %v947_v30 }
  0xe7   : > { %833 = vst.msk [vmem:[#allocation2 + $0x38] sm:$0xff] %vm825_vm2, %v732_v31  ;;  %2041 = vrot.lane.b32.xlu1 %v1958_v29, %s4395_s23  ;;  %v1962_v29 = vld [vmem:[%s4504_s25 + $0xaf] sm:$0xff] }
  0xe8   : > { %1392 = vrot.lane.b32.xlu0 %v1523_v3, %s6237_s24  ;;  %v1527_v3 = vld [vmem:[%s4504_s25 + $0xa5] sm:$0xff] }
  0xe9   : > { %v1811_v33 = vpop.permute.xlu1 %1810 }
  0xea   : > { %v1596_v34 = vpop.permute.xlu0 %1595  ;;  %1915 = vst.msk [vmem:[#allocation2 + $0x20] sm:$0xff] %vm1910_vm7, %v1811_v33 }
  0xeb   : > { %1699 = vst.msk [vmem:[#allocation2 + $0x28] sm:$0xff] %vm1693_vm6, %v1596_v34  ;;  %745 = vrot.lane.b32.xlu1 %v874_v6, %s6232_s26  ;;  %v878_v6 = vld [vmem:[%s4504_s25 + $0xa3] sm:$0xff] }
  0xec   : > { %530 = vrot.lane.b32.xlu0 %v443_v32, %s4389_s27  ;;  %v447_v32 = vld [vmem:[%s4504_s25 + $0xaa] sm:$0xff] }
  0xed   : > { %v1164_v36 = vpop.permute.xlu1 %1163 }
  0xee   : > { %v949_v37 = vpop.permute.xlu0 %948  ;;  %1266 = vst.msk [vmem:[#allocation2 + $0x30] sm:$0xff] %vm1259_vm4, %v1164_v36 }
  0xef   : > { %1050 = vst.msk [vmem:[#allocation2 + $0x38] sm:$0xff] %vm1042_vm3, %v949_v37  ;;  %1609 = vrot.lane.b32.xlu1 %v1525_v35, %s6230_s16 }
  0xf0   : > { %1394 = vrot.lane.b32.xlu0 %v1524_v10, %s6237_s24  ;;  %v1528_v10 = vld [vmem:[%s4504_s25 + $0xad] sm:$0xff] }
  0xf1   : > { %v2028_v39 = vpop.permute.xlu1 %2027 }
  0xf2   : > { %v1813_v40 = vpop.permute.xlu0 %1812  ;;  %2132 = vst.msk [vmem:[#allocation2 + $0x20] sm:$0xff] %vm2127_vm8, %v2028_v39 }
  0xf3   : > { %1916 = vst.msk [vmem:[#allocation2 + $0x28] sm:$0xff] %vm1910_vm7, %v1813_v40  ;;  %962 = vrot.lane.b32.xlu1 %v876_v38, %s4390_s28 }
  0xf4   : > { %747 = vrot.lane.b32.xlu0 %v875_v15, %s6232_s26  ;;  %v879_v15 = vld [vmem:[%s4504_s25 + $0xab] sm:$0xff] }
  0xf5   : > { %v1166_v44 = vpop.permute.xlu1 %1165 }
  0xf6   : > { %v517_v45 = vpop.permute.xlu0 %516  ;;  %1267 = vst.msk [vmem:[#allocation2 + $0x38] sm:$0xff] %vm1259_vm4, %v1166_v44 }
  0xf7   : > { %617 = vst.msk [vmem:[#allocation2 + $0x40] sm:$0xff] %vm608_vm1, %v517_v45  ;;  %1826 = vrot.lane.b32.xlu1 %v1742_v41, %s4394_s22  ;;  %v1746_v41 = vld [vmem:[%s4504_s25 + $0xb6] sm:$0xff] }
  0xf8   : > { %1611 = vrot.lane.b32.xlu0 %v1526_v42, %s6230_s16 }
  0xf9   : > { %v2030_v48 = vpop.permute.xlu1 %2029  ;;  %v2168_v50 = vld [vmem:[#allocation2 + $0x20] sm:$0xff] }
  0xfa   : > { %v1381_v49 = vpop.permute.xlu0 %1380  ;;  %2133 = vst.msk [vmem:[#allocation2 + $0x28] sm:$0xff] %vm2127_vm8, %v2030_v48  ;;  %4188 = vmatprep.mubr.msk.f32.mxu0 %vm2216_vm9, %v2168_v50 }
  0xfb   : > { %1483 = vst.msk [vmem:[#allocation2 + $0x30] sm:$0xff] %vm1476_vm5, %v1381_v49  ;;  %1179 = vrot.lane.b32.xlu1 %v1093_v46, %s4391_s29  ;;  %v1097_v46 = vld [vmem:[%s4504_s25 + $0xb4] sm:$0xff] }
  0xfc   : > { %964 = vrot.lane.b32.xlu0 %v877_v47, %s4390_s28 }
  0xfd   : > { %v734_v54 = vpop.permute.xlu1 %733 }
  0xfe   : > { %v519_v55 = vpop.permute.xlu0 %518  ;;  %834 = vst.msk [vmem:[#allocation2 + $0x40] sm:$0xff] %vm825_vm2, %v734_v54 }
  0xff   : > { %618 = vst.msk [vmem:[#allocation2 + $0x48] sm:$0xff] %vm608_vm1, %v519_v55  ;;  %2043 = vrot.lane.b32.xlu1 %v1959_v51, %s4395_s23  ;;  %v1963_v51 = vld [vmem:[%s4504_s25 + $0xb7] sm:$0xff] }
 0x100   : > { %1828 = vrot.lane.b32.xlu0 %v1743_v52, %s4394_s22  ;;  %v1747_v52 = vld [vmem:[%s4504_s25 + $0xbe] sm:$0xff] }
 0x101   : > { %v1598_v58 = vpop.permute.xlu1 %1597  ;;  %v2169_v60 = vld [vmem:[#allocation2 + $0x28] sm:$0xff] }
 0x102   : > { %v1383_v59 = vpop.permute.xlu0 %1382  ;;  %1700 = vst.msk [vmem:[#allocation2 + $0x30] sm:$0xff] %vm1693_vm6, %v1598_v58  ;;  %4189 = vmatmul.mubr.msk.f32.gmra.mxu0 %vm2216_vm9, %v2169_v60 }
 0x103   : > { %1484 = vst.msk [vmem:[#allocation2 + $0x38] sm:$0xff] %vm1476_vm5, %v1383_v59  ;;  %1181 = vrot.lane.b32.xlu1 %v1094_v56, %s4391_s29  ;;  %v1098_v56 = vld [vmem:[%s4504_s25 + $0xbc] sm:$0xff] }
 0x104   : > { %532 = vrot.lane.b32.xlu0 %v444_v57, %s4389_s27  ;;  %v448_v57 = vld [vmem:[%s4504_s25 + $0xb2] sm:$0xff] }
 0x105   : > { %v951_v62 = vpop.permute.xlu1 %950 }
 0x106   : > { %v736_v63 = vpop.permute.xlu0 %735  ;;  %1051 = vst.msk [vmem:[#allocation2 + $0x40] sm:$0xff] %vm1042_vm3, %v951_v62 }
 0x107   : > { %835 = vst.msk [vmem:[#allocation2 + $0x48] sm:$0xff] %vm825_vm2, %v736_v63  ;;  %2045 = vrot.lane.b32.xlu1 %v1960_v61, %s4395_s23  ;;  %v1964_v61 = vld [vmem:[%s4504_s25 + $0xbf] sm:$0xff] }
 0x108   : > { %1396 = vrot.lane.b32.xlu0 %v1525_v35, %s6237_s24  ;;  %v1529_v35 = vld [vmem:[%s4504_s25 + $0xb5] sm:$0xff] }
 0x109   : > { %v1815_v1 = vpop.permute.xlu1 %1814 }
 0x10a   : > { %v1600_v2 = vpop.permute.xlu0 %1599  ;;  %1917 = vst.msk [vmem:[#allocation2 + $0x30] sm:$0xff] %vm1910_vm7, %v1815_v1 }
 0x10b   : > { %1701 = vst.msk [vmem:[#allocation2 + $0x38] sm:$0xff] %vm1693_vm6, %v1600_v2  ;;  %749 = vrot.lane.b32.xlu1 %v876_v38, %s6232_s26  ;;  %v880_v38 = vld [vmem:[%s4504_s25 + $0xb3] sm:$0xff] }
 0x10c   : > { %534 = vrot.lane.b32.xlu0 %v445_v0, %s4389_s27  ;;  %v449_v0 = vld [vmem:[%s4504_s25 + $0xba] sm:$0xff] }
 0x10d   : > { %v1168_v4 = vpop.permute.xlu1 %1167 }
 0x10e   : > { %v953_v5 = vpop.permute.xlu0 %952  ;;  %1268 = vst.msk [vmem:[#allocation2 + $0x40] sm:$0xff] %vm1259_vm4, %v1168_v4 }
 0x10f   : > { %1052 = vst.msk [vmem:[#allocation2 + $0x48] sm:$0xff] %vm1042_vm3, %v953_v5  ;;  %1613 = vrot.lane.b32.xlu1 %v1527_v3, %s6230_s16 }
 0x110   : > { %1398 = vrot.lane.b32.xlu0 %v1526_v42, %s6237_s24  ;;  %v1530_v42 = vld [vmem:[%s4504_s25 + $0xbd] sm:$0xff] }
 0x111   : > { %v2032_v7 = vpop.permute.xlu1 %2031 }
 0x112   : > { %v1817_v8 = vpop.permute.xlu0 %1816  ;;  %2134 = vst.msk [vmem:[#allocation2 + $0x30] sm:$0xff] %vm2127_vm8, %v2032_v7 }
 0x113   : > { %1918 = vst.msk [vmem:[#allocation2 + $0x38] sm:$0xff] %vm1910_vm7, %v1817_v8  ;;  %966 = vrot.lane.b32.xlu1 %v878_v6, %s4390_s28 }
 0x114   : > { %751 = vrot.lane.b32.xlu0 %v877_v47, %s6232_s26  ;;  %v881_v47 = vld [vmem:[%s4504_s25 + $0xbb] sm:$0xff] }
 0x115   : > { %v1170_v12 = vpop.permute.xlu1 %1169 }
 0x116   : > { %v521_v13 = vpop.permute.xlu0 %520  ;;  %1269 = vst.msk [vmem:[#allocation2 + $0x48] sm:$0xff] %vm1259_vm4, %v1170_v12 }
 0x117   : > { %619 = vst.msk [vmem:[#allocation2 + $0x50] sm:$0xff] %vm608_vm1, %v521_v13  ;;  %1830 = vrot.lane.b32.xlu1 %v1744_v9, %s4394_s22  ;;  %v1748_v9 = vld [vmem:[%s4504_s25 + $0xc6] sm:$0xff] }
 0x118   : > { %1615 = vrot.lane.b32.xlu0 %v1528_v10, %s6230_s16 }
 0x119   : > { %v2034_v16 = vpop.permute.xlu1 %2033  ;;  %v2170_v18 = vld [vmem:[#allocation2 + $0x30] sm:$0xff] }
 0x11a   : > { %v1385_v17 = vpop.permute.xlu0 %1384  ;;  %2135 = vst.msk [vmem:[#allocation2 + $0x38] sm:$0xff] %vm2127_vm8, %v2034_v16  ;;  %4191 = vmatprep.mubr.msk.f32.mxu0 %vm2216_vm9, %v2170_v18 }
 0x11b   : > { %1485 = vst.msk [vmem:[#allocation2 + $0x40] sm:$0xff] %vm1476_vm5, %v1385_v17  ;;  %1183 = vrot.lane.b32.xlu1 %v1095_v14, %s4391_s29  ;;  %v1099_v14 = vld [vmem:[%s4504_s25 + $0xc4] sm:$0xff] }
 0x11c   : > { %968 = vrot.lane.b32.xlu0 %v879_v15, %s4390_s28 }
 0x11d   : > { %v738_v22 = vpop.permute.xlu1 %737 }
 0x11e   : > { %v523_v23 = vpop.permute.xlu0 %522  ;;  %836 = vst.msk [vmem:[#allocation2 + $0x50] sm:$0xff] %vm825_vm2, %v738_v22  ;;  %v4396_v22 = vmov 0.0  }
 0x11f   : > { %620 = vst.msk [vmem:[#allocation2 + $0x58] sm:$0xff] %vm608_vm1, %v523_v23  ;;  %2047 = vrot.lane.b32.xlu1 %v1961_v19, %s4395_s23  ;;  %v1965_v19 = vld [vmem:[%s4504_s25 + $0xc7] sm:$0xff] }
 0x120   : > { %1832 = vrot.lane.b32.xlu0 %v1745_v20, %s4394_s22  ;;  %v1749_v20 = vld [vmem:[%s4504_s25 + $0xce] sm:$0xff]  ;;  %335 = vst.msk [vmem:[#allocation5 + $0x8] sm:$0xff] %vm333_vm0, %v4396_v22  ;;  %336 = vst.msk [vmem:[#allocation5 + $0x10] sm:$0xff] %vm333_vm0, %v4396_v22 }
 0x121   : > { %v1602_v26 = vpop.permute.xlu1 %1601  ;;  %v2171_v28 = vld [vmem:[#allocation2 + $0x38] sm:$0xff]  ;;  %337 = vst.msk [vmem:[#allocation5 + $0x18] sm:$0xff] %vm333_vm0, %v4396_v22  ;;  %338 = vst.msk [vmem:[#allocation5 + $0x20] sm:$0xff] %vm333_vm0, %v4396_v22 }
 0x122   : > { %v1387_v27 = vpop.permute.xlu0 %1386  ;;  %1702 = vst.msk [vmem:[#allocation2 + $0x40] sm:$0xff] %vm1693_vm6, %v1602_v26  ;;  %4192 = vmatmul.mubr.msk.f32.gmra.mxu0 %vm2216_vm9, %v2171_v28  ;;  %v450_v26 = vld [vmem:[%s4504_s25 + $0xc2] sm:$0xff] }
 0x123   : > { %1486 = vst.msk [vmem:[#allocation2 + $0x48] sm:$0xff] %vm1476_vm5, %v1387_v27  ;;  %1185 = vrot.lane.b32.xlu1 %v1096_v24, %s4391_s29 }
 0x124   : > { %536 = vrot.lane.b32.xlu0 %v446_v25, %s4389_s27  ;;  %339 = vst.msk [vmem:[#allocation5 + $0x28] sm:$0xff] %vm333_vm0, %v4396_v22  ;;  %340 = vst.msk [vmem:[#allocation5 + $0x30] sm:$0xff] %vm333_vm0, %v4396_v22  ;;  %v1100_v25 = vld [vmem:[%s4504_s25 + $0xcc] sm:$0xff] }
 0x125   : > { %v955_v30 = vpop.permute.xlu1 %954  ;;  %341 = vst.msk [vmem:[#allocation5 + $0x38] sm:$0xff] %vm333_vm0, %v4396_v22  ;;  %342 = vst.msk [vmem:[#allocation5 + $0x40] sm:$0xff] %vm333_vm0, %v4396_v22 }
 0x126   : > { %v740_v31 = vpop.permute.xlu0 %739  ;;  %1053 = vst.msk [vmem:[#allocation2 + $0x50] sm:$0xff] %vm1042_vm3, %v955_v30  ;;  %v1966_v30 = vld [vmem:[%s4504_s25 + $0xcf] sm:$0xff] }
 0x127   : > { %837 = vst.msk [vmem:[#allocation2 + $0x58] sm:$0xff] %vm825_vm2, %v740_v31  ;;  %2049 = vrot.lane.b32.xlu1 %v1962_v29, %s4395_s23 }
 0x128   : > { %1400 = vrot.lane.b32.xlu0 %v1527_v3, %s6237_s24  ;;  %v4962_v3 = vld [vmem:[%s4504_s25 + $0xc5] sm:$0xff]  ;;  %343 = vst.msk [vmem:[#allocation5 + $0x48] sm:$0xff] %vm333_vm0, %v4396_v22  ;;  %344 = vst.msk [vmem:[#allocation5 + $0x50] sm:$0xff] %vm333_vm0, %v4396_v22 }
 0x129   : > { %v1819_v33 = vpop.permute.xlu1 %1818  ;;  %345 = vst.msk [vmem:[#allocation5 + $0x58] sm:$0xff] %vm333_vm0, %v4396_v22  ;;  %346 = vst.msk [vmem:[#allocation5 + $0x60] sm:$0xff] %vm333_vm0, %v4396_v22 }
 0x12a   : > { %v1604_v34 = vpop.permute.xlu0 %1603  ;;  %1919 = vst.msk [vmem:[#allocation2 + $0x40] sm:$0xff] %vm1910_vm7, %v1819_v33  ;;  %v451_v33 = vld [vmem:[%s4504_s25 + $0xca] sm:$0xff] }
 0x12b   : > { %1703 = vst.msk [vmem:[#allocation2 + $0x48] sm:$0xff] %vm1693_vm6, %v1604_v34  ;;  %753 = vrot.lane.b32.xlu1 %v878_v6, %s6232_s26  ;;  %v4970_v6 = vld [vmem:[%s4504_s25 + $0xc3] sm:$0xff] }
 0x12c   : > { %538 = vrot.lane.b32.xlu0 %v447_v32, %s4389_s27  ;;  %347 = vst.msk [vmem:[#allocation5 + $0x68] sm:$0xff] %vm333_vm0, %v4396_v22 }
 0x12d   : > { %v1172_v36 = vpop.permute.xlu1 %1171  ;;  %350 = vst.msk [vmem:[#allocation9] sm:$0xff] %vm349_vm10, %v4396_v22  ;;  %351 = vst.msk [vmem:[#allocation9 + $0x8] sm:$0xff] %vm349_vm10, %v4396_v22 }
 0x12e   : > { %v957_v37 = vpop.permute.xlu0 %956  ;;  %1270 = vst.msk [vmem:[#allocation2 + $0x50] sm:$0xff] %vm1259_vm4, %v1172_v36  ;;  %v5052_v36 = vld [vmem:[%s4504_s25 + $0xd5] sm:$0xff] }
 0x12f   : > { %1054 = vst.msk [vmem:[#allocation2 + $0x58] sm:$0xff] %vm1042_vm3, %v957_v37  ;;  %1617 = vrot.lane.b32.xlu1 %v1529_v35, %s6230_s16 }
 0x130   : > { %1402 = vrot.lane.b32.xlu0 %v1528_v10, %s6237_s24  ;;  %v4979_v10 = vld [vmem:[%s4504_s25 + $0xcd] sm:$0xff]  ;;  %352 = vst.msk [vmem:[#allocation9 + $0x10] sm:$0xff] %vm349_vm10, %v4396_v22  ;;  %353 = vst.msk [vmem:[#allocation9 + $0x18] sm:$0xff] %vm349_vm10, %v4396_v22 }
 0x131   : > { %v2036_v39 = vpop.permute.xlu1 %2035  ;;  %354 = vst.msk [vmem:[#allocation9 + $0x20] sm:$0xff] %vm349_vm10, %v4396_v22  ;;  %355 = vst.msk [vmem:[#allocation9 + $0x28] sm:$0xff] %vm349_vm10, %v4396_v22 }
 0x132   : > { %v1821_v40 = vpop.permute.xlu0 %1820  ;;  %2136 = vst.msk [vmem:[#allocation2 + $0x40] sm:$0xff] %vm2127_vm8, %v2036_v39  ;;  %v5061_v39 = vld [vmem:[%s4504_s25 + $0xd3] sm:$0xff] }
 0x133   : > { %1920 = vst.msk [vmem:[#allocation2 + $0x48] sm:$0xff] %vm1910_vm7, %v1821_v40  ;;  %970 = vrot.lane.b32.xlu1 %v880_v38, %s4390_s28 }
 0x134   : > { %755 = vrot.lane.b32.xlu0 %v879_v15, %s6232_s26  ;;  %v4990_v15 = vld [vmem:[%s4504_s25 + $0xcb] sm:$0xff] }
 0x135   : > { %v1174_v44 = vpop.permute.xlu1 %1173 }
 0x136   : > { %v525_v45 = vpop.permute.xlu0 %524  ;;  %1271 = vst.msk [vmem:[#allocation2 + $0x58] sm:$0xff] %vm1259_vm4, %v1174_v44  ;;  %v380_v44 = vld [vmem:[%s4504_s25 + $0xd1] sm:$0xff] }
 0x137   : > { %621 = vst.msk [vmem:[#allocation2 + $0x60] sm:$0xff] %vm608_vm1, %v525_v45  ;;  %1834 = vrot.lane.b32.xlu1 %v1746_v41, %s4394_s22 }
 0x138   : > { %1619 = vrot.lane.b32.xlu0 %v1530_v42, %s6230_s16  ;;  %416 = vst.msk [vmem:[#allocation2 + $0xc0] sm:$0xff] %vm333_vm0, %v380_v44  ;;  %v1970_v44 = vld [vmem:[%s4504_s25 + $0xef] sm:$0xff] }
 0x139   : > { %v2038_v48 = vpop.permute.xlu1 %2037  ;;  %v2172_v50 = vld [vmem:[#allocation2 + $0x40] sm:$0xff] }
 0x13a   : > { %v1389_v49 = vpop.permute.xlu0 %1388  ;;  %2137 = vst.msk [vmem:[#allocation2 + $0x48] sm:$0xff] %vm2127_vm8, %v2038_v48  ;;  %4194 = vmatprep.mubr.msk.f32.mxu0 %vm2216_vm9, %v2172_v50  ;;  %v5082_v48 = vld [vmem:[%s4504_s25 + $0xdb] sm:$0xff] }
 0x13b   : > { %1487 = vst.msk [vmem:[#allocation2 + $0x50] sm:$0xff] %vm1476_vm5, %v1389_v49  ;;  %1187 = vrot.lane.b32.xlu1 %v1097_v46, %s4391_s29 }
 0x13c   : > { %972 = vrot.lane.b32.xlu0 %v881_v47, %s4390_s28 }
 0x13d   : > { %v742_v54 = vpop.permute.xlu1 %741 }
 0x13e   : > { %v527_v55 = vpop.permute.xlu0 %526  ;;  %838 = vst.msk [vmem:[#allocation2 + $0x60] sm:$0xff] %vm825_vm2, %v742_v54  ;;  %v381_v54 = vld [vmem:[%s4504_s25 + $0xd9] sm:$0xff] }
 0x13f   : > { %622 = vst.msk [vmem:[#allocation2 + $0x68] sm:$0xff] %vm608_vm1, %v527_v55  ;;  %2051 = vrot.lane.b32.xlu1 %v1963_v51, %s4395_s23 }
 0x140   : > { %1836 = vrot.lane.b32.xlu0 %v1747_v52, %s4394_s22  ;;  %v1967_v52 = vld [vmem:[%s4504_s25 + $0xd7] sm:$0xff]  ;;  %417 = vst.msk [vmem:[#allocation2 + $0xc8] sm:$0xff] %vm333_vm0, %v381_v54 }
 0x141   : > { %v1606_v58 = vpop.permute.xlu1 %1605  ;;  %v2173_v60 = vld [vmem:[#allocation2 + $0x48] sm:$0xff] }
 0x142   : > { %v1391_v59 = vpop.permute.xlu0 %1390  ;;  %1704 = vst.msk [vmem:[#allocation2 + $0x50] sm:$0xff] %vm1693_vm6, %v1606_v58  ;;  %4195 = vmatmul.mubr.msk.f32.gmra.mxu0 %vm2216_vm9, %v2173_v60  ;;  %v1102_v58 = vld [vmem:[%s4504_s25 + $0xdc] sm:$0xff] }
 0x143   : > { %1488 = vst.msk [vmem:[#allocation2 + $0x58] sm:$0xff] %vm1476_vm5, %v1391_v59  ;;  %1189 = vrot.lane.b32.xlu1 %v1098_v56, %s4391_s29  ;;  %v452_v59 = vld [vmem:[%s4504_s25 + $0xd2] sm:$0xff] }
 0x144   : > { %540 = vrot.lane.b32.xlu0 %v448_v57, %s4389_s27  ;;  %v5101_v57 = vld [vmem:[%s6220_s2] ss:$0 sm:$0xff] }
 0x145   : > { %v959_v62 = vpop.permute.xlu1 %958 }
 0x146   : > { %v744_v63 = vpop.permute.xlu0 %743  ;;  %1055 = vst.msk [vmem:[#allocation2 + $0x60] sm:$0xff] %vm1042_vm3, %v959_v62 }
 0x147   : > { %839 = vst.msk [vmem:[#allocation2 + $0x68] sm:$0xff] %vm825_vm2, %v744_v63  ;;  %2053 = vrot.lane.b32.xlu1 %v1964_v61, %s4395_s23 }
 0x148   : > { %1404 = vrot.lane.b32.xlu0 %v1529_v35, %s6237_s24 }
 0x149   : > { %v1823_v1 = vpop.permute.xlu1 %1822 }
 0x14a   : > { %v1608_v2 = vpop.permute.xlu0 %1607  ;;  %1921 = vst.msk [vmem:[#allocation2 + $0x50] sm:$0xff] %vm1910_vm7, %v1823_v1 }
 0x14b   : > { %1705 = vst.msk [vmem:[#allocation2 + $0x58] sm:$0xff] %vm1693_vm6, %v1608_v2  ;;  %757 = vrot.lane.b32.xlu1 %v880_v38, %s6232_s26  ;;  %v1968_v2 = vld [vmem:[%s4504_s25 + $0xdf] sm:$0xff] }
 0x14c   : > { %542 = vrot.lane.b32.xlu0 %v449_v0, %s4389_s27 }
 0x14d   : > { %v1176_v4 = vpop.permute.xlu1 %1175 }
 0x14e   : > { %v961_v5 = vpop.permute.xlu0 %960  ;;  %1272 = vst.msk [vmem:[#allocation2 + $0x60] sm:$0xff] %vm1259_vm4, %v1176_v4 }
 0x14f   : > { %1056 = vst.msk [vmem:[#allocation2 + $0x68] sm:$0xff] %vm1042_vm3, %v961_v5  ;;  %1621 = vrot.lane.b32.xlu1 %v4962_v3, %s6230_s16 }
 0x150   : > { %1406 = vrot.lane.b32.xlu0 %v1530_v42, %s6237_s24  ;;  %v1750_v42 = vld [vmem:[%s4504_s25 + $0xd6] sm:$0xff] }
 0x151   : > { %v2040_v7 = vpop.permute.xlu1 %2039 }
 0x152   : > { %v1825_v8 = vpop.permute.xlu0 %1824  ;;  %2138 = vst.msk [vmem:[#allocation2 + $0x50] sm:$0xff] %vm2127_vm8, %v2040_v7 }
 0x153   : > { %1922 = vst.msk [vmem:[#allocation2 + $0x58] sm:$0xff] %vm1910_vm7, %v1825_v8  ;;  %974 = vrot.lane.b32.xlu1 %v4970_v6, %s4390_s28  ;;  %v453_v8 = vld [vmem:[%s4504_s25 + $0xda] sm:$0xff] }
 0x154   : > { %759 = vrot.lane.b32.xlu0 %v881_v47, %s6232_s26  ;;  %v1101_v47 = vld [vmem:[%s4504_s25 + $0xd4] sm:$0xff] }
 0x155   : > { %v1178_v12 = vpop.permute.xlu1 %1177 }
 0x156   : > { %v529_v13 = vpop.permute.xlu0 %528  ;;  %1273 = vst.msk [vmem:[#allocation2 + $0x68] sm:$0xff] %vm1259_vm4, %v1178_v12 }
 0x157   : > { %623 = vst.msk [vmem:[#allocation2 + $0x70] sm:$0xff] %vm608_vm1, %v529_v13  ;;  %1838 = vrot.lane.b32.xlu1 %v1748_v9, %s4394_s22 }
 0x158   : > { %1623 = vrot.lane.b32.xlu0 %v4979_v10, %s6230_s16 }
 0x159   : > { %v2042_v16 = vpop.permute.xlu1 %2041  ;;  %v2174_v18 = vld [vmem:[#allocation2 + $0x50] sm:$0xff] }
 0x15a   : > { %v1393_v17 = vpop.permute.xlu0 %1392  ;;  %2139 = vst.msk [vmem:[#allocation2 + $0x58] sm:$0xff] %vm2127_vm8, %v2042_v16  ;;  %4197 = vmatprep.mubr.msk.f32.mxu0 %vm2216_vm9, %v2174_v18  ;;  %v5136_v16 = vld [vmem:[%s4504_s25 + $0xe3] sm:$0xff] }
 0x15b   : > { %1489 = vst.msk [vmem:[#allocation2 + $0x60] sm:$0xff] %vm1476_vm5, %v1393_v17  ;;  %1191 = vrot.lane.b32.xlu1 %v1099_v14, %s4391_s29 }
 0x15c   : > { %976 = vrot.lane.b32.xlu0 %v4990_v15, %s4390_s28 }
 0x15d   : > { %v746_v23 = vpop.permute.xlu1 %745 }
 0x15e   : > { %v531_v24 = vpop.permute.xlu0 %530  ;;  %840 = vst.msk [vmem:[#allocation2 + $0x70] sm:$0xff] %vm825_vm2, %v746_v23  ;;  %v382_v23 = vld [vmem:[%s4504_s25 + $0xe1] sm:$0xff] }
 0x15f   : > { %624 = vst.msk [vmem:[#allocation2 + $0x78] sm:$0xff] %vm608_vm1, %v531_v24  ;;  %2055 = vrot.lane.b32.xlu1 %v1965_v19, %s4395_s23 }
 0x160   : > { %1840 = vrot.lane.b32.xlu0 %v1749_v20, %s4394_s22  ;;  %v1752_v20 = vld [vmem:[%s4504_s25 + $0xe6] sm:$0xff]  ;;  %418 = vst.msk [vmem:[#allocation2 + $0xd0] sm:$0xff] %vm333_vm0, %v382_v23 }
 0x161   : > { %v1610_v27 = vpop.permute.xlu1 %1609  ;;  %v2175_v29 = vld [vmem:[#allocation2 + $0x58] sm:$0xff] }
 0x162   : > { %v1395_v28 = vpop.permute.xlu0 %1394  ;;  %1706 = vst.msk [vmem:[#allocation2 + $0x60] sm:$0xff] %vm1693_vm6, %v1610_v27  ;;  %4198 = vmatmul.mubr.msk.f32.gmra.mxu0 %vm2216_vm9, %v2175_v29  ;;  %v5158_v27 = vld [vmem:[%s4504_s25 + $0xeb] sm:$0xff]  ;;  %v1972_v23 = vld [vmem:[%s4504_s25 + $0xff] sm:$0xff] }
 0x163   : > { %1490 = vst.msk [vmem:[#allocation2 + $0x68] sm:$0xff] %vm1476_vm5, %v1395_v28  ;;  %1193 = vrot.lane.b32.xlu1 %v1100_v25, %s4391_s29 }
 0x164   : > { %544 = vrot.lane.b32.xlu0 %v450_v26, %s4389_s27  ;;  %v1103_v26 = vld [vmem:[%s4504_s25 + $0xe4] sm:$0xff] }
 0x165   : > { %v963_v31 = vpop.permute.xlu1 %962 }
 0x166   : > { %v748_v32 = vpop.permute.xlu0 %747  ;;  %1057 = vst.msk [vmem:[#allocation2 + $0x70] sm:$0xff] %vm1042_vm3, %v963_v31  ;;  %v1969_v31 = vld [vmem:[%s4504_s25 + $0xe7] sm:$0xff] }
 0x167   : > { %841 = vst.msk [vmem:[#allocation2 + $0x78] sm:$0xff] %vm825_vm2, %v748_v32  ;;  %2057 = vrot.lane.b32.xlu1 %v1966_v30, %s4395_s23  ;;  %v1753_v32 = vld [vmem:[%s4504_s25 + $0xee] sm:$0xff] }
 0x168   : > { %1408 = vrot.lane.b32.xlu0 %v4962_v3, %s6237_s24 }
 0x169   : > { %v1827_v34 = vpop.permute.xlu1 %1826 }
 0x16a   : > { %v1612_v35 = vpop.permute.xlu0 %1611  ;;  %1923 = vst.msk [vmem:[#allocation2 + $0x60] sm:$0xff] %vm1910_vm7, %v1827_v34 }
 0x16b   : > { %1707 = vst.msk [vmem:[#allocation2 + $0x68] sm:$0xff] %vm1693_vm6, %v1612_v35  ;;  %761 = vrot.lane.b32.xlu1 %v4970_v6, %s6232_s26 }
 0x16c   : > { %546 = vrot.lane.b32.xlu0 %v451_v33, %s4389_s27  ;;  %v383_v33 = vld [vmem:[%s4504_s25 + $0xe9] sm:$0xff] }
 0x16d   : > { %v1180_v37 = vpop.permute.xlu1 %1179  ;;  %419 = vst.msk [vmem:[#allocation2 + $0xd8] sm:$0xff] %vm333_vm0, %v383_v33 }
 0x16e   : > { %v965_v38 = vpop.permute.xlu0 %964  ;;  %1274 = vst.msk [vmem:[#allocation2 + $0x70] sm:$0xff] %vm1259_vm4, %v1180_v37  ;;  %v454_v37 = vld [vmem:[%s4504_s25 + $0xe2] sm:$0xff] }
 0x16f   : > { %1058 = vst.msk [vmem:[#allocation2 + $0x78] sm:$0xff] %vm1042_vm3, %v965_v38  ;;  %1625 = vrot.lane.b32.xlu1 %v5052_v36, %s6230_s16 }
 0x170   : > { %1410 = vrot.lane.b32.xlu0 %v4979_v10, %s6237_s24 }
 0x171   : > { %v2044_v40 = vpop.permute.xlu1 %2043 }
 0x172   : > { %v1829_v41 = vpop.permute.xlu0 %1828  ;;  %2140 = vst.msk [vmem:[#allocation2 + $0x60] sm:$0xff] %vm2127_vm8, %v2044_v40 }
 0x173   : > { %1924 = vst.msk [vmem:[#allocation2 + $0x68] sm:$0xff] %vm1910_vm7, %v1829_v41  ;;  %978 = vrot.lane.b32.xlu1 %v5061_v39, %s4390_s28 }
 0x174   : > { %763 = vrot.lane.b32.xlu0 %v4990_v15, %s6232_s26 }
 0x175   : > { %v1182_v45 = vpop.permute.xlu1 %1181 }
 0x176   : > { %v533_v46 = vpop.permute.xlu0 %532  ;;  %1275 = vst.msk [vmem:[#allocation2 + $0x78] sm:$0xff] %vm1259_vm4, %v1182_v45 }
 0x177   : > { %625 = vst.msk [vmem:[#allocation2 + $0x80] sm:$0xff] %vm608_vm1, %v533_v46  ;;  %1842 = vrot.lane.b32.xlu1 %v1750_v42, %s4394_s22 }
 0x178   : > { %1627 = vrot.lane.b32.xlu0 %v5071_v43, %s6230_s16 }
 0x179   : > { %v2046_v49 = vpop.permute.xlu1 %2045  ;;  %v2176_v51 = vld [vmem:[#allocation2 + $0x60] sm:$0xff] }
 0x17a   : > { %v1397_v50 = vpop.permute.xlu0 %1396  ;;  %2141 = vst.msk [vmem:[#allocation2 + $0x68] sm:$0xff] %vm2127_vm8, %v2046_v49  ;;  %4200 = vmatprep.mubr.msk.f32.mxu0 %vm2216_vm9, %v2176_v51 }
 0x17b   : > { %1491 = vst.msk [vmem:[#allocation2 + $0x70] sm:$0xff] %vm1476_vm5, %v1397_v50  ;;  %1195 = vrot.lane.b32.xlu1 %v1101_v47, %s4391_s29  ;;  %v455_v50 = vld [vmem:[%s4504_s25 + $0xea] sm:$0xff] }
 0x17c   : > { %980 = vrot.lane.b32.xlu0 %v5082_v48, %s4390_s28 }
 0x17d   : > { %v750_v55 = vpop.permute.xlu1 %749 }
 0x17e   : > { %v535_v56 = vpop.permute.xlu0 %534  ;;  %842 = vst.msk [vmem:[#allocation2 + $0x80] sm:$0xff] %vm825_vm2, %v750_v55 }
 0x17f   : > { %626 = vst.msk [vmem:[#allocation2 + $0x88] sm:$0xff] %vm608_vm1, %v535_v56  ;;  %2059 = vrot.lane.b32.xlu1 %v1967_v52, %s4395_s23 }
 0x180   : > { %1844 = vrot.lane.b32.xlu0 %v1751_v53, %s4394_s22  ;;  %v5198_v53 = vld [vmem:[%s4504_s25 + $0xf5] sm:$0xff] }
 0x181   : > { %v1614_v60 = vpop.permute.xlu1 %1613  ;;  %v2177_v62 = vld [vmem:[#allocation2 + $0x68] sm:$0xff] }
 0x182   : > { %v1399_v61 = vpop.permute.xlu0 %1398  ;;  %1708 = vst.msk [vmem:[#allocation2 + $0x70] sm:$0xff] %vm1693_vm6, %v1614_v60  ;;  %v4184_v63 = vpop.f32.mrf.mxu0  ;;  %4201 = vmatmul.mubr.msk.f32.gmra.mxu0 %vm2216_vm9, %v2177_v62 }
 0x183   : > { %1492 = vst.msk [vmem:[#allocation2 + $0x78] sm:$0xff] %vm1476_vm5, %v1399_v61  ;;  %v2397_v0 = vadd.f32 %v4184_v63, %v5101_v57  ;;  %1197 = vrot.lane.b32.xlu1 %v1102_v58, %s4391_s29  ;;  %v1754_v63 = vld [vmem:[%s4504_s25 + $0xf6] sm:$0xff] }
 0x184   : > { %548 = vrot.lane.b32.xlu0 %v452_v59, %s4389_s27  ;;  %v2391_v1 = vpop.f32.mrf.mxu0  ;;  %v5207_v59 = vld [vmem:[%s4504_s25 + $0xf3] sm:$0xff] }
 0x185   : > { %v2571_v3 = vmax.f32 %v2397_v0, 0.0  ;;  %v2392_v4 = vadd.f32 %v5101_v57, %v2391_v1  ;;  %v967_v5 = vpop.permute.xlu1 %966  ;;  %v5218_v0 = vld [vmem:[%s4504_s25 + $0xfd] sm:$0xff]  ;;  %v384_v1 = vld [vmem:[%s4504_s25 + $0xf1] sm:$0xff] }
 0x186   : > { %v752_v6 = vpop.permute.xlu0 %751  ;;  %1059 = vst.msk [vmem:[#allocation2 + $0x80] sm:$0xff] %vm1042_vm3, %v967_v5  ;;  %v5229_v5 = vld [vmem:[%s4504_s25 + $0xfb] sm:$0xff] }
 0x187   : > { %843 = vst.msk [vmem:[#allocation2 + $0x88] sm:$0xff] %vm825_vm2, %v752_v6  ;;  %v2570_v7 = vmax.f32 %v2392_v4, 0.0  ;;  %2061 = vrot.lane.b32.xlu1 %v1968_v2, %s4395_s23  ;;  %v1105_v4 = vld [vmem:[%s4504_s25 + $0xf4] sm:$0xff] }
 0x188   : > { %2607 = vst.msk [vmem:[#allocation3 + $0x8] sm:$0xff] %vm333_vm0, %v2571_v3  ;;  %1412 = vrot.lane.b32.xlu0 %v5052_v36, %s6237_s24  ;;  %v1104_v36 = vld [vmem:[%s4504_s25 + $0xec] sm:$0xff]  ;;  %420 = vst.msk [vmem:[#allocation2 + $0xe0] sm:$0xff] %vm333_vm0, %v384_v1 }
 0x189   : > { %2606 = vst.msk [vmem:[#allocation3] sm:$0xff] %vm333_vm0, %v2570_v7  ;;  %v1831_v9 = vpop.permute.xlu1 %1830 }
 0x18a   : > { %v1616_v10 = vpop.permute.xlu0 %1615  ;;  %1925 = vst.msk [vmem:[#allocation2 + $0x70] sm:$0xff] %vm1910_vm7, %v1831_v9  ;;  %v1971_v9 = vld [vmem:[%s4504_s25 + $0xf7] sm:$0xff] }
 0x18b   : > { %1709 = vst.msk [vmem:[#allocation2 + $0x78] sm:$0xff] %vm1693_vm6, %v1616_v10  ;;  %765 = vrot.lane.b32.xlu1 %v5061_v39, %s6232_s26  ;;  %v1755_v10 = vld [vmem:[%s4504_s25 + $0xfe] sm:$0xff] }
 0x18c   : > { %550 = vrot.lane.b32.xlu0 %v453_v8, %s4389_s27 }
 0x18d   : > { %v1184_v12 = vpop.permute.xlu1 %1183 }
 0x18e   : > { %v969_v13 = vpop.permute.xlu0 %968  ;;  %1276 = vst.msk [vmem:[#allocation2 + $0x80] sm:$0xff] %vm1259_vm4, %v1184_v12 }
 0x18f   : > { %1060 = vst.msk [vmem:[#allocation2 + $0x88] sm:$0xff] %vm1042_vm3, %v969_v13  ;;  %1629 = vrot.lane.b32.xlu1 %v5127_v11, %s6230_s16 }
 0x190   : > { %1414 = vrot.lane.b32.xlu0 %v5071_v43, %s6237_s24  ;;  %v2642_v14 = vld [vmem:[#allocation3] ss:$2 sm:$0xff]  ;;  %v2678_v15 = vld [vmem:[#allocation3 + $0x1] ss:$2 sm:$0xff] }
 0x191   : > { %v2713_v17 = vmax.f32 %v2642_v14, %v2678_v15  ;;  %v2048_v18 = vpop.permute.xlu1 %2047  ;;  %v1106_v14 = vld [vmem:[%s4504_s25 + $0xfc] sm:$0xff]  ;;  %v456_v15 = vld [vmem:[%s4504_s25 + $0xf2] sm:$0xff] }
 0x192   : > { %v1833_v19 = vpop.permute.xlu0 %1832  ;;  %2142 = vst.msk [vmem:[#allocation2 + $0x70] sm:$0xff] %vm2127_vm8, %v2048_v18 }
 0x193   : > { %1926 = vst.msk [vmem:[#allocation2 + $0x78] sm:$0xff] %vm1910_vm7, %v1833_v19  ;;  %982 = vrot.lane.b32.xlu1 %v5136_v16, %s4390_s28 }
 0x194   : > { %2731 = vst.msk [vmem:[#allocation4] sm:$0xff] %vm333_vm0, %v2713_v17  ;;  %767 = vrot.lane.b32.xlu0 %v5082_v48, %s6232_s26 }
 0x195   : > { %v1186_v24 = vpop.permute.xlu1 %1185 }
 0x196   : > { %v537_v25 = vpop.permute.xlu0 %536  ;;  %1277 = vst.msk [vmem:[#allocation2 + $0x88] sm:$0xff] %vm1259_vm4, %v1186_v24 }
 0x197   : > { %627 = vst.msk [vmem:[#allocation2 + $0x90] sm:$0xff] %vm608_vm1, %v537_v25  ;;  %1846 = vrot.lane.b32.xlu1 %v1752_v20, %s4394_s22 }
 0x198   : > { %1631 = vrot.lane.b32.xlu0 %v5147_v21, %s6230_s16 }
 0x199   : > { %v2050_v28 = vpop.permute.xlu1 %2049  ;;  %v2178_v30 = vld [vmem:[#allocation2 + $0x70] sm:$0xff] }
 0x19a   : > { %v1401_v29 = vpop.permute.xlu0 %1400  ;;  %2143 = vst.msk [vmem:[#allocation2 + $0x78] sm:$0xff] %vm2127_vm8, %v2050_v28  ;;  %4203 = vmatprep.mubr.msk.f32.mxu0 %vm2216_vm9, %v2178_v30 }
 0x19b   : > { %1493 = vst.msk [vmem:[#allocation2 + $0x80] sm:$0xff] %vm1476_vm5, %v1401_v29  ;;  %1199 = vrot.lane.b32.xlu1 %v1103_v26, %s4391_s29  ;;  %v457_v29 = vld [vmem:[%s4504_s25 + $0xfa] sm:$0xff] }
 0x19c   : > { %984 = vrot.lane.b32.xlu0 %v5158_v27, %s4390_s28 }
 0x19d   : > { %v754_v34 = vpop.permute.xlu1 %753 }
 0x19e   : > { %v539_v35 = vpop.permute.xlu0 %538  ;;  %844 = vst.msk [vmem:[#allocation2 + $0x90] sm:$0xff] %vm825_vm2, %v754_v34 }
 0x19f   : > { %628 = vst.msk [vmem:[#allocation2 + $0x98] sm:$0xff] %vm608_vm1, %v539_v35  ;;  %2063 = vrot.lane.b32.xlu1 %v1969_v31, %s4395_s23 }
 0x1a0   : > { %1848 = vrot.lane.b32.xlu0 %v1753_v32, %s4394_s22  ;;  %v5269_v32 = vld [vmem:[%s4504_s25 + $0x105] sm:$0xff] }
 0x1a1   : > { %v1618_v38 = vpop.permute.xlu1 %1617  ;;  %v2179_v40 = vld [vmem:[#allocation2 + $0x78] sm:$0xff] }
 0x1a2   : > { %v1403_v39 = vpop.permute.xlu0 %1402  ;;  %1710 = vst.msk [vmem:[#allocation2 + $0x80] sm:$0xff] %vm1693_vm6, %v1618_v38  ;;  %v4187_v41 = vpop.f32.mrf.mxu0  ;;  %4204 = vmatmul.mubr.msk.f32.gmra.mxu0 %vm2216_vm9, %v2179_v40 }
 0x1a3   : > { %1494 = vst.msk [vmem:[#allocation2 + $0x88] sm:$0xff] %vm1476_vm5, %v1403_v39  ;;  %v2407_v42 = vadd.f32 %v4187_v41, %v5101_v57  ;;  %1201 = vrot.lane.b32.xlu1 %v1104_v36, %s4391_s29  ;;  %v1756_v41 = vld [vmem:[%s4504_s25 + $0x106] sm:$0xff] }
 0x1a4   : > { %552 = vrot.lane.b32.xlu0 %v454_v37, %s4389_s27  ;;  %v2401_v43 = vpop.f32.mrf.mxu0  ;;  %v5278_v37 = vld [vmem:[%s4504_s25 + $0x103] sm:$0xff] }
 0x1a5   : > { %v2573_v45 = vmax.f32 %v2407_v42, 0.0  ;;  %v2402_v46 = vadd.f32 %v5101_v57, %v2401_v43  ;;  %v971_v47 = vpop.permute.xlu1 %970  ;;  %v5289_v42 = vld [vmem:[%s4504_s25 + $0x10d] sm:$0xff]  ;;  %v386_v43 = vld [vmem:[%s4504_s25 + $0x101] sm:$0xff] }
 0x1a6   : > { %v756_v48 = vpop.permute.xlu0 %755  ;;  %1061 = vst.msk [vmem:[#allocation2 + $0x90] sm:$0xff] %vm1042_vm3, %v971_v47  ;;  %v5300_v47 = vld [vmem:[%s4504_s25 + $0x10b] sm:$0xff] }
 0x1a7   : > { %845 = vst.msk [vmem:[#allocation2 + $0x98] sm:$0xff] %vm825_vm2, %v756_v48  ;;  %v2572_v49 = vmax.f32 %v2402_v46, 0.0  ;;  %2065 = vrot.lane.b32.xlu1 %v1970_v44, %s4395_s23  ;;  %v1107_v46 = vld [vmem:[%s4504_s25 + $0x104] sm:$0xff] }
 0x1a8   : > { %2609 = vst.msk [vmem:[#allocation3 + $0x18] sm:$0xff] %vm333_vm0, %v2573_v45  ;;  %1416 = vrot.lane.b32.xlu0 %v5127_v11, %s6237_s24  ;;  %v385_v11 = vld [vmem:[%s4504_s25 + $0xf9] sm:$0xff]  ;;  %422 = vst.msk [vmem:[#allocation2 + $0xf0] sm:$0xff] %vm333_vm0, %v386_v43 }
 0x1a9   : > { %2608 = vst.msk [vmem:[#allocation3 + $0x10] sm:$0xff] %vm333_vm0, %v2572_v49  ;;  %v1835_v51 = vpop.permute.xlu1 %1834  ;;  %421 = vst.msk [vmem:[#allocation2 + $0xe8] sm:$0xff] %vm333_vm0, %v385_v11  ;;  %v459_v11 = vld [vmem:[%s4504_s25 + $0x10a] sm:$0xff] }
 0x1aa   : > { %v1620_v52 = vpop.permute.xlu0 %1619  ;;  %1927 = vst.msk [vmem:[#allocation2 + $0x80] sm:$0xff] %vm1910_vm7, %v1835_v51  ;;  %v2749_v51 = vld [vmem:[#allocation4] sm:$0xff] }
 0x1ab   : > { %1711 = vst.msk [vmem:[#allocation2 + $0x88] sm:$0xff] %vm1693_vm6, %v1620_v52  ;;  %769 = vrot.lane.b32.xlu1 %v5136_v16, %s6232_s26 }
 0x1ac   : > { %554 = vrot.lane.b32.xlu0 %v455_v50, %s4389_s27 }
 0x1ad   : > { %v1188_v54 = vpop.permute.xlu1 %1187 }
 0x1ae   : > { %v973_v55 = vpop.permute.xlu0 %972  ;;  %1278 = vst.msk [vmem:[#allocation2 + $0x90] sm:$0xff] %vm1259_vm4, %v1188_v54  ;;  %v1973_v54 = vld [vmem:[%s4504_s25 + $0x107] sm:$0xff] }
 0x1af   : > { %1062 = vst.msk [vmem:[#allocation2 + $0x98] sm:$0xff] %vm1042_vm3, %v973_v55  ;;  %1633 = vrot.lane.b32.xlu1 %v5198_v53, %s6230_s16  ;;  %v1757_v55 = vld [vmem:[%s4504_s25 + $0x10e] sm:$0xff] }
 0x1b0   : > { %1418 = vrot.lane.b32.xlu0 %v5147_v21, %s6237_s24  ;;  %v2644_v56 = vld [vmem:[#allocation3 + $0x10] ss:$2 sm:$0xff]  ;;  %v2680_v58 = vld [vmem:[#allocation3 + $0x11] ss:$2 sm:$0xff] }
 0x1b1   : > { %v2714_v60 = vmax.f32 %v2644_v56, %v2680_v58  ;;  %v2052_v61 = vpop.permute.xlu1 %2051  ;;  %v387_v56 = vld [vmem:[%s4504_s25 + $0x109] sm:$0xff] }
 0x1b2   : > { %v1837_v62 = vpop.permute.xlu0 %1836  ;;  %2144 = vst.msk [vmem:[#allocation2 + $0x80] sm:$0xff] %vm2127_vm8, %v2052_v61  ;;  %v458_v61 = vld [vmem:[%s4504_s25 + $0x102] sm:$0xff] }
 0x1b3   : > { %1928 = vst.msk [vmem:[#allocation2 + $0x88] sm:$0xff] %vm1910_vm7, %v1837_v62  ;;  %986 = vrot.lane.b32.xlu1 %v5207_v59, %s4390_s28 }
 0x1b4   : > { %2732 = vst.msk [vmem:[#allocation4 + $0x8] sm:$0xff] %vm333_vm0, %v2714_v60  ;;  %771 = vrot.lane.b32.xlu0 %v5158_v27, %s6232_s26  ;;  %423 = vst.msk [vmem:[#allocation2 + $0xf8] sm:$0xff] %vm333_vm0, %v387_v56  ;;  %v1108_v60 = vld [vmem:[%s4504_s25 + $0x10c] sm:$0xff] }
 0x1b5   : > { %v1190_v2 = vpop.permute.xlu1 %1189  ;;  %v5413_v56 = vld [vmem:[%s4504_s25 + $0x125] sm:$0xff] }
 0x1b6   : > { %v541_v3 = vpop.permute.xlu0 %540  ;;  %1279 = vst.msk [vmem:[#allocation2 + $0x98] sm:$0xff] %vm1259_vm4, %v1190_v2 }
 0x1b7   : > { %629 = vst.msk [vmem:[#allocation2 + $0xa0] sm:$0xff] %vm608_vm1, %v541_v3  ;;  %1850 = vrot.lane.b32.xlu1 %v1754_v63, %s4394_s22 }
 0x1b8   : > { %1635 = vrot.lane.b32.xlu0 %v5218_v0, %s6230_s16 }
 0x1b9   : > { %v2054_v6 = vpop.permute.xlu1 %2053  ;;  %v2180_v8 = vld [vmem:[#allocation2 + $0x80] sm:$0xff] }
 0x1ba   : > { %v1405_v7 = vpop.permute.xlu0 %1404  ;;  %2145 = vst.msk [vmem:[#allocation2 + $0x88] sm:$0xff] %vm2127_vm8, %v2054_v6  ;;  %4206 = vmatprep.mubr.msk.f32.mxu0 %vm2216_vm9, %v2180_v8 }
 0x1bb   : > { %1495 = vst.msk [vmem:[#allocation2 + $0x90] sm:$0xff] %vm1476_vm5, %v1405_v7  ;;  %1203 = vrot.lane.b32.xlu1 %v1105_v4, %s4391_s29  ;;  %v1974_v4 = vld [vmem:[%s4504_s25 + $0x10f] sm:$0xff] }
 0x1bc   : > { %988 = vrot.lane.b32.xlu0 %v5229_v5, %s4390_s28 }
 0x1bd   : > { %v758_v12 = vpop.permute.xlu1 %757 }
 0x1be   : > { %v543_v13 = vpop.permute.xlu0 %542  ;;  %846 = vst.msk [vmem:[#allocation2 + $0xa0] sm:$0xff] %vm825_vm2, %v758_v12 }
 0x1bf   : > { %630 = vst.msk [vmem:[#allocation2 + $0xa8] sm:$0xff] %vm608_vm1, %v543_v13  ;;  %2067 = vrot.lane.b32.xlu1 %v1971_v9, %s4395_s23 }
 0x1c0   : > { %1852 = vrot.lane.b32.xlu0 %v1755_v10, %s4394_s22 }
 0x1c1   : > { %v1622_v16 = vpop.permute.xlu1 %1621  ;;  %v2181_v18 = vld [vmem:[#allocation2 + $0x88] sm:$0xff] }
 0x1c2   : > { %v1407_v17 = vpop.permute.xlu0 %1406  ;;  %1712 = vst.msk [vmem:[#allocation2 + $0x90] sm:$0xff] %vm1693_vm6, %v1622_v16  ;;  %v4190_v19 = vpop.f32.mrf.mxu0  ;;  %4207 = vmatmul.mubr.msk.f32.gmra.mxu0 %vm2216_vm9, %v2181_v18 }
 0x1c3   : > { %1496 = vst.msk [vmem:[#allocation2 + $0x98] sm:$0xff] %vm1476_vm5, %v1407_v17  ;;  %v2417_v20 = vadd.f32 %v4190_v19, %v5101_v57  ;;  %1205 = vrot.lane.b32.xlu1 %v1106_v14, %s4391_s29  ;;  %v5342_v14 = vld [vmem:[%s4504_s25 + $0x115] sm:$0xff] }
 0x1c4   : > { %556 = vrot.lane.b32.xlu0 %v456_v15, %s4389_s27  ;;  %v2411_v21 = vpop.f32.mrf.mxu0  ;;  %v5351_v19 = vld [vmem:[%s4504_s25 + $0x113] sm:$0xff] }
 0x1c5   : > { %v2575_v24 = vmax.f32 %v2417_v20, 0.0  ;;  %v2412_v25 = vadd.f32 %v5101_v57, %v2411_v21  ;;  %v975_v26 = vpop.permute.xlu1 %974 }
 0x1c6   : > { %v760_v27 = vpop.permute.xlu0 %759  ;;  %1063 = vst.msk [vmem:[#allocation2 + $0xa0] sm:$0xff] %vm1042_vm3, %v975_v26 }
 0x1c7   : > { %847 = vst.msk [vmem:[#allocation2 + $0xa8] sm:$0xff] %vm825_vm2, %v760_v27  ;;  %v2574_v28 = vmax.f32 %v2412_v25, 0.0  ;;  %2069 = vrot.lane.b32.xlu1 %v1972_v23, %s4395_s23  ;;  %v5362_v25 = vld [vmem:[%s4504_s25 + $0x11d] sm:$0xff] }
 0x1c8   : > { %2611 = vst.msk [vmem:[#allocation3 + $0x28] sm:$0xff] %vm333_vm0, %v2575_v24  ;;  %1420 = vrot.lane.b32.xlu0 %v5198_v53, %s6237_s24  ;;  %v1758_v24 = vld [vmem:[%s4504_s25 + $0x116] sm:$0xff] }
 0x1c9   : > { %2610 = vst.msk [vmem:[#allocation3 + $0x20] sm:$0xff] %vm333_vm0, %v2574_v28  ;;  %v1839_v30 = vpop.permute.xlu1 %1838  ;;  %v388_v28 = vld [vmem:[%s4504_s25 + $0x111] sm:$0xff] }
 0x1ca   : > { %v1624_v31 = vpop.permute.xlu0 %1623  ;;  %1929 = vst.msk [vmem:[#allocation2 + $0x90] sm:$0xff] %vm1910_vm7, %v1839_v30  ;;  %v5373_v30 = vld [vmem:[%s4504_s25 + $0x11b] sm:$0xff] }
 0x1cb   : > { %1713 = vst.msk [vmem:[#allocation2 + $0x98] sm:$0xff] %vm1693_vm6, %v1624_v31  ;;  %773 = vrot.lane.b32.xlu1 %v5207_v59, %s6232_s26 }
 0x1cc   : > { %558 = vrot.lane.b32.xlu0 %v457_v29, %s4389_s27  ;;  %424 = vst.msk [vmem:[#allocation2 + $0x100] sm:$0xff] %vm333_vm0, %v388_v28  ;;  %v1109_v29 = vld [vmem:[%s4504_s25 + $0x114] sm:$0xff] }
 0x1cd   : > { %v1192_v33 = vpop.permute.xlu1 %1191 }
 0x1ce   : > { %v977_v34 = vpop.permute.xlu0 %976  ;;  %1280 = vst.msk [vmem:[#allocation2 + $0xa0] sm:$0xff] %vm1259_vm4, %v1192_v33 }
 0x1cf   : > { %1064 = vst.msk [vmem:[#allocation2 + $0xa8] sm:$0xff] %vm1042_vm3, %v977_v34  ;;  %1637 = vrot.lane.b32.xlu1 %v5269_v32, %s6230_s16  ;;  %v1975_v34 = vld [vmem:[%s4504_s25 + $0x117] sm:$0xff] }
 0x1d0   : > { %1422 = vrot.lane.b32.xlu0 %v5218_v0, %s6237_s24  ;;  %v2646_v35 = vld [vmem:[#allocation3 + $0x20] ss:$2 sm:$0xff]  ;;  %v2682_v36 = vld [vmem:[#allocation3 + $0x21] ss:$2 sm:$0xff] }
 0x1d1   : > { %v2715_v38 = vmax.f32 %v2646_v35, %v2682_v36  ;;  %v2056_v39 = vpop.permute.xlu1 %2055  ;;  %v1759_v35 = vld [vmem:[%s4504_s25 + $0x11e] sm:$0xff] }
 0x1d2   : > { %v1841_v40 = vpop.permute.xlu0 %1840  ;;  %2146 = vst.msk [vmem:[#allocation2 + $0x90] sm:$0xff] %vm2127_vm8, %v2056_v39  ;;  %v1110_v39 = vld [vmem:[%s4504_s25 + $0x11c] sm:$0xff] }
 0x1d3   : > { %1930 = vst.msk [vmem:[#allocation2 + $0x98] sm:$0xff] %vm1910_vm7, %v1841_v40  ;;  %990 = vrot.lane.b32.xlu1 %v5278_v37, %s4390_s28  ;;  %v460_v40 = vld [vmem:[%s4504_s25 + $0x112] sm:$0xff] }
 0x1d4   : > { %2733 = vst.msk [vmem:[#allocation4 + $0x10] sm:$0xff] %vm333_vm0, %v2715_v38  ;;  %775 = vrot.lane.b32.xlu0 %v5229_v5, %s6232_s26  ;;  %v389_v38 = vld [vmem:[%s4504_s25 + $0x119] sm:$0xff] }
 0x1d5   : > { %v1194_v44 = vpop.permute.xlu1 %1193  ;;  %425 = vst.msk [vmem:[#allocation2 + $0x108] sm:$0xff] %vm333_vm0, %v389_v38 }
 0x1d6   : > { %v545_v45 = vpop.permute.xlu0 %544  ;;  %1281 = vst.msk [vmem:[#allocation2 + $0xa8] sm:$0xff] %vm1259_vm4, %v1194_v44 }
 0x1d7   : > { %631 = vst.msk [vmem:[#allocation2 + $0xb0] sm:$0xff] %vm608_vm1, %v545_v45  ;;  %1854 = vrot.lane.b32.xlu1 %v1756_v41, %s4394_s22 }
 0x1d8   : > { %1639 = vrot.lane.b32.xlu0 %v5289_v42, %s6230_s16 }
 0x1d9   : > { %v2058_v48 = vpop.permute.xlu1 %2057  ;;  %v2182_v50 = vld [vmem:[#allocation2 + $0x90] sm:$0xff] }
 0x1da   : > { %v1409_v49 = vpop.permute.xlu0 %1408  ;;  %2147 = vst.msk [vmem:[#allocation2 + $0x98] sm:$0xff] %vm2127_vm8, %v2058_v48  ;;  %4209 = vmatprep.mubr.msk.f32.mxu0 %vm2216_vm9, %v2182_v50 }
 0x1db   : > { %1497 = vst.msk [vmem:[#allocation2 + $0xa0] sm:$0xff] %vm1476_vm5, %v1409_v49  ;;  %v2750_v52 = vld [vmem:[#allocation4 + $0x9] sm:$0xff]  ;;  %1207 = vrot.lane.b32.xlu1 %v1107_v46, %s4391_s29 }
 0x1dc   : > { %992 = vrot.lane.b32.xlu0 %v5300_v47, %s4390_s28  ;;  %v2751_v53 = vmax.f32 %v2749_v51, %v2750_v52 }
 0x1dd   : > { %v762_v58 = vpop.permute.xlu1 %761 }
 0x1de   : > { %v547_v59 = vpop.permute.xlu0 %546  ;;  %2752 = vst.msk [vmem:[#allocation5 + $0x14] sm:$0xff] %vm333_vm0, %v2751_v53  ;;  %v461_v53 = vld [vmem:[%s4504_s25 + $0x11a] sm:$0xff] }
 0x1df   : > { %848 = vst.msk [vmem:[#allocation2 + $0xb0] sm:$0xff] %vm825_vm2, %v762_v58  ;;  %2071 = vrot.lane.b32.xlu1 %v1973_v54, %s4395_s23 }
 0x1e0   : > { %632 = vst.msk [vmem:[#allocation2 + $0xb8] sm:$0xff] %vm608_vm1, %v547_v59  ;;  %1856 = vrot.lane.b32.xlu0 %v1757_v55, %s4394_s22 }
 0x1e1   : > { %v1626_v62 = vpop.permute.xlu1 %1625  ;;  %v2183_v0 = vld [vmem:[#allocation2 + $0x98] sm:$0xff] }
 0x1e2   : > { %v1411_v63 = vpop.permute.xlu0 %1410  ;;  %1714 = vst.msk [vmem:[#allocation2 + $0xa0] sm:$0xff] %vm1693_vm6, %v1626_v62  ;;  %v4193_v1 = vpop.f32.mrf.mxu0  ;;  %4210 = vmatmul.mubr.msk.f32.gmra.mxu0 %vm2216_vm9, %v2183_v0  ;;  %v5422_v62 = vld [vmem:[%s4504_s25 + $0x123] sm:$0xff] }
 0x1e3   : > { %1498 = vst.msk [vmem:[#allocation2 + $0xa8] sm:$0xff] %vm1476_vm5, %v1411_v63  ;;  %v2427_v2 = vadd.f32 %v4193_v1, %v5101_v57  ;;  %1209 = vrot.lane.b32.xlu1 %v1108_v60, %s4391_s29 }
 0x1e4   : > { %560 = vrot.lane.b32.xlu0 %v458_v61, %s4389_s27  ;;  %v2421_v3 = vpop.f32.mrf.mxu0 }
 0x1e5   : > { %v2577_v5 = vmax.f32 %v2427_v2, 0.0  ;;  %v2422_v6 = vadd.f32 %v5101_v57, %v2421_v3  ;;  %v979_v7 = vpop.permute.xlu1 %978  ;;  %v2782_v9 = vld [vmem:[#allocation5 + $0x11] sm:$0xff]  ;;  %v5433_v3 = vld [vmem:[%s4504_s25 + $0x12d] sm:$0xff] }
 0x1e6   : > { %v764_v8 = vpop.permute.xlu0 %763  ;;  %1065 = vst.msk [vmem:[#allocation2 + $0xb0] sm:$0xff] %vm1042_vm3, %v979_v7  ;;  %v1760_v2 = vld [vmem:[%s4504_s25 + $0x126] sm:$0xff] }
 0x1e7   : > { %849 = vst.msk [vmem:[#allocation2 + $0xb8] sm:$0xff] %vm825_vm2, %v764_v8  ;;  %v2576_v10 = vmax.f32 %v2422_v6, 0.0  ;;  %2073 = vrot.lane.b32.xlu1 %v1974_v4, %s4395_s23  ;;  %v390_v6 = vld [vmem:[%s4504_s25 + $0x121] sm:$0xff]  ;;  %v5444_v8 = vld [vmem:[%s4504_s25 + $0x12b] sm:$0xff] }
 0x1e8   : > { %2792 = vst.msk [vmem:[#allocation6 + $0x8] sm:$0xff] %vm333_vm0, %v2782_v9  ;;  %2613 = vst.msk [vmem:[#allocation3 + $0x38] sm:$0xff] %vm333_vm0, %v2577_v5  ;;  %1424 = vrot.lane.b32.xlu0 %v5269_v32, %s6237_s24  ;;  %v1111_v7 = vld [vmem:[%s4504_s25 + $0x124] sm:$0xff] }
 0x1e9   : > { %2612 = vst.msk [vmem:[#allocation3 + $0x30] sm:$0xff] %vm333_vm0, %v2576_v10  ;;  %v1843_v12 = vpop.permute.xlu1 %1842  ;;  %426 = vst.msk [vmem:[#allocation2 + $0x110] sm:$0xff] %vm333_vm0, %v390_v6 }
 0x1ea   : > { %v1628_v13 = vpop.permute.xlu0 %1627  ;;  %1931 = vst.msk [vmem:[#allocation2 + $0xa0] sm:$0xff] %vm1910_vm7, %v1843_v12 }
 0x1eb   : > { %1715 = vst.msk [vmem:[#allocation2 + $0xa8] sm:$0xff] %vm1693_vm6, %v1628_v13  ;;  %777 = vrot.lane.b32.xlu1 %v5278_v37, %s6232_s26 }
 0x1ec   : > { %562 = vrot.lane.b32.xlu0 %v459_v11, %s4389_s27 }
 0x1ed   : > { %v1196_v15 = vpop.permute.xlu1 %1195 }
 0x1ee   : > { %v981_v16 = vpop.permute.xlu0 %980  ;;  %1282 = vst.msk [vmem:[#allocation2 + $0xb0] sm:$0xff] %vm1259_vm4, %v1196_v15  ;;  %v1977_v15 = vld [vmem:[%s4504_s25 + $0x127] sm:$0xff] }
 0x1ef   : > { %1066 = vst.msk [vmem:[#allocation2 + $0xb8] sm:$0xff] %vm1042_vm3, %v981_v16  ;;  %1641 = vrot.lane.b32.xlu1 %v5342_v14, %s6230_s16  ;;  %v1761_v16 = vld [vmem:[%s4504_s25 + $0x12e] sm:$0xff] }
 0x1f0   : > { %1426 = vrot.lane.b32.xlu0 %v5289_v42, %s6237_s24  ;;  %v2648_v17 = vld [vmem:[#allocation3 + $0x30] ss:$2 sm:$0xff]  ;;  %v2684_v18 = vld [vmem:[#allocation3 + $0x31] ss:$2 sm:$0xff] }
 0x1f1   : > { %v2716_v20 = vmax.f32 %v2648_v17, %v2684_v18  ;;  %v2060_v21 = vpop.permute.xlu1 %2059 }
 0x1f2   : > { %v1845_v23 = vpop.permute.xlu0 %1844  ;;  %2148 = vst.msk [vmem:[#allocation2 + $0xa0] sm:$0xff] %vm2127_vm8, %v2060_v21  ;;  %v462_v21 = vld [vmem:[%s4504_s25 + $0x122] sm:$0xff] }
 0x1f3   : > { %1932 = vst.msk [vmem:[#allocation2 + $0xa8] sm:$0xff] %vm1910_vm7, %v1845_v23  ;;  %994 = vrot.lane.b32.xlu1 %v5351_v19, %s4390_s28 }
 0x1f4   : > { %2734 = vst.msk [vmem:[#allocation4 + $0x18] sm:$0xff] %vm333_vm0, %v2716_v20  ;;  %779 = vrot.lane.b32.xlu0 %v5300_v47, %s6232_s26  ;;  %v1976_v47 = vld [vmem:[%s4504_s25 + $0x11f] sm:$0xff]  ;;  %v1112_v20 = vld [vmem:[%s4504_s25 + $0x12c] sm:$0xff] }
 0x1f5   : > { %v1198_v26 = vpop.permute.xlu1 %1197 }
 0x1f6   : > { %v549_v27 = vpop.permute.xlu0 %548  ;;  %1283 = vst.msk [vmem:[#allocation2 + $0xb8] sm:$0xff] %vm1259_vm4, %v1198_v26 }
 0x1f7   : > { %633 = vst.msk [vmem:[#allocation2 + $0xc0] sm:$0xff] %vm608_vm1, %v549_v27  ;;  %1858 = vrot.lane.b32.xlu1 %v1758_v24, %s4394_s22 }
 0x1f8   : > { %1643 = vrot.lane.b32.xlu0 %v5362_v25, %s6230_s16 }
 0x1f9   : > { %v2062_v31 = vpop.permute.xlu1 %2061  ;;  %v2184_v33 = vld [vmem:[#allocation2 + $0xa0] sm:$0xff] }
 0x1fa   : > { %v1413_v32 = vpop.permute.xlu0 %1412  ;;  %2149 = vst.msk [vmem:[#allocation2 + $0xa8] sm:$0xff] %vm2127_vm8, %v2062_v31  ;;  %4212 = vmatprep.mubr.msk.f32.mxu0 %vm2216_vm9, %v2184_v33 }
 0x1fb   : > { %1499 = vst.msk [vmem:[#allocation2 + $0xb0] sm:$0xff] %vm1476_vm5, %v1413_v32  ;;  %1211 = vrot.lane.b32.xlu1 %v1109_v29, %s4391_s29  ;;  %v2753_v12 = vld [vmem:[#allocation4 + $0x12] sm:$0xff] }
 0x1fc   : > { %996 = vrot.lane.b32.xlu0 %v5373_v30, %s4390_s28  ;;  %v1978_v29 = vld [vmem:[%s4504_s25 + $0x12f] sm:$0xff] }
 0x1fd   : > { %v766_v36 = vpop.permute.xlu1 %765 }
 0x1fe   : > { %v551_v37 = vpop.permute.xlu0 %550  ;;  %850 = vst.msk [vmem:[#allocation2 + $0xc0] sm:$0xff] %vm825_vm2, %v766_v36  ;;  %v463_v36 = vld [vmem:[%s4504_s25 + $0x12a] sm:$0xff] }
 0x1ff   : > { %634 = vst.msk [vmem:[#allocation2 + $0xc8] sm:$0xff] %vm608_vm1, %v551_v37  ;;  %2075 = vrot.lane.b32.xlu1 %v1975_v34, %s4395_s23 }
 0x200   : > { %1860 = vrot.lane.b32.xlu0 %v1759_v35, %s4394_s22 }
 0x201   : > { %v1630_v41 = vpop.permute.xlu1 %1629  ;;  %v2185_v43 = vld [vmem:[#allocation2 + $0xa8] sm:$0xff] }
 0x202   : > { %v1415_v42 = vpop.permute.xlu0 %1414  ;;  %1716 = vst.msk [vmem:[#allocation2 + $0xb0] sm:$0xff] %vm1693_vm6, %v1630_v41  ;;  %v4196_v44 = vpop.f32.mrf.mxu0  ;;  %4213 = vmatmul.mubr.msk.f32.gmra.mxu0 %vm2216_vm9, %v2185_v43 }
 0x203   : > { %1500 = vst.msk [vmem:[#allocation2 + $0xb8] sm:$0xff] %vm1476_vm5, %v1415_v42  ;;  %v2437_v45 = vadd.f32 %v4196_v44, %v5101_v57  ;;  %1213 = vrot.lane.b32.xlu1 %v1110_v39, %s4391_s29  ;;  %v1545_v39 = vld [vmem:[%s4504_s25 + $0x135] sm:$0xff] }
 0x204   : > { %564 = vrot.lane.b32.xlu0 %v460_v40, %s4389_s27  ;;  %v2431_v46 = vpop.f32.mrf.mxu0  ;;  %v896_v44 = vld [vmem:[%s4504_s25 + $0x133] sm:$0xff] }
 0x205   : > { %v2579_v48 = vmax.f32 %v2437_v45, 0.0  ;;  %v2432_v49 = vadd.f32 %v5101_v57, %v2431_v46  ;;  %v983_v50 = vpop.permute.xlu1 %982 }
 0x206   : > { %v768_v51 = vpop.permute.xlu0 %767  ;;  %1067 = vst.msk [vmem:[#allocation2 + $0xc0] sm:$0xff] %vm1042_vm3, %v983_v50 }
 0x207   : > { %851 = vst.msk [vmem:[#allocation2 + $0xc8] sm:$0xff] %vm825_vm2, %v768_v51  ;;  %v2578_v52 = vmax.f32 %v2432_v49, 0.0  ;;  %2077 = vrot.lane.b32.xlu1 %v1976_v47, %s4395_s23  ;;  %v1546_v49 = vld [vmem:[%s4504_s25 + $0x13d] sm:$0xff] }
 0x208   : > { %2615 = vst.msk [vmem:[#allocation3 + $0x48] sm:$0xff] %vm333_vm0, %v2579_v48  ;;  %1428 = vrot.lane.b32.xlu0 %v5342_v14, %s6237_s24  ;;  %v1762_v48 = vld [vmem:[%s4504_s25 + $0x136] sm:$0xff] }
 0x209   : > { %2614 = vst.msk [vmem:[#allocation3 + $0x40] sm:$0xff] %vm333_vm0, %v2578_v52  ;;  %v1847_v54 = vpop.permute.xlu1 %1846  ;;  %v1113_v52 = vld [vmem:[%s4504_s25 + $0x134] sm:$0xff] }
 0x20a   : > { %v1632_v55 = vpop.permute.xlu0 %1631  ;;  %1933 = vst.msk [vmem:[#allocation2 + $0xb0] sm:$0xff] %vm1910_vm7, %v1847_v54 }
 0x20b   : > { %1717 = vst.msk [vmem:[#allocation2 + $0xb8] sm:$0xff] %vm1693_vm6, %v1632_v55  ;;  %781 = vrot.lane.b32.xlu1 %v5351_v19, %s6232_s26  ;;  %v391_v19 = vld [vmem:[%s4504_s25 + $0x129] sm:$0xff] }
 0x20c   : > { %566 = vrot.lane.b32.xlu0 %v461_v53, %s4389_s27  ;;  %427 = vst.msk [vmem:[#allocation2 + $0x118] sm:$0xff] %vm333_vm0, %v391_v19  ;;  %v897_v53 = vld [vmem:[%s4504_s25 + $0x13b] sm:$0xff]  ;;  %v1981_v19 = vld [vmem:[%s4504_s25 + $0x147] sm:$0xff] }
 0x20d   : > { %v1200_v58 = vpop.permute.xlu1 %1199 }
 0x20e   : > { %v985_v59 = vpop.permute.xlu0 %984  ;;  %1284 = vst.msk [vmem:[#allocation2 + $0xc0] sm:$0xff] %vm1259_vm4, %v1200_v58  ;;  %v1979_v58 = vld [vmem:[%s4504_s25 + $0x137] sm:$0xff] }
 0x20f   : > { %1068 = vst.msk [vmem:[#allocation2 + $0xc8] sm:$0xff] %vm1042_vm3, %v985_v59  ;;  %1645 = vrot.lane.b32.xlu1 %v5413_v56, %s6230_s16  ;;  %v1763_v59 = vld [vmem:[%s4504_s25 + $0x13e] sm:$0xff] }
 0x210   : > { %1430 = vrot.lane.b32.xlu0 %v5362_v25, %s6237_s24  ;;  %v2650_v60 = vld [vmem:[#allocation3 + $0x40] ss:$2 sm:$0xff]  ;;  %v2686_v61 = vld [vmem:[#allocation3 + $0x41] ss:$2 sm:$0xff] }
 0x211   : > { %v2717_v63 = vmax.f32 %v2650_v60, %v2686_v61  ;;  %v2064_v0 = vpop.permute.xlu1 %2063 }
 0x212   : > { %v1849_v1 = vpop.permute.xlu0 %1848  ;;  %2150 = vst.msk [vmem:[#allocation2 + $0xb0] sm:$0xff] %vm2127_vm8, %v2064_v0 }
 0x213   : > { %1934 = vst.msk [vmem:[#allocation2 + $0xb8] sm:$0xff] %vm1910_vm7, %v1849_v1  ;;  %998 = vrot.lane.b32.xlu1 %v5422_v62, %s4390_s28 }
 0x214   : > { %2735 = vst.msk [vmem:[#allocation4 + $0x20] sm:$0xff] %vm333_vm0, %v2717_v63  ;;  %783 = vrot.lane.b32.xlu0 %v5373_v30, %s6232_s26 }
 0x215   : > { %v1202_v4 = vpop.permute.xlu1 %1201 }
 0x216   : > { %v553_v5 = vpop.permute.xlu0 %552  ;;  %1285 = vst.msk [vmem:[#allocation2 + $0xc8] sm:$0xff] %vm1259_vm4, %v1202_v4 }
 0x217   : > { %635 = vst.msk [vmem:[#allocation2 + $0xd0] sm:$0xff] %vm608_vm1, %v553_v5  ;;  %1862 = vrot.lane.b32.xlu1 %v1760_v2, %s4394_s22  ;;  %v1980_v5 = vld [vmem:[%s4504_s25 + $0x13f] sm:$0xff] }
 0x218   : > { %1647 = vrot.lane.b32.xlu0 %v5433_v3, %s6230_s16 }
 0x219   : > { %v2066_v9 = vpop.permute.xlu1 %2065  ;;  %v2186_v11 = vld [vmem:[#allocation2 + $0xb0] sm:$0xff] }
 0x21a   : > { %v1417_v10 = vpop.permute.xlu0 %1416  ;;  %2151 = vst.msk [vmem:[#allocation2 + $0xb8] sm:$0xff] %vm2127_vm8, %v2066_v9  ;;  %4215 = vmatprep.mubr.msk.f32.mxu0 %vm2216_vm9, %v2186_v11  ;;  %v1548_v11 = vld [vmem:[%s4504_s25 + $0x14d] sm:$0xff] }
 0x21b   : > { %1501 = vst.msk [vmem:[#allocation2 + $0xc0] sm:$0xff] %vm1476_vm5, %v1417_v10  ;;  %v2754_v13 = vld [vmem:[#allocation4 + $0x1b] sm:$0xff]  ;;  %1215 = vrot.lane.b32.xlu1 %v1111_v7, %s4391_s29 }
 0x21c   : > { %1000 = vrot.lane.b32.xlu0 %v5444_v8, %s4390_s28  ;;  %v2755_v14 = vmax.f32 %v2753_v12, %v2754_v13  ;;  %v1547_v12 = vld [vmem:[%s4504_s25 + $0x145] sm:$0xff] }
 0x21d   : > { %v770_v17 = vpop.permute.xlu1 %769 }
 0x21e   : > { %v555_v18 = vpop.permute.xlu0 %554  ;;  %2756 = vst.msk [vmem:[#allocation5 + $0x1e] sm:$0xff] %vm333_vm0, %v2755_v14  ;;  %v1765_v14 = vld [vmem:[%s4504_s25 + $0x14e] sm:$0xff] }
 0x21f   : > { %852 = vst.msk [vmem:[#allocation2 + $0xd0] sm:$0xff] %vm825_vm2, %v770_v17  ;;  %2079 = vrot.lane.b32.xlu1 %v1977_v15, %s4395_s23  ;;  %v1764_v15 = vld [vmem:[%s4504_s25 + $0x146] sm:$0xff] }
 0x220   : > { %636 = vst.msk [vmem:[#allocation2 + $0xd8] sm:$0xff] %vm608_vm1, %v555_v18  ;;  %1864 = vrot.lane.b32.xlu0 %v1761_v16, %s4394_s22  ;;  %v1982_v18 = vld [vmem:[%s4504_s25 + $0x14f] sm:$0xff] }
 0x221   : > { %v1634_v23 = vpop.permute.xlu1 %1633  ;;  %v2187_v25 = vld [vmem:[#allocation2 + $0xb8] sm:$0xff] }
 0x222   : > { %v1419_v24 = vpop.permute.xlu0 %1418  ;;  %1718 = vst.msk [vmem:[#allocation2 + $0xc0] sm:$0xff] %vm1693_vm6, %v1634_v23  ;;  %v4199_v26 = vpop.f32.mrf.mxu0  ;;  %4216 = vmatmul.mubr.msk.f32.gmra.mxu0 %vm2216_vm9, %v2187_v25  ;;  %v2781_v23 = vld [vmem:[#allocation5 + $0x9] sm:$0xff] }
 0x223   : > { %1502 = vst.msk [vmem:[#allocation2 + $0xc8] sm:$0xff] %vm1476_vm5, %v1419_v24  ;;  %v2447_v27 = vadd.f32 %v4199_v26, %v5101_v57  ;;  %1217 = vrot.lane.b32.xlu1 %v1112_v20, %s4391_s29 }
 0x224   : > { %568 = vrot.lane.b32.xlu0 %v462_v21, %s4389_s27  ;;  %v2441_v28 = vpop.f32.mrf.mxu0  ;;  %2791 = vst.msk [vmem:[#allocation6] sm:$0xff] %vm333_vm0, %v2781_v23 }
 0x225   : > { %v2581_v30 = vmax.f32 %v2447_v27, 0.0  ;;  %v2442_v31 = vadd.f32 %v5101_v57, %v2441_v28  ;;  %v987_v32 = vpop.permute.xlu1 %986  ;;  %v2783_v34 = vld [vmem:[#allocation5 + $0x19] sm:$0xff]  ;;  %v2801_v27 = vld [vmem:[#allocation5 + $0xa] sm:$0xff] }
 0x226   : > { %v772_v33 = vpop.permute.xlu0 %771  ;;  %1069 = vst.msk [vmem:[#allocation2 + $0xd0] sm:$0xff] %vm1042_vm3, %v987_v32 }
 0x227   : > { %853 = vst.msk [vmem:[#allocation2 + $0xd8] sm:$0xff] %vm825_vm2, %v772_v33  ;;  %v2580_v35 = vmax.f32 %v2442_v31, 0.0  ;;  %2081 = vrot.lane.b32.xlu1 %v1978_v29, %s4395_s23  ;;  %v2861_v31 = vld [vmem:[#allocation5 + $0xb] sm:$0xff] }
 0x228   : > { %2617 = vst.msk [vmem:[#allocation3 + $0x58] sm:$0xff] %vm333_vm0, %v2581_v30  ;;  %1432 = vrot.lane.b32.xlu0 %v5413_v56, %s6237_s24  ;;  %2793 = vst.msk [vmem:[#allocation6 + $0x10] sm:$0xff] %vm333_vm0, %v2783_v34  ;;  %v2802_v30 = vld [vmem:[#allocation5 + $0x12] sm:$0xff] }
 0x229   : > { %2616 = vst.msk [vmem:[#allocation3 + $0x50] sm:$0xff] %vm333_vm0, %v2580_v35  ;;  %v1851_v37 = vpop.permute.xlu1 %1850  ;;  %v2862_v35 = vld [vmem:[#allocation5 + $0x13] sm:$0xff] }
 0x22a   : > { %v1636_v38 = vpop.permute.xlu0 %1635  ;;  %1935 = vst.msk [vmem:[#allocation2 + $0xc0] sm:$0xff] %vm1910_vm7, %v1851_v37 }
 0x22b   : > { %1719 = vst.msk [vmem:[#allocation2 + $0xc8] sm:$0xff] %vm1693_vm6, %v1636_v38  ;;  %785 = vrot.lane.b32.xlu1 %v5422_v62, %s6232_s26  ;;  %v1114_v62 = vld [vmem:[%s4504_s25 + $0x13c] sm:$0xff]  ;;  %s4397_s25 = smov 80  }
 0x22c   : > { %570 = vrot.lane.b32.xlu0 %v463_v36, %s4389_s27 }
 0x22d   : > { %v1204_v40 = vpop.permute.xlu1 %1203 }
 0x22e   : > { %v989_v41 = vpop.permute.xlu0 %988  ;;  %1286 = vst.msk [vmem:[#allocation2 + $0xd0] sm:$0xff] %vm1259_vm4, %v1204_v40 }
 0x22f   : > { %1070 = vst.msk [vmem:[#allocation2 + $0xd8] sm:$0xff] %vm1042_vm3, %v989_v41  ;;  %1649 = vrot.lane.b32.xlu1 %v1545_v39, %s6230_s16  ;;  %v2922_v41 = vld [vmem:[#allocation5 + $0x1b] sm:$0xff] }
 0x230   : > { %1434 = vrot.lane.b32.xlu0 %v5433_v3, %s6237_s24  ;;  %v2652_v42 = vld [vmem:[#allocation3 + $0x50] ss:$2 sm:$0xff]  ;;  %v2688_v43 = vld [vmem:[#allocation3 + $0x51] ss:$2 sm:$0xff] }
 0x231   : > { %v2718_v45 = vmax.f32 %v2652_v42, %v2688_v43  ;;  %v2068_v46 = vpop.permute.xlu1 %2067 }
 0x232   : > { %v1853_v47 = vpop.permute.xlu0 %1852  ;;  %2152 = vst.msk [vmem:[#allocation2 + $0xc0] sm:$0xff] %vm2127_vm8, %v2068_v46  ;;  %v2981_v46 = vld [vmem:[#allocation5 + $0x14] sm:$0xff] }
 0x233   : > { %1936 = vst.msk [vmem:[#allocation2 + $0xc8] sm:$0xff] %vm1910_vm7, %v1853_v47  ;;  %1002 = vrot.lane.b32.xlu1 %v896_v44, %s4390_s28  ;;  %v2803_v47 = vld [vmem:[#allocation5 + $0x1a] sm:$0xff] }
 0x234   : > { %2736 = vst.msk [vmem:[#allocation4 + $0x28] sm:$0xff] %vm333_vm0, %v2718_v45  ;;  %787 = vrot.lane.b32.xlu0 %v5444_v8, %s6232_s26 }
 0x235   : > { %v1206_v50 = vpop.permute.xlu1 %1205 }
 0x236   : > { %v557_v51 = vpop.permute.xlu0 %556  ;;  %1287 = vst.msk [vmem:[#allocation2 + $0xd8] sm:$0xff] %vm1259_vm4, %v1206_v50 }
 0x237   : > { %637 = vst.msk [vmem:[#allocation2 + $0xe0] sm:$0xff] %vm608_vm1, %v557_v51  ;;  %1866 = vrot.lane.b32.xlu1 %v1762_v48, %s4394_s22  ;;  %v5572_v48 = vld [vmem:[%s6220_s2] ss:$0 sm:$0xff] }
 0x238   : > { %1651 = vrot.lane.b32.xlu0 %v1546_v49, %s6230_s16 }
 0x239   : > { %v2070_v54 = vpop.permute.xlu1 %2069  ;;  %v2188_v56 = vld [vmem:[#allocation2 + $0xc0] sm:$0xff] }
 0x23a   : > { %v1421_v55 = vpop.permute.xlu0 %1420  ;;  %2153 = vst.msk [vmem:[#allocation2 + $0xc8] sm:$0xff] %vm2127_vm8, %v2070_v54  ;;  %4218 = vmatprep.mubr.msk.f32.mxu0 %vm2216_vm9, %v2188_v56  ;;  %v2982_v56 = vld [vmem:[#allocation5 + $0x1c] sm:$0xff] }
 0x23b   : > { %1503 = vst.msk [vmem:[#allocation2 + $0xd0] sm:$0xff] %vm1476_vm5, %v1421_v55  ;;  %1219 = vrot.lane.b32.xlu1 %v1113_v52, %s4391_s29  ;;  %v2757_v36 = vld [vmem:[#allocation4 + $0x24] sm:$0xff] }
 0x23c   : > { %1004 = vrot.lane.b32.xlu0 %v897_v53, %s4390_s28  ;;  %v3041_v55 = vld [vmem:[#allocation5 + $0x15] sm:$0xff] }
 0x23d   : > { %v774_v60 = vpop.permute.xlu1 %773 }
 0x23e   : > { %v559_v61 = vpop.permute.xlu0 %558  ;;  %854 = vst.msk [vmem:[#allocation2 + $0xe0] sm:$0xff] %vm825_vm2, %v774_v60 }
 0x23f   : > { %638 = vst.msk [vmem:[#allocation2 + $0xe8] sm:$0xff] %vm608_vm1, %v559_v61  ;;  %2083 = vrot.lane.b32.xlu1 %v1979_v58, %s4395_s23 }
 0x240   : > { %1868 = vrot.lane.b32.xlu0 %v1763_v59, %s4394_s22 }
 0x241   : > { %v1638_v63 = vpop.permute.xlu1 %1637  ;;  %v2189_v1 = vld [vmem:[#allocation2 + $0xc8] sm:$0xff] }
 0x242   : > { %v1423_v0 = vpop.permute.xlu0 %1422  ;;  %1720 = vst.msk [vmem:[#allocation2 + $0xd0] sm:$0xff] %vm1693_vm6, %v1638_v63  ;;  %v4202_v2 = vpop.f32.mrf.mxu0  ;;  %4219 = vmatmul.mubr.msk.f32.gmra.mxu0 %vm2216_vm9, %v2189_v1 }
 0x243   : > { %1504 = vst.msk [vmem:[#allocation2 + $0xd8] sm:$0xff] %vm1476_vm5, %v1423_v0  ;;  %v2457_v3 = vadd.f32 %v4202_v2, %v5101_v57  ;;  %1436 = vrot.lane.b32.xlu1 %v1545_v39, %s6237_s24  ;;  %v3042_v2 = vld [vmem:[#allocation5 + $0x1d] sm:$0xff] }
 0x244   : > { %1221 = vrot.lane.b32.xlu0 %v1114_v62, %s4391_s29  ;;  %v2451_v4 = vpop.f32.mrf.mxu0 }
 0x245   : > { %v2583_v6 = vmax.f32 %v2457_v3, 0.0  ;;  %v2452_v7 = vadd.f32 %v5101_v57, %v2451_v4  ;;  %v991_v8 = vpop.permute.xlu1 %990 }
 0x246   : > { %v776_v9 = vpop.permute.xlu0 %775  ;;  %1071 = vst.msk [vmem:[#allocation2 + $0xe0] sm:$0xff] %vm1042_vm3, %v991_v8 }
 0x247   : > { %855 = vst.msk [vmem:[#allocation2 + $0xe8] sm:$0xff] %vm825_vm2, %v776_v9  ;;  %v2582_v10 = vmax.f32 %v2452_v7, 0.0  ;;  %1438 = vrot.lane.b32.xlu1 %v1546_v49, %s6237_s24 }
 0x248   : > { %2619 = vst.msk [vmem:[#allocation3 + $0x68] sm:$0xff] %vm333_vm0, %v2583_v6  ;;  %2085 = vrot.lane.b32.xlu0 %v1980_v5, %s4395_s23 }
 0x249   : > { %2618 = vst.msk [vmem:[#allocation3 + $0x60] sm:$0xff] %vm333_vm0, %v2582_v10  ;;  %v1855_v57 = vpop.permute.xlu1 %1854 }
 0x24a   : > { %v1640_v13 = vpop.permute.xlu0 %1639  ;;  %1937 = vst.msk [vmem:[#allocation2 + $0xd0] sm:$0xff] %vm1910_vm7, %v1855_v57 }
 0x24b   : > { %1721 = vst.msk [vmem:[#allocation2 + $0xd8] sm:$0xff] %vm1693_vm6, %v1640_v13  ;;  %1655 = vrot.lane.b32.xlu1 %v1548_v11, %s6230_s16 }
 0x24c   : > { %1653 = vrot.lane.b32.xlu0 %v1547_v12, %s6230_s16  ;;  %v3161_v12 = vld [vmem:[#allocation5 + $0x1e] sm:$0xff] }
 0x24d   : > { %v1208_v16 = vpop.permute.xlu1 %1207 }
 0x24e   : > { %v993_v17 = vpop.permute.xlu0 %992  ;;  %1288 = vst.msk [vmem:[#allocation2 + $0xe0] sm:$0xff] %vm1259_vm4, %v1208_v16 }
 0x24f   : > { %1072 = vst.msk [vmem:[#allocation2 + $0xe8] sm:$0xff] %vm1042_vm3, %v993_v17  ;;  %1872 = vrot.lane.b32.xlu1 %v1765_v14, %s4394_s22 }
 0x250   : > { %1870 = vrot.lane.b32.xlu0 %v1764_v15, %s4394_s22  ;;  %v2654_v20 = vld [vmem:[#allocation3 + $0x60] ss:$2 sm:$0xff]  ;;  %v2690_v21 = vld [vmem:[#allocation3 + $0x61] ss:$2 sm:$0xff] }
 0x251   : > { %v2719_v24 = vmax.f32 %v2654_v20, %v2690_v21  ;;  %v2072_v25 = vpop.permute.xlu1 %2071 }
 0x252   : > { %v1857_v26 = vpop.permute.xlu0 %1856  ;;  %2154 = vst.msk [vmem:[#allocation2 + $0xd0] sm:$0xff] %vm2127_vm8, %v2072_v25 }
 0x253   : > { %1938 = vst.msk [vmem:[#allocation2 + $0xd8] sm:$0xff] %vm1910_vm7, %v1857_v26  ;;  %2089 = vrot.lane.b32.xlu1 %v1982_v18, %s4395_s23  ;;  %v3221_v18 = vld [vmem:[#allocation5 + $0x1f] sm:$0xff] }
 0x254   : > { %2737 = vst.msk [vmem:[#allocation4 + $0x30] sm:$0xff] %vm333_vm0, %v2719_v24  ;;  %2087 = vrot.lane.b32.xlu0 %v1981_v19, %s4395_s23 }
 0x255   : > { %v1210_v28 = vpop.permute.xlu1 %1209 }
 0x256   : > { %v561_v29 = vpop.permute.xlu0 %560  ;;  %1289 = vst.msk [vmem:[#allocation2 + $0xe8] sm:$0xff] %vm1259_vm4, %v1210_v28 }
 0x257   : > { %639 = vst.msk [vmem:[#allocation2 + $0xf0] sm:$0xff] %vm608_vm1, %v561_v29  ;;  %2823 = vrot.lane.b32.xlu1 %v2802_v30, %s4389_s27 }
 0x258   : > { %2821 = vrot.lane.b32.xlu0 %v2801_v27, %s4389_s27 }
 0x259   : > { %v2074_v32 = vpop.permute.xlu1 %2073  ;;  %v2190_v34 = vld [vmem:[#allocation2 + $0xd0] sm:$0xff] }
 0x25a   : > { %v1425_v33 = vpop.permute.xlu0 %1424  ;;  %2155 = vst.msk [vmem:[#allocation2 + $0xd8] sm:$0xff] %vm2127_vm8, %v2074_v32  ;;  %4221 = vmatprep.mubr.msk.f32.mxu0 %vm2216_vm9, %v2190_v34 }
 0x25b   : > { %1505 = vst.msk [vmem:[#allocation2 + $0xe0] sm:$0xff] %vm1476_vm5, %v1425_v33  ;;  %v2758_v37 = vld [vmem:[#allocation4 + $0x2d] sm:$0xff]  ;;  %2883 = vrot.lane.b32.xlu1 %v2862_v35, %s6232_s26 }
 0x25c   : > { %2881 = vrot.lane.b32.xlu0 %v2861_v31, %s6232_s26  ;;  %v2759_v38 = vmax.f32 %v2757_v36, %v2758_v37 }
 0x25d   : > { %v778_v39 = vpop.permute.xlu1 %777 }
 0x25e   : > { %v563_v40 = vpop.permute.xlu0 %562  ;;  %2760 = vst.msk [vmem:[#allocation5 + $0x28] sm:$0xff] %vm333_vm0, %v2759_v38 }
 0x25f   : > { %856 = vst.msk [vmem:[#allocation2 + $0xf0] sm:$0xff] %vm825_vm2, %v778_v39  ;;  %2943 = vrot.lane.b32.xlu1 %v2922_v41, %s4390_s28 }
 0x260   : > { %640 = vst.msk [vmem:[#allocation2 + $0xf8] sm:$0xff] %vm608_vm1, %v563_v40  ;;  %2941 = vrot.lane.b32.xlu0 %v2862_v35, %s4390_s28  ;;  %v3299_v40 = vld [vmem:[%s6221_s3 + $0x40] sm:$0xff] }
 0x261   : > { %v1642_v42 = vpop.permute.xlu1 %1641  ;;  %v2191_v44 = vld [vmem:[#allocation2 + $0xd8] sm:$0xff]  ;;  %4236 = vmatprep.subr.mxu1 %v3299_v40 }
 0x262   : > { %v1427_v43 = vpop.permute.xlu0 %1426  ;;  %1722 = vst.msk [vmem:[#allocation2 + $0xe0] sm:$0xff] %vm1693_vm6, %v1642_v42  ;;  %v4205_v45 = vpop.f32.mrf.mxu0  ;;  %4222 = vmatmul.mubr.msk.f32.gmra.mxu0 %vm2216_vm9, %v2191_v44  ;;  %4237 = vmatpush3.msra.mxu1 %v3299_v40  ;;  %v3297_v44 = vld [vmem:[%s6221_s3 + $0x30] sm:$0xff] }
 0x263   : > { %1506 = vst.msk [vmem:[#allocation2 + $0xe8] sm:$0xff] %vm1476_vm5, %v1427_v43  ;;  %v2467_v49 = vadd.f32 %v5572_v48, %v4205_v45  ;;  %2825 = vrot.lane.b32.xlu1 %v2803_v47, %s4389_s27 }
 0x264   : > { %3001 = vrot.lane.b32.xlu0 %v2981_v46, %s4391_s29  ;;  %v2461_v50 = vpop.f32.mrf.mxu0 }
 0x265   : > { %v2585_v51 = vmax.f32 %v2467_v49, 0.0  ;;  %v2462_v52 = vadd.f32 %v5572_v48, %v2461_v50  ;;  %v995_v53 = vpop.permute.xlu1 %994  ;;  %v2784_v58 = vld [vmem:[#allocation5 + $0x21] sm:$0xff]  ;;  %v2785_v59 = vld [vmem:[#allocation5 + $0x29] sm:$0xff]  ;;  %v3296_v49 = vld [vmem:[%s6221_s3 + $0x28] sm:$0xff] }
 0x266   : > { %v780_v54 = vpop.permute.xlu0 %779  ;;  %1073 = vst.msk [vmem:[#allocation2 + $0xf0] sm:$0xff] %vm1042_vm3, %v995_v53  ;;  %v2804_v63 = vld [vmem:[#allocation5 + $0x22] sm:$0xff]  ;;  %v3295_v50 = vld [vmem:[%s6221_s3 + $0x20] sm:$0xff] }
 0x267   : > { %857 = vst.msk [vmem:[#allocation2 + $0xf8] sm:$0xff] %vm825_vm2, %v780_v54  ;;  %v2584_v60 = vmax.f32 %v2462_v52, 0.0  ;;  %3061 = vrot.lane.b32.xlu1 %v3041_v55, %s6237_s24  ;;  %v2864_v8 = vld [vmem:[#allocation5 + $0x23] sm:$0xff] }
 0x268   : > { %2621 = vst.msk [vmem:[#allocation3 + $0x78] sm:$0xff] %vm333_vm0, %v2585_v51  ;;  %3003 = vrot.lane.b32.xlu0 %v2982_v56, %s4391_s29  ;;  %2794 = vst.msk [vmem:[#allocation6 + $0x18] sm:$0xff] %vm333_vm0, %v2784_v58  ;;  %v5601_v11 = vld [vmem:[#allocation5 + $0x25] sm:$0xff] }
 0x269   : > { %2795 = vst.msk [vmem:[#allocation6 + $0x20] sm:$0xff] %vm333_vm0, %v2785_v59  ;;  %2620 = vst.msk [vmem:[#allocation3 + $0x70] sm:$0xff] %vm333_vm0, %v2584_v60  ;;  %v1859_v61 = vpop.permute.xlu1 %1858  ;;  %v2983_v15 = vld [vmem:[#allocation5 + $0x24] sm:$0xff] }
 0x26a   : > { %v1644_v62 = vpop.permute.xlu0 %1643  ;;  %1939 = vst.msk [vmem:[#allocation2 + $0xe0] sm:$0xff] %vm1910_vm7, %v1859_v61  ;;  %v3294_v56 = vld [vmem:[%s6221_s3 + $0x18] sm:$0xff]  ;;  %v3293_v58 = vld [vmem:[%s6221_s3 + $0x10] sm:$0xff] }
 0x26b   : > { %1723 = vst.msk [vmem:[#allocation2 + $0xe8] sm:$0xff] %vm1693_vm6, %v1644_v62  ;;  %2885 = vrot.lane.b32.xlu1 %v2922_v41, %s6232_s26  ;;  %v3298_v41 = vld [vmem:[%s6221_s3 + $0x38] sm:$0xff]  ;;  %v3292_v62 = vld [vmem:[%s6221_s3 + $0x8] sm:$0xff] }
 0x26c   : > { %2827 = vrot.lane.b32.xlu0 %v2804_v63, %s4389_s27  ;;  %4238 = vmatprep.subr.mxu1 %v3298_v41 }
 0x26d   : > { %v1212_v0 = vpop.permute.xlu1 %1211  ;;  %4239 = vmatpush3.msra.mxu1 %v3298_v41 }
 0x26e   : > { %v997_v1 = vpop.permute.xlu0 %996  ;;  %1290 = vst.msk [vmem:[#allocation2 + $0xf0] sm:$0xff] %vm1259_vm4, %v1212_v0  ;;  %4240 = vmatprep.subr.mxu1 %v3297_v44 }
 0x26f   : > { %1074 = vst.msk [vmem:[#allocation2 + $0xf8] sm:$0xff] %vm1042_vm3, %v997_v1  ;;  %3121 = vrot.lane.b32.xlu1 %v3042_v2, %s6230_s16  ;;  %4241 = vmatpush3.msra.mxu1 %v3297_v44 }
 0x270   : > { %3063 = vrot.lane.b32.xlu0 %v3042_v2, %s6237_s24  ;;  %v2656_v3 = vld [vmem:[#allocation3 + $0x70] ss:$2 sm:$0xff]  ;;  %v2692_v4 = vld [vmem:[#allocation3 + $0x71] ss:$2 sm:$0xff]  ;;  %4242 = vmatprep.subr.mxu1 %v3296_v49 }
 0x271   : > { %v2720_v5 = vmax.f32 %v2656_v3, %v2692_v4  ;;  %v2076_v6 = vpop.permute.xlu1 %2075  ;;  %4243 = vmatpush3.msra.mxu1 %v3296_v49 }
 0x272   : > { %v1861_v7 = vpop.permute.xlu0 %1860  ;;  %2156 = vst.msk [vmem:[#allocation2 + $0xe0] sm:$0xff] %vm2127_vm8, %v2076_v6  ;;  %4244 = vmatprep.subr.mxu1 %v3295_v50 }
 0x273   : > { %1940 = vst.msk [vmem:[#allocation2 + $0xe8] sm:$0xff] %vm1910_vm7, %v1861_v7  ;;  %2945 = vrot.lane.b32.xlu1 %v2864_v8, %s4390_s28  ;;  %4245 = vmatpush3.msra.mxu1 %v3295_v50 }
 0x274   : > { %2738 = vst.msk [vmem:[#allocation4 + $0x38] sm:$0xff] %vm333_vm0, %v2720_v5  ;;  %2887 = vrot.lane.b32.xlu0 %v2864_v8, %s6232_s26  ;;  %4246 = vmatprep.subr.mxu1 %v3294_v56  ;;  %v3291_v8 = vld [vmem:[%s6221_s3] sm:$0xff] }
 0x275   : > { %v1214_v9 = vpop.permute.xlu1 %1213  ;;  %4247 = vmatpush3.msra.mxu1 %v3294_v56 }
 0x276   : > { %v565_v10 = vpop.permute.xlu0 %564  ;;  %1291 = vst.msk [vmem:[#allocation2 + $0xf8] sm:$0xff] %vm1259_vm4, %v1214_v9  ;;  %4248 = vmatprep.subr.mxu1 %v3293_v58 }
 0x277   : > { %641 = vst.msk [vmem:[#allocation2 + $0x100] sm:$0xff] %vm608_vm1, %v565_v10  ;;  %3181 = vrot.lane.b32.xlu1 %v3161_v12, %s4394_s22  ;;  %4249 = vmatpush3.msra.mxu1 %v3293_v58  ;;  %v3162_v12 = vld [vmem:[#allocation5 + $0x26] sm:$0xff] }
 0x278   : > { %3123 = vrot.lane.b32.xlu0 %v5601_v11, %s6230_s16  ;;  %4250 = vmatprep.subr.mxu1 %v3292_v62  ;;  %s6240_s16 = smov 96  }
 0x279   : > { %v2078_v57 = vpop.permute.xlu1 %2077  ;;  %v2192_v14 = vld [vmem:[#allocation2 + $0xe0] sm:$0xff]  ;;  %4251 = vmatpush3.msra.mxu1 %v3292_v62 }
 0x27a   : > { %v1429_v13 = vpop.permute.xlu0 %1428  ;;  %2157 = vst.msk [vmem:[#allocation2 + $0xe8] sm:$0xff] %vm2127_vm8, %v2078_v57  ;;  %4224 = vmatprep.mubr.msk.f32.mxu0 %vm2216_vm9, %v2192_v14  ;;  %4252 = vmatprep.subr.mxu1 %v3291_v8  ;;  %v3222_v57 = vld [vmem:[#allocation5 + $0x27] sm:$0xff] }
 0x27b   : > { %1507 = vst.msk [vmem:[#allocation2 + $0xf0] sm:$0xff] %vm1476_vm5, %v1429_v13  ;;  %3005 = vrot.lane.b32.xlu1 %v2983_v15, %s4391_s29  ;;  %v2761_v51 = vld [vmem:[#allocation4 + $0x36] sm:$0xff]  ;;  %4253 = vmatpush3.msra.mxu1 %v3291_v8 }
 0x27c   : > { %3703 = vmatprep.subr.mxu1 %v4396_v22  ;;  %v2805_v15 = vld [vmem:[#allocation5 + $0x2a] sm:$0xff] }
 0x27d   : > { %v782_v16 = vpop.permute.xlu1 %781 }
 0x27e   : > { %v567_v17 = vpop.permute.xlu0 %566  ;;  %858 = vst.msk [vmem:[#allocation2 + $0x100] sm:$0xff] %vm825_vm2, %v782_v16 }
 0x27f   : > { %642 = vst.msk [vmem:[#allocation2 + $0x108] sm:$0xff] %vm608_vm1, %v567_v17  ;;  %3241 = vrot.lane.b32.xlu1 %v3221_v18, %s4395_s23 }
 0x281   : > { %v1646_v19 = vpop.permute.xlu1 %1645  ;;  %v2193_v21 = vld [vmem:[#allocation2 + $0xe8] sm:$0xff] }
 0x282   : > { %v1431_v20 = vpop.permute.xlu0 %1430  ;;  %1724 = vst.msk [vmem:[#allocation2 + $0xf0] sm:$0xff] %vm1693_vm6, %v1646_v19  ;;  %v4208_v23 = vpop.f32.mrf.mxu0  ;;  %4225 = vmatmul.mubr.msk.f32.gmra.mxu0 %vm2216_vm9, %v2193_v21 }
 0x283   : > { %1508 = vst.msk [vmem:[#allocation2 + $0xf8] sm:$0xff] %vm1476_vm5, %v1431_v20  ;;  %v2477_v24 = vadd.f32 %v5572_v48, %v4208_v23 }
 0x284   : > { %v2471_v25 = vpop.f32.mrf.mxu0 }
 0x285   : > { %v2587_v26 = vmax.f32 %v2477_v24, 0.0  ;;  %v2472_v27 = vadd.f32 %v5572_v48, %v2471_v25  ;;  %v999_v28 = vpop.permute.xlu1 %998 }
 0x286   : > { %v784_v29 = vpop.permute.xlu0 %783  ;;  %1075 = vst.msk [vmem:[#allocation2 + $0x100] sm:$0xff] %vm1042_vm3, %v999_v28 }
 0x287   : > { %859 = vst.msk [vmem:[#allocation2 + $0x108] sm:$0xff] %vm825_vm2, %v784_v29  ;;  %v2586_v30 = vmax.f32 %v2472_v27, 0.0 }
 0x288   : > { %2623 = vst.msk [vmem:[#allocation3 + $0x88] sm:$0xff] %vm333_vm0, %v2587_v26 }
 0x289   : > { %2622 = vst.msk [vmem:[#allocation3 + $0x80] sm:$0xff] %vm333_vm0, %v2586_v30  ;;  %v1863_v31 = vpop.permute.xlu1 %1862 }
 0x28a   : > { %v1648_v32 = vpop.permute.xlu0 %1647  ;;  %1941 = vst.msk [vmem:[#allocation2 + $0xf0] sm:$0xff] %vm1910_vm7, %v1863_v31 }
 0x28b   : > { %1725 = vst.msk [vmem:[#allocation2 + $0xf8] sm:$0xff] %vm1693_vm6, %v1648_v32 }
 0x28d   : > { %v1216_v33 = vpop.permute.xlu1 %1215 }
 0x28e   : > { %v1001_v34 = vpop.permute.xlu0 %1000  ;;  %1292 = vst.msk [vmem:[#allocation2 + $0x100] sm:$0xff] %vm1259_vm4, %v1216_v33 }
 0x28f   : > { %1076 = vst.msk [vmem:[#allocation2 + $0x108] sm:$0xff] %vm1042_vm3, %v1001_v34 }
 0x290   : > { %v2658_v35 = vld [vmem:[#allocation3 + $0x80] ss:$2 sm:$0xff]  ;;  %v2694_v36 = vld [vmem:[#allocation3 + $0x81] ss:$2 sm:$0xff] }
 0x291   : > { %v2721_v37 = vmax.f32 %v2658_v35, %v2694_v36  ;;  %v2080_v38 = vpop.permute.xlu1 %2079 }
 0x292   : > { %v1865_v39 = vpop.permute.xlu0 %1864  ;;  %2158 = vst.msk [vmem:[#allocation2 + $0xf0] sm:$0xff] %vm2127_vm8, %v2080_v38 }
 0x293   : > { %1942 = vst.msk [vmem:[#allocation2 + $0xf8] sm:$0xff] %vm1910_vm7, %v1865_v39 }
 0x294   : > { %2739 = vst.msk [vmem:[#allocation4 + $0x40] sm:$0xff] %vm333_vm0, %v2721_v37 }
 0x295   : > { %v1218_v42 = vpop.permute.xlu1 %1217 }
 0x296   : > { %v569_v43 = vpop.permute.xlu0 %568  ;;  %1293 = vst.msk [vmem:[#allocation2 + $0x108] sm:$0xff] %vm1259_vm4, %v1218_v42 }
 0x297   : > { %643 = vst.msk [vmem:[#allocation2 + $0x110] sm:$0xff] %vm608_vm1, %v569_v43 }
 0x299   : > { %v2082_v45 = vpop.permute.xlu1 %2081  ;;  %v2194_v47 = vld [vmem:[#allocation2 + $0xf0] sm:$0xff] }
 0x29a   : > { %v1433_v46 = vpop.permute.xlu0 %1432  ;;  %2159 = vst.msk [vmem:[#allocation2 + $0xf8] sm:$0xff] %vm2127_vm8, %v2082_v45  ;;  %4227 = vmatprep.mubr.msk.f32.mxu0 %vm2216_vm9, %v2194_v47 }
 0x29b   : > { %1509 = vst.msk [vmem:[#allocation2 + $0x100] sm:$0xff] %vm1476_vm5, %v1433_v46  ;;  %v2762_v52 = vld [vmem:[#allocation4 + $0x3f] sm:$0xff] }
 0x29c   : > { %v2763_v53 = vmax.f32 %v2761_v51, %v2762_v52 }
 0x29d   : > { %v786_v54 = vpop.permute.xlu1 %785 }
 0x29e   : > { %v571_v55 = vpop.permute.xlu0 %570  ;;  %2764 = vst.msk [vmem:[#allocation5 + $0x32] sm:$0xff] %vm333_vm0, %v2763_v53 }
 0x29f   : > { %860 = vst.msk [vmem:[#allocation2 + $0x110] sm:$0xff] %vm825_vm2, %v786_v54 }
 0x2a0   : > { %644 = vst.msk [vmem:[#allocation2 + $0x118] sm:$0xff] %vm608_vm1, %v571_v55 }
 0x2a1   : > { %v1650_v59 = vpop.permute.xlu1 %1649  ;;  %v2195_v61 = vld [vmem:[#allocation2 + $0xf8] sm:$0xff] }
 0x2a2   : > { %v1435_v60 = vpop.permute.xlu0 %1434  ;;  %1726 = vst.msk [vmem:[#allocation2 + $0x100] sm:$0xff] %vm1693_vm6, %v1650_v59  ;;  %v4211_v63 = vpop.f32.mrf.mxu0  ;;  %4228 = vmatmul.mubr.msk.f32.gmra.mxu0 %vm2216_vm9, %v2195_v61 }
 0x2a3   : > { %1510 = vst.msk [vmem:[#allocation2 + $0x108] sm:$0xff] %vm1476_vm5, %v1435_v60  ;;  %v2487_v0 = vadd.f32 %v5572_v48, %v4211_v63 }
 0x2a4   : > { %v2481_v1 = vpop.f32.mrf.mxu0 }
 0x2a5   : > { %v2924_v2 = vld [vmem:[#allocation5 + $0x2b] sm:$0xff]  ;;  %v2589_v4 = vmax.f32 %v2487_v0, 0.0  ;;  %v2482_v5 = vadd.f32 %v5572_v48, %v2481_v1  ;;  %v1003_v6 = vpop.permute.xlu1 %1002  ;;  %v2925_v26 = vld [vmem:[#allocation5 + $0x33] sm:$0xff] }
 0x2a6   : > { %v2984_v3 = vld [vmem:[#allocation5 + $0x2c] sm:$0xff]  ;;  %v788_v7 = vpop.permute.xlu0 %787  ;;  %2947 = vrot.lane.b32.xlu0 %v2924_v2, %s4390_s28  ;;  %1077 = vst.msk [vmem:[#allocation2 + $0x110] sm:$0xff] %vm1042_vm3, %v1003_v6  ;;  %v2985_v32 = vld [vmem:[#allocation5 + $0x34] sm:$0xff] }
 0x2a7   : > { %3007 = vrot.lane.b32.xlu1 %v2984_v3, %s4391_s29  ;;  %861 = vst.msk [vmem:[#allocation2 + $0x118] sm:$0xff] %vm825_vm2, %v788_v7  ;;  %v2588_v9 = vmax.f32 %v2482_v5, 0.0  ;;  %v2786_v10 = vld [vmem:[#allocation5 + $0x31] sm:$0xff] }
 0x2a8   : > { %2625 = vst.msk [vmem:[#allocation3 + $0x98] sm:$0xff] %vm333_vm0, %v2589_v4  ;;  %2796 = vst.msk [vmem:[#allocation6 + $0x28] sm:$0xff] %vm333_vm0, %v2786_v10  ;;  %v3103_v20 = vld [vmem:[#allocation5 + $0x2d] sm:$0xff] }
 0x2a9   : > { %2624 = vst.msk [vmem:[#allocation3 + $0x90] sm:$0xff] %vm333_vm0, %v2588_v9  ;;  %v1867_v13 = vpop.permute.xlu1 %1866  ;;  %v2806_v25 = vld [vmem:[#allocation5 + $0x32] sm:$0xff] }
 0x2aa   : > { %v1652_v14 = vpop.permute.xlu0 %1651  ;;  %3183 = vrot.lane.b32.xlu0 %v3162_v12, %s4394_s22  ;;  %1943 = vst.msk [vmem:[#allocation2 + $0x100] sm:$0xff] %vm1910_vm7, %v1867_v13  ;;  %v3223_v35 = vld [vmem:[#allocation5 + $0x2f] sm:$0xff] }
 0x2ab   : > { %3243 = vrot.lane.b32.xlu1 %v3222_v57, %s4395_s23  ;;  %1727 = vst.msk [vmem:[#allocation2 + $0x108] sm:$0xff] %vm1693_vm6, %v1652_v14 }
 0x2ad   : > { %v1220_v16 = vpop.permute.xlu1 %1219 }
 0x2ae   : > { %v1005_v17 = vpop.permute.xlu0 %1004  ;;  %2829 = vrot.lane.b32.xlu0 %v2805_v15, %s4389_s27  ;;  %1294 = vst.msk [vmem:[#allocation2 + $0x110] sm:$0xff] %vm1259_vm4, %v1220_v16 }
 0x2af   : > { %2889 = vrot.lane.b32.xlu1 %v2924_v2, %s6238_s17  ;;  %1078 = vst.msk [vmem:[#allocation2 + $0x118] sm:$0xff] %vm1042_vm3, %v1005_v17 }
 0x2b0   : > { %v2660_v18 = vld [vmem:[#allocation3 + $0x90] ss:$2 sm:$0xff]  ;;  %v2696_v19 = vld [vmem:[#allocation3 + $0x91] ss:$2 sm:$0xff] }
 0x2b1   : > { %v2722_v21 = vmax.f32 %v2660_v18, %v2696_v19  ;;  %v2084_v23 = vpop.permute.xlu1 %2083 }
 0x2b2   : > { %v1869_v24 = vpop.permute.xlu0 %1868  ;;  %3065 = vrot.lane.b32.xlu0 %v5601_v11, %s6237_s24  ;;  %2160 = vst.msk [vmem:[#allocation2 + $0x100] sm:$0xff] %vm2127_vm8, %v2084_v23  ;;  %v3163_v11 = vld [vmem:[#allocation5 + $0x2e] sm:$0xff] }
 0x2b3   : > { %3125 = vrot.lane.b32.xlu1 %v3103_v20, %s6239_s21  ;;  %1944 = vst.msk [vmem:[#allocation2 + $0x108] sm:$0xff] %vm1910_vm7, %v1869_v24 }
 0x2b4   : > { %2740 = vst.msk [vmem:[#allocation4 + $0x48] sm:$0xff] %vm333_vm0, %v2722_v21 }
 0x2b5   : > { %v1437_v27 = vpop.permute.xlu1 %1436 }
 0x2b6   : > { %v1222_v28 = vpop.permute.xlu0 %1221  ;;  %2831 = vrot.lane.b32.xlu0 %v2806_v25, %s4389_s27  ;;  %1511 = vst.msk [vmem:[#allocation2 + $0x110] sm:$0xff] %vm1476_vm5, %v1437_v27 }
 0x2b7   : > { %2949 = vrot.lane.b32.xlu1 %v2925_v26, %s4390_s28  ;;  %1295 = vst.msk [vmem:[#allocation2 + $0x118] sm:$0xff] %vm1259_vm4, %v1222_v28 }
 0x2b9   : > { %v1439_v29 = vpop.permute.xlu1 %1438  ;;  %v2196_v31 = vld [vmem:[#allocation2 + $0x100] sm:$0xff] }
 0x2ba   : > { %v2086_v30 = vpop.permute.xlu0 %2085  ;;  %3067 = vrot.lane.b32.xlu0 %v3103_v20, %s6237_s24  ;;  %1512 = vst.msk [vmem:[#allocation2 + $0x118] sm:$0xff] %vm1476_vm5, %v1439_v29  ;;  %4230 = vmatprep.mubr.msk.f32.mxu0 %vm2216_vm9, %v2196_v31 }
 0x2bb   : > { %3185 = vrot.lane.b32.xlu1 %v3163_v11, %s4394_s22  ;;  %2161 = vst.msk [vmem:[#allocation2 + $0x108] sm:$0xff] %vm2127_vm8, %v2086_v30  ;;  %v2765_v20 = vld [vmem:[#allocation4 + $0x48] sm:$0xff] }
 0x2bd   : > { %v1656_v33 = vpop.permute.xlu1 %1655 }
 0x2be   : > { %v1654_v34 = vpop.permute.xlu0 %1653  ;;  %2891 = vrot.lane.b32.xlu0 %v2925_v26, %s6238_s17  ;;  %1729 = vst.msk [vmem:[#allocation2 + $0x118] sm:$0xff] %vm1693_vm6, %v1656_v33 }
 0x2bf   : > { %3009 = vrot.lane.b32.xlu1 %v2985_v32, %s4391_s29  ;;  %1728 = vst.msk [vmem:[#allocation2 + $0x110] sm:$0xff] %vm1693_vm6, %v1654_v34 }
 0x2c1   : > { %v1873_v36 = vpop.permute.xlu1 %1872 }
 0x2c2   : > { %v1871_v37 = vpop.permute.xlu0 %1870  ;;  %v2197_v38 = vld [vmem:[#allocation2 + $0x108] sm:$0xff]  ;;  %1946 = vst.msk [vmem:[#allocation2 + $0x118] sm:$0xff] %vm1910_vm7, %v1873_v36  ;;  %v4214_v39 = vpop.f32.mrf.mxu0 }
 0x2c3   : > { %3245 = vrot.lane.b32.xlu1 %v3223_v35, %s4395_s23  ;;  %1945 = vst.msk [vmem:[#allocation2 + $0x110] sm:$0xff] %vm1910_vm7, %v1871_v37  ;;  %4231 = vmatmul.mubr.msk.f32.gmra.mxu0 %vm2216_vm9, %v2197_v38  ;;  %v2497_v40 = vadd.f32 %v5572_v48, %v4214_v39 }
 0x2c4   : > { %v2491_v41 = vpop.f32.mrf.mxu0 }
 0x2c5   : > { %v2591_v42 = vmax.f32 %v2497_v40, 0.0  ;;  %v2492_v43 = vadd.f32 %v5572_v48, %v2491_v41  ;;  %v2090_v44 = vpop.permute.xlu1 %2089 }
 0x2c6   : > { %v2088_v45 = vpop.permute.xlu0 %2087  ;;  %2163 = vst.msk [vmem:[#allocation2 + $0x118] sm:$0xff] %vm2127_vm8, %v2090_v44 }
 0x2c7   : > { %2162 = vst.msk [vmem:[#allocation2 + $0x110] sm:$0xff] %vm2127_vm8, %v2088_v45  ;;  %v2590_v46 = vmax.f32 %v2492_v43, 0.0 }
 0x2c8   : > { %2627 = vst.msk [vmem:[#allocation3 + $0xa8] sm:$0xff] %vm333_vm0, %v2591_v42 }
 0x2c9   : > { %2626 = vst.msk [vmem:[#allocation3 + $0xa0] sm:$0xff] %vm333_vm0, %v2590_v46  ;;  %v2824_v49 = vpop.permute.xlu1 %2823 }
 0x2ca   : > { %v2822_v47 = vpop.permute.xlu0 %2821  ;;  %2852 = vst.msk [vmem:[#allocation6 + $0x8] sm:$0xff] %vm608_vm1, %v2824_v49 }
 0x2cb   : > { %2851 = vst.msk [vmem:[#allocation6] sm:$0xff] %vm608_vm1, %v2822_v47 }
 0x2cd   : > { %v2884_v51 = vpop.permute.xlu1 %2883  ;;  %v2199_v53 = vld [vmem:[#allocation2 + $0x118] sm:$0xff] }
 0x2ce   : > { %v2882_v50 = vpop.permute.xlu0 %2881  ;;  %v2198_v52 = vld [vmem:[#allocation2 + $0x110] sm:$0xff]  ;;  %2912 = vst.msk [vmem:[#allocation6 + $0x8] sm:$0xff] %vm825_vm2, %v2884_v51 }
 0x2cf   : > { %2911 = vst.msk [vmem:[#allocation6] sm:$0xff] %vm825_vm2, %v2882_v50  ;;  %4233 = vmatprep.mubr.msk.f32.mxu0 %vm2216_vm9, %v2198_v52 }
 0x2d0   : > { %4234 = vmatmul.mubr.msk.f32.gmra.mxu0 %vm2216_vm9, %v2199_v53  ;;  %v2662_v54 = vld [vmem:[#allocation3 + $0xa0] ss:$2 sm:$0xff]  ;;  %v2698_v55 = vld [vmem:[#allocation3 + $0xa1] ss:$2 sm:$0xff] }
 0x2d1   : > { %v2723_v56 = vmax.f32 %v2662_v54, %v2698_v55  ;;  %v2944_v59 = vpop.permute.xlu1 %2943 }
 0x2d2   : > { %v2942_v58 = vpop.permute.xlu0 %2941  ;;  %2972 = vst.msk [vmem:[#allocation6 + $0x8] sm:$0xff] %vm1042_vm3, %v2944_v59 }
 0x2d3   : > { %2971 = vst.msk [vmem:[#allocation6] sm:$0xff] %vm1042_vm3, %v2942_v58 }
 0x2d4   : > { %2741 = vst.msk [vmem:[#allocation4 + $0x50] sm:$0xff] %vm333_vm0, %v2723_v56 }
 0x2d5   : > { %v2826_v61 = vpop.permute.xlu1 %2825 }
 0x2d6   : > { %v3002_v60 = vpop.permute.xlu0 %3001  ;;  %2853 = vst.msk [vmem:[#allocation6 + $0x10] sm:$0xff] %vm608_vm1, %v2826_v61 }
 0x2d7   : > { %3031 = vst.msk [vmem:[#allocation6] sm:$0xff] %vm1259_vm4, %v3002_v60 }
 0x2d9   : > { %v3062_v63 = vpop.permute.xlu1 %3061 }
 0x2da   : > { %v3004_v62 = vpop.permute.xlu0 %3003  ;;  %3091 = vst.msk [vmem:[#allocation6] sm:$0xff] %vm1476_vm5, %v3062_v63 }
 0x2db   : > { %3032 = vst.msk [vmem:[#allocation6 + $0x8] sm:$0xff] %vm1259_vm4, %v3004_v62 }
 0x2dd   : > { %v2886_v1 = vpop.permute.xlu1 %2885 }
 0x2de   : > { %v2828_v0 = vpop.permute.xlu0 %2827  ;;  %2913 = vst.msk [vmem:[#allocation6 + $0x10] sm:$0xff] %vm825_vm2, %v2886_v1 }
 0x2df   : > { %2854 = vst.msk [vmem:[#allocation6 + $0x18] sm:$0xff] %vm608_vm1, %v2828_v0 }
 0x2e1   : > { %v3122_v3 = vpop.permute.xlu1 %3121 }
 0x2e2   : > { %v3064_v2 = vpop.permute.xlu0 %3063  ;;  %3151 = vst.msk [vmem:[#allocation6] sm:$0xff] %vm1693_vm6, %v3122_v3  ;;  %v4217_v4 = vpop.f32.mrf.mxu0 }
 0x2e3   : > { %3092 = vst.msk [vmem:[#allocation6 + $0x8] sm:$0xff] %vm1476_vm5, %v3064_v2  ;;  %v2507_v5 = vadd.f32 %v5572_v48, %v4217_v4 }
 0x2e4   : > { %v2501_v6 = vpop.f32.mrf.mxu0 }
 0x2e5   : > { %v2593_v7 = vmax.f32 %v2507_v5, 0.0  ;;  %v2502_v8 = vadd.f32 %v5572_v48, %v2501_v6  ;;  %v2946_v10 = vpop.permute.xlu1 %2945 }
 0x2e6   : > { %v2888_v9 = vpop.permute.xlu0 %2887  ;;  %2973 = vst.msk [vmem:[#allocation6 + $0x10] sm:$0xff] %vm1042_vm3, %v2946_v10 }
 0x2e7   : > { %2914 = vst.msk [vmem:[#allocation6 + $0x18] sm:$0xff] %vm825_vm2, %v2888_v9  ;;  %v2592_v12 = vmax.f32 %v2502_v8, 0.0 }
 0x2e8   : > { %2629 = vst.msk [vmem:[#allocation3 + $0xb8] sm:$0xff] %vm333_vm0, %v2593_v7 }
 0x2e9   : > { %2628 = vst.msk [vmem:[#allocation3 + $0xb0] sm:$0xff] %vm333_vm0, %v2592_v12  ;;  %v3182_v13 = vpop.permute.xlu1 %3181 }
 0x2ea   : > { %v3124_v57 = vpop.permute.xlu0 %3123  ;;  %3211 = vst.msk [vmem:[#allocation6] sm:$0xff] %vm1910_vm7, %v3182_v13 }
 0x2eb   : > { %3152 = vst.msk [vmem:[#allocation6 + $0x8] sm:$0xff] %vm1693_vm6, %v3124_v57 }
 0x2ed   : > { %v3006_v14 = vpop.permute.xlu1 %3005 }
 0x2ee   : > { %3033 = vst.msk [vmem:[#allocation6 + $0x10] sm:$0xff] %vm1259_vm4, %v3006_v14 }
 0x2f0   : > { %v2664_v15 = vld [vmem:[#allocation3 + $0xb0] ss:$2 sm:$0xff]  ;;  %v2700_v16 = vld [vmem:[#allocation3 + $0xb1] ss:$2 sm:$0xff] }
 0x2f1   : > { %v2724_v17 = vmax.f32 %v2664_v15, %v2700_v16  ;;  %v3242_v18 = vpop.permute.xlu1 %3241 }
 0x2f2   : > { %3271 = vst.msk [vmem:[#allocation6] sm:$0xff] %vm2127_vm8, %v3242_v18 }
 0x2f3   : > { %2742 = vst.msk [vmem:[#allocation4 + $0x58] sm:$0xff] %vm333_vm0, %v2724_v17 }
 0x2f9   : > { %v3281_v19 = vld [vmem:[#allocation6] sm:$0xff] }
 0x2fa   : > { %4254 = vmatprep.mubr.msk.f32.mxu1 %vm2216_vm9, %v3281_v19  ;;  %v2766_v21 = vld [vmem:[#allocation4 + $0x51] sm:$0xff] }
 0x2fb   : > { %v2767_v23 = vmax.f32 %v2765_v20, %v2766_v21 }
 0x2fd   : > { %2768 = vst.msk [vmem:[#allocation5 + $0x3c] sm:$0xff] %vm333_vm0, %v2767_v23 }
 0x302   : > { %v4220_v24 = vpop.f32.mrf.mxu0 }
 0x303   : > { %v2517_v25 = vadd.f32 %v5572_v48, %v4220_v24 }
 0x304   : > { %v2511_v26 = vpop.f32.mrf.mxu0  ;;  %v3104_v27 = vld [vmem:[#allocation5 + $0x35] sm:$0xff]  ;;  %v5755_v38 = vld [vmem:[#allocation5 + $0x3d] sm:$0xff] }
 0x305   : > { %v2986_v28 = vld [vmem:[#allocation5 + $0x3c] sm:$0xff]  ;;  %v2595_v11 = vmax.f32 %v2517_v25, 0.0  ;;  %v2512_v29 = vadd.f32 %v5572_v48, %v2511_v26  ;;  %3127 = vrot.lane.b32.xlu0 %v3104_v27, %s6239_s21 }
 0x306   : > { %3011 = vrot.lane.b32.xlu1 %v2986_v28, %s4391_s29  ;;  %v2787_v30 = vld [vmem:[#allocation5 + $0x39] sm:$0xff] }
 0x307   : > { %2631 = vst.msk [vmem:[#allocation3 + $0xc8] sm:$0xff] %vm333_vm0, %v2595_v11  ;;  %v2594_v31 = vmax.f32 %v2512_v29, 0.0  ;;  %2797 = vst.msk [vmem:[#allocation6 + $0x30] sm:$0xff] %vm333_vm0, %v2787_v30  ;;  %v2926_v32 = vld [vmem:[#allocation5 + $0x3b] sm:$0xff] }
 0x308   : > { %v3224_v33 = vld [vmem:[#allocation5 + $0x37] sm:$0xff] }
 0x309   : > { %2630 = vst.msk [vmem:[#allocation3 + $0xc0] sm:$0xff] %vm333_vm0, %v2594_v31  ;;  %2951 = vrot.lane.b32.xlu0 %v2926_v32, %s4390_s28  ;;  %v3164_v34 = vld [vmem:[#allocation5 + $0x36] sm:$0xff]  ;;  %v3165_v16 = vld [vmem:[#allocation5 + $0x3e] sm:$0xff] }
 0x30a   : > { %3247 = vrot.lane.b32.xlu1 %v3224_v33, %s4395_s23  ;;  %v2807_v35 = vld [vmem:[#allocation5 + $0x3a] sm:$0xff] }
 0x30d   : > { %3187 = vrot.lane.b32.xlu0 %v3164_v34, %s4394_s22 }
 0x30e   : > { %2893 = vrot.lane.b32.xlu1 %v2926_v32, %s6238_s17 }
 0x310   : > { %v2666_v36 = vld [vmem:[#allocation3 + $0xc0] ss:$2 sm:$0xff]  ;;  %v2702_v37 = vld [vmem:[#allocation3 + $0xc1] ss:$2 sm:$0xff] }
 0x311   : > { %v2725_v39 = vmax.f32 %v2666_v36, %v2702_v37  ;;  %2833 = vrot.lane.b32.xlu0 %v2807_v35, %s4389_s27 }
 0x312   : > { %3129 = vrot.lane.b32.xlu1 %v5755_v38, %s6239_s21 }
 0x313   : > { %2743 = vst.msk [vmem:[#allocation4 + $0x60] sm:$0xff] %vm333_vm0, %v2725_v39 }
 0x315   : > { %3069 = vrot.lane.b32.xlu0 %v3104_v27, %s6237_s24 }
 0x318   : > { %v2948_v40 = vpop.permute.xlu0 %2947 }
 0x319   : > { %v3008_v41 = vpop.permute.xlu1 %3007  ;;  %2974 = vst.msk [vmem:[#allocation6 + $0x18] sm:$0xff] %vm1042_vm3, %v2948_v40 }
 0x31a   : > { %3034 = vst.msk [vmem:[#allocation6 + $0x18] sm:$0xff] %vm1259_vm4, %v3008_v41  ;;  %v2769_v3 = vld [vmem:[#allocation4 + $0x5a] sm:$0xff] }
 0x31c   : > { %v3184_v42 = vpop.permute.xlu0 %3183 }
 0x31d   : > { %v3244_v43 = vpop.permute.xlu1 %3243  ;;  %3212 = vst.msk [vmem:[#allocation6 + $0x8] sm:$0xff] %vm1910_vm7, %v3184_v42 }
 0x31e   : > { %3272 = vst.msk [vmem:[#allocation6 + $0x8] sm:$0xff] %vm2127_vm8, %v3244_v43 }
 0x320   : > { %v2830_v44 = vpop.permute.xlu0 %2829 }
 0x321   : > { %v2890_v45 = vpop.permute.xlu1 %2889  ;;  %2855 = vst.msk [vmem:[#allocation6 + $0x20] sm:$0xff] %vm608_vm1, %v2830_v44 }
 0x322   : > { %2915 = vst.msk [vmem:[#allocation6 + $0x20] sm:$0xff] %vm825_vm2, %v2890_v45  ;;  %v4223_v46 = vpop.f32.mrf.mxu0 }
 0x323   : > { %v2527_v47 = vadd.f32 %v5572_v48, %v4223_v46 }
 0x324   : > { %v3066_v49 = vpop.permute.xlu0 %3065  ;;  %v2521_v51 = vpop.f32.mrf.mxu0 }
 0x325   : > { %v3126_v50 = vpop.permute.xlu1 %3125  ;;  %3093 = vst.msk [vmem:[#allocation6 + $0x10] sm:$0xff] %vm1476_vm5, %v3066_v49  ;;  %v3282_v52 = vld [vmem:[#allocation6 + $0x8] sm:$0xff]  ;;  %v2597_v53 = vmax.f32 %v2527_v47, 0.0  ;;  %v2522_v54 = vadd.f32 %v5572_v48, %v2521_v51 }
 0x326   : > { %3153 = vst.msk [vmem:[#allocation6 + $0x10] sm:$0xff] %vm1693_vm6, %v3126_v50  ;;  %4255 = vmatmul.mubr.msk.f32.vlgmr.msra.gmra.mxu1 %vm2216_vm9, %v3282_v52 }
 0x327   : > { %2633 = vst.msk [vmem:[#allocation3 + $0xd8] sm:$0xff] %vm333_vm0, %v2597_v53  ;;  %v2596_v55 = vmax.f32 %v2522_v54, 0.0 }
 0x328   : > { %v2832_v56 = vpop.permute.xlu0 %2831 }
 0x329   : > { %v2950_v58 = vpop.permute.xlu1 %2949  ;;  %2856 = vst.msk [vmem:[#allocation6 + $0x28] sm:$0xff] %vm608_vm1, %v2832_v56 }
 0x32a   : > { %2975 = vst.msk [vmem:[#allocation6 + $0x20] sm:$0xff] %vm1042_vm3, %v2950_v58 }
 0x32b   : > { %2632 = vst.msk [vmem:[#allocation3 + $0xd0] sm:$0xff] %vm333_vm0, %v2596_v55 }
 0x32c   : > { %v3068_v59 = vpop.permute.xlu0 %3067 }
 0x32d   : > { %v3186_v60 = vpop.permute.xlu1 %3185  ;;  %3094 = vst.msk [vmem:[#allocation6 + $0x18] sm:$0xff] %vm1476_vm5, %v3068_v59 }
 0x32e   : > { %3213 = vst.msk [vmem:[#allocation6 + $0x10] sm:$0xff] %vm1910_vm7, %v3186_v60 }
 0x330   : > { %v2892_v61 = vpop.permute.xlu0 %2891 }
 0x331   : > { %v3010_v62 = vpop.permute.xlu1 %3009  ;;  %2916 = vst.msk [vmem:[#allocation6 + $0x28] sm:$0xff] %vm825_vm2, %v2892_v61 }
 0x332   : > { %v2668_v63 = vld [vmem:[#allocation3 + $0xd0] ss:$2 sm:$0xff]  ;;  %v2704_v0 = vld [vmem:[#allocation3 + $0xd1] ss:$2 sm:$0xff]  ;;  %3035 = vst.msk [vmem:[#allocation6 + $0x20] sm:$0xff] %vm1259_vm4, %v3010_v62 }
 0x333   : > { %v2726_v1 = vmax.f32 %v2668_v63, %v2704_v0 }
 0x335   : > { %2744 = vst.msk [vmem:[#allocation4 + $0x68] sm:$0xff] %vm333_vm0, %v2726_v1  ;;  %v3246_v2 = vpop.permute.xlu1 %3245 }
 0x336   : > { %3273 = vst.msk [vmem:[#allocation6 + $0x10] sm:$0xff] %vm2127_vm8, %v3246_v2 }
 0x33c   : > { %v2770_v4 = vld [vmem:[#allocation4 + $0x63] sm:$0xff] }
 0x33d   : > { %v3283_v5 = vld [vmem:[#allocation6 + $0x10] sm:$0xff]  ;;  %v2771_v6 = vmax.f32 %v2769_v3, %v2770_v4 }
 0x33e   : > { %4257 = vmatprep.mubr.msk.f32.mxu1 %vm2216_vm9, %v3283_v5 }
 0x33f   : > { %2772 = vst.msk [vmem:[#allocation5 + $0x46] sm:$0xff] %vm333_vm0, %v2771_v6 }
 0x342   : > { %v4226_v7 = vpop.f32.mrf.mxu0 }
 0x343   : > { %v2537_v8 = vadd.f32 %v5572_v48, %v4226_v7 }
 0x344   : > { %v2531_v9 = vpop.f32.mrf.mxu0 }
 0x345   : > { %v2599_v57 = vmax.f32 %v2537_v8, 0.0  ;;  %v2532_v13 = vadd.f32 %v5572_v48, %v2531_v9 }
 0x346   : > { %v2808_v10 = vld [vmem:[#allocation5 + $0x42] sm:$0xff] }
 0x347   : > { %v2927_v12 = vld [vmem:[#allocation5 + $0x43] sm:$0xff]  ;;  %2835 = vrot.lane.b32.xlu0 %v2808_v10, %s4389_s27  ;;  %2635 = vst.msk [vmem:[#allocation3 + $0xe8] sm:$0xff] %vm333_vm0, %v2599_v57  ;;  %v2598_v15 = vmax.f32 %v2532_v13, 0.0 }
 0x348   : > { %2953 = vrot.lane.b32.xlu1 %v2927_v12, %s4390_s28  ;;  %v2788_v14 = vld [vmem:[#allocation5 + $0x41] sm:$0xff] }
 0x349   : > { %2798 = vst.msk [vmem:[#allocation6 + $0x38] sm:$0xff] %vm333_vm0, %v2788_v14  ;;  %2634 = vst.msk [vmem:[#allocation3 + $0xe0] sm:$0xff] %vm333_vm0, %v2598_v15  ;;  %v2987_v17 = vld [vmem:[#allocation5 + $0x44] sm:$0xff] }
 0x34a   : > { %v5797_v18 = vld [vmem:[#allocation5 + $0x45] sm:$0xff] }
 0x34b   : > { %3071 = vrot.lane.b32.xlu0 %v5755_v38, %s6237_s24  ;;  %v3225_v21 = vld [vmem:[#allocation5 + $0x3f] sm:$0xff]  ;;  %v3226_v56 = vld [vmem:[#allocation5 + $0x47] sm:$0xff] }
 0x34c   : > { %3189 = vrot.lane.b32.xlu1 %v3165_v16, %s4394_s22  ;;  %v3166_v55 = vld [vmem:[#allocation5 + $0x46] sm:$0xff] }
 0x34f   : > { %2895 = vrot.lane.b32.xlu0 %v2927_v12, %s6238_s17 }
 0x350   : > { %3013 = vrot.lane.b32.xlu1 %v2987_v17, %s4391_s29  ;;  %v2670_v19 = vld [vmem:[#allocation3 + $0xe0] ss:$2 sm:$0xff]  ;;  %v2706_v20 = vld [vmem:[#allocation3 + $0xe1] ss:$2 sm:$0xff] }
 0x351   : > { %v2727_v23 = vmax.f32 %v2670_v19, %v2706_v20 }
 0x353   : > { %3131 = vrot.lane.b32.xlu0 %v5797_v18, %s6239_s21  ;;  %2745 = vst.msk [vmem:[#allocation4 + $0x70] sm:$0xff] %vm333_vm0, %v2727_v23 }
 0x354   : > { %3249 = vrot.lane.b32.xlu1 %v3225_v21, %s4395_s23 }
 0x35a   : > { %v2773_v34 = vld [vmem:[#allocation4 + $0x6c] sm:$0xff] }
 0x362   : > { %v4229_v24 = vpop.f32.mrf.mxu0 }
 0x363   : > { %v2547_v25 = vadd.f32 %v5572_v48, %v4229_v24 }
 0x364   : > { %v2541_v26 = vpop.f32.mrf.mxu0 }
 0x365   : > { %v2601_v27 = vmax.f32 %v2547_v25, 0.0  ;;  %v2542_v28 = vadd.f32 %v5572_v48, %v2541_v26 }
 0x367   : > { %2637 = vst.msk [vmem:[#allocation3 + $0xf8] sm:$0xff] %vm333_vm0, %v2601_v27  ;;  %v2600_v11 = vmax.f32 %v2542_v28, 0.0 }
 0x369   : > { %2636 = vst.msk [vmem:[#allocation3 + $0xf0] sm:$0xff] %vm333_vm0, %v2600_v11 }
 0x370   : > { %v2672_v29 = vld [vmem:[#allocation3 + $0xf0] ss:$2 sm:$0xff]  ;;  %v2708_v30 = vld [vmem:[#allocation3 + $0xf1] ss:$2 sm:$0xff] }
 0x371   : > { %v2728_v31 = vmax.f32 %v2672_v29, %v2708_v30  ;;  %v3110_v30 = vld [vmem:[#allocation5 + $0x65] sm:$0xff] }
 0x373   : > { %2746 = vst.msk [vmem:[#allocation4 + $0x78] sm:$0xff] %vm333_vm0, %v2728_v31 }
 0x377   : > { %v3128_v32 = vpop.permute.xlu0 %3127 }
 0x378   : > { %v3012_v33 = vpop.permute.xlu1 %3011  ;;  %3154 = vst.msk [vmem:[#allocation6 + $0x18] sm:$0xff] %vm1693_vm6, %v3128_v32  ;;  %v3170_v32 = vld [vmem:[#allocation5 + $0x66] sm:$0xff] }
 0x37a   : > { %v2774_v35 = vld [vmem:[#allocation4 + $0x75] sm:$0xff] }
 0x37b   : > { %v2952_v36 = vpop.permute.xlu0 %2951  ;;  %v2775_v37 = vmax.f32 %v2773_v34, %v2774_v35  ;;  %v3230_v34 = vld [vmem:[#allocation5 + $0x67] sm:$0xff] }
 0x37c   : > { %2976 = vst.msk [vmem:[#allocation6 + $0x28] sm:$0xff] %vm1042_vm3, %v2952_v36  ;;  %v3248_v38 = vpop.permute.xlu1 %3247  ;;  %v5885_v36 = vld [vmem:[%s6222_s4] ss:$0 sm:$0xff] }
 0x37d   : > { %3036 = vst.msk [vmem:[#allocation6 + $0x28] sm:$0xff] %vm1259_vm4, %v3012_v33 }
 0x37e   : > { %2776 = vst.msk [vmem:[#allocation5 + $0x50] sm:$0xff] %vm333_vm0, %v2775_v37 }
 0x37f   : > { %v3188_v39 = vpop.permute.xlu0 %3187 }
 0x380   : > { %3214 = vst.msk [vmem:[#allocation6 + $0x18] sm:$0xff] %vm1910_vm7, %v3188_v39  ;;  %v2894_v40 = vpop.permute.xlu1 %2893 }
 0x381   : > { %3274 = vst.msk [vmem:[#allocation6 + $0x18] sm:$0xff] %vm2127_vm8, %v3248_v38 }
 0x383   : > { %v4232_v41 = vpop.f32.mrf.mxu0  ;;  %v2834_v43 = vpop.permute.xlu0 %2833 }
 0x384   : > { %v2557_v42 = vadd.f32 %v5572_v48, %v4232_v41  ;;  %2857 = vst.msk [vmem:[#allocation6 + $0x30] sm:$0xff] %vm608_vm1, %v2834_v43  ;;  %v3130_v54 = vpop.permute.xlu1 %3129 }
 0x385   : > { %v2551_v44 = vpop.f32.mrf.mxu0  ;;  %v2928_v45 = vld [vmem:[#allocation5 + $0x4b] sm:$0xff]  ;;  %2917 = vst.msk [vmem:[#allocation6 + $0x30] sm:$0xff] %vm825_vm2, %v2894_v40 }
 0x386   : > { %v2988_v46 = vld [vmem:[#allocation5 + $0x4c] sm:$0xff]  ;;  %v2603_v47 = vmax.f32 %v2557_v42, 0.0  ;;  %v2552_v49 = vadd.f32 %v5572_v48, %v2551_v44  ;;  %2955 = vrot.lane.b32.xlu0 %v2928_v45, %s4390_s28 }
 0x387   : > { %3015 = vrot.lane.b32.xlu1 %v2988_v46, %s4391_s29  ;;  %v2789_v50 = vld [vmem:[#allocation5 + $0x49] sm:$0xff]  ;;  %v2790_v51 = vld [vmem:[#allocation5 + $0x51] sm:$0xff]  ;;  %v3070_v53 = vpop.permute.xlu0 %3069 }
 0x388   : > { %2639 = vst.msk [vmem:[#allocation3 + $0x108] sm:$0xff] %vm333_vm0, %v2603_v47  ;;  %v2602_v52 = vmax.f32 %v2552_v49, 0.0  ;;  %2799 = vst.msk [vmem:[#allocation6 + $0x40] sm:$0xff] %vm333_vm0, %v2789_v50  ;;  %v3284_v58 = vld [vmem:[#allocation6 + $0x18] sm:$0xff] }
 0x389   : > { %2800 = vst.msk [vmem:[#allocation6 + $0x48] sm:$0xff] %vm333_vm0, %v2790_v51  ;;  %4258 = vmatmul.mubr.msk.f32.gmra.mxu1 %vm2216_vm9, %v3284_v58  ;;  %v2809_v59 = vld [vmem:[#allocation5 + $0x4a] sm:$0xff]  ;;  %v2810_v6 = vld [vmem:[#allocation5 + $0x52] sm:$0xff] }
 0x38a   : > { %3095 = vst.msk [vmem:[#allocation6 + $0x20] sm:$0xff] %vm1476_vm5, %v3070_v53  ;;  %3191 = vrot.lane.b32.xlu0 %v3166_v55, %s4394_s22  ;;  %v3107_v0 = vld [vmem:[#allocation5 + $0x4d] sm:$0xff] }
 0x38b   : > { %2638 = vst.msk [vmem:[#allocation3 + $0x100] sm:$0xff] %vm333_vm0, %v2602_v52  ;;  %3251 = vrot.lane.b32.xlu1 %v3226_v56, %s4395_s23  ;;  %v3167_v14 = vld [vmem:[#allocation5 + $0x4e] sm:$0xff] }
 0x38c   : > { %3155 = vst.msk [vmem:[#allocation6 + $0x20] sm:$0xff] %vm1693_vm6, %v3130_v54  ;;  %v3227_v23 = vld [vmem:[#allocation5 + $0x4f] sm:$0xff] }
 0x38e   : > { %2837 = vrot.lane.b32.xlu0 %v2809_v59, %s4389_s27 }
 0x38f   : > { %2897 = vrot.lane.b32.xlu1 %v2928_v45, %s6238_s17 }
 0x390   : > { %v4235_v60 = vpop.f32.mrf.mxu0 }
 0x391   : > { %v2567_v63 = vadd.f32 %v5572_v48, %v4235_v60 }
 0x392   : > { %v2674_v61 = vld [vmem:[#allocation3 + $0x100] ss:$2 sm:$0xff]  ;;  %v2710_v62 = vld [vmem:[#allocation3 + $0x101] ss:$2 sm:$0xff]  ;;  %v2561_v2 = vpop.f32.mrf.mxu0  ;;  %3073 = vrot.lane.b32.xlu0 %v5797_v18, %s6237_s24 }
 0x393   : > { %v2729_v1 = vmax.f32 %v2674_v61, %v2710_v62  ;;  %3133 = vrot.lane.b32.xlu1 %v3107_v0, %s6239_s21  ;;  %v2605_v3 = vmax.f32 %v2567_v63, 0.0  ;;  %v2562_v4 = vadd.f32 %v5572_v48, %v2561_v2 }
 0x395   : > { %2747 = vst.msk [vmem:[#allocation4 + $0x80] sm:$0xff] %vm333_vm0, %v2729_v1  ;;  %2641 = vst.msk [vmem:[#allocation3 + $0x118] sm:$0xff] %vm333_vm0, %v2605_v3  ;;  %v2604_v5 = vmax.f32 %v2562_v4, 0.0 }
 0x396   : > { %2839 = vrot.lane.b32.xlu0 %v2810_v6, %s4389_s27 }
 0x397   : > { %2640 = vst.msk [vmem:[#allocation3 + $0x110] sm:$0xff] %vm333_vm0, %v2604_v5 }
 0x39a   : > { %3075 = vrot.lane.b32.xlu0 %v3107_v0, %s6237_s24 }
 0x39c   : > { %v2777_v10 = vld [vmem:[#allocation4 + $0x7e] sm:$0xff] }
 0x39e   : > { %v2676_v7 = vld [vmem:[#allocation3 + $0x110] ss:$2 sm:$0xff]  ;;  %v2712_v8 = vld [vmem:[#allocation3 + $0x111] ss:$2 sm:$0xff] }
 0x39f   : > { %v2730_v9 = vmax.f32 %v2676_v7, %v2712_v8 }
 0x3a1   : > { %2748 = vst.msk [vmem:[#allocation4 + $0x88] sm:$0xff] %vm333_vm0, %v2730_v9 }
 0x3a8   : > { %v2778_v12 = vld [vmem:[#allocation4 + $0x87] sm:$0xff] }
 0x3a9   : > { %v2779_v48 = vmax.f32 %v2777_v10, %v2778_v12 }
 0x3ab   : > { %2780 = vst.msk [vmem:[#allocation5 + $0x5a] sm:$0xff] %vm333_vm0, %v2779_v48  ;;  %vm3615_vm0 = vcmask 786048  }
 0x3b2   : > { %v2870_v57 = vld [vmem:[#allocation5 + $0x53] sm:$0xff]  ;;  %v2930_v17 = vld [vmem:[#allocation5 + $0x5b] sm:$0xff] }
 0x3b3   : > { %2899 = vrot.lane.b32.xlu0 %v2870_v57, %s6238_s17  ;;  %2957 = vrot.lane.b32.xlu1 %v2870_v57, %s4390_s28  ;;  %v3108_v13 = vld [vmem:[#allocation5 + $0x55] sm:$0xff]  ;;  %v3050_v29 = vld [vmem:[#allocation5 + $0x5d] sm:$0xff] }
 0x3b4   : > { %v2989_v18 = vld [vmem:[#allocation5 + $0x54] sm:$0xff]  ;;  %v2990_v26 = vld [vmem:[#allocation5 + $0x5c] sm:$0xff] }
 0x3b5   : > { %v3168_v21 = vld [vmem:[#allocation5 + $0x56] sm:$0xff]  ;;  %v3169_v33 = vld [vmem:[#allocation5 + $0x5e] sm:$0xff] }
 0x3b6   : > { %v3228_v11 = vld [vmem:[#allocation5 + $0x57] sm:$0xff]  ;;  %v3229_v35 = vld [vmem:[#allocation5 + $0x5f] sm:$0xff] }
 0x3b7   : > { %3135 = vrot.lane.b32.xlu0 %v3108_v13, %s6239_s21  ;;  %3193 = vrot.lane.b32.xlu1 %v3167_v14, %s4394_s22 }
 0x3b9   : > { %v2836_v15 = vpop.permute.xlu0 %2835 }
 0x3ba   : > { %v2954_v16 = vpop.permute.xlu1 %2953  ;;  %2858 = vst.msk [vmem:[#allocation6 + $0x38] sm:$0xff] %vm608_vm1, %v2836_v15 }
 0x3bb   : > { %2977 = vst.msk [vmem:[#allocation6 + $0x30] sm:$0xff] %vm1042_vm3, %v2954_v16  ;;  %2959 = vrot.lane.b32.xlu0 %v2930_v17, %s4390_s28  ;;  %3017 = vrot.lane.b32.xlu1 %v2989_v18, %s4391_s29  ;;  %s324_s28 = sand.u32 1, %s4378_s10  }
 0x3bc   : > { %s3963_s26 = scalar_lea.sflag [#allocation15], %s324_s28 }
 0x3bd   : > { %v3072_v19 = vpop.permute.xlu0 %3071 }
 0x3be   : > { %v3190_v20 = vpop.permute.xlu1 %3189  ;;  %3096 = vst.msk [vmem:[#allocation6 + $0x28] sm:$0xff] %vm1476_vm5, %v3072_v19 }
 0x3bf   : > { %3215 = vst.msk [vmem:[#allocation6 + $0x20] sm:$0xff] %vm1910_vm7, %v3190_v20  ;;  %3195 = vrot.lane.b32.xlu0 %v3168_v21, %s4394_s22  ;;  %3253 = vrot.lane.b32.xlu1 %v3227_v23, %s4395_s23 }
 0x3c1   : > { %v2896_v24 = vpop.permute.xlu0 %2895 }
 0x3c2   : > { %v3014_v25 = vpop.permute.xlu1 %3013  ;;  %2918 = vst.msk [vmem:[#allocation6 + $0x38] sm:$0xff] %vm825_vm2, %v2896_v24 }
 0x3c3   : > { %3037 = vst.msk [vmem:[#allocation6 + $0x30] sm:$0xff] %vm1259_vm4, %v3014_v25  ;;  %3019 = vrot.lane.b32.xlu0 %v2990_v26, %s4391_s29  ;;  %3077 = vrot.lane.b32.xlu1 %v3108_v13, %s6237_s24 }
 0x3c5   : > { %v3132_v27 = vpop.permute.xlu0 %3131 }
 0x3c6   : > { %v3250_v28 = vpop.permute.xlu1 %3249  ;;  %3156 = vst.msk [vmem:[#allocation6 + $0x28] sm:$0xff] %vm1693_vm6, %v3132_v27 }
 0x3c7   : > { %3275 = vst.msk [vmem:[#allocation6 + $0x20] sm:$0xff] %vm2127_vm8, %v3250_v28  ;;  %3255 = vrot.lane.b32.xlu0 %v3228_v11, %s4395_s23  ;;  %3079 = vrot.lane.b32.xlu1 %v3050_v29, %s6237_s24  ;;  %s4399_s24 = smov 112  }
 0x3cb   : > { %3137 = vrot.lane.b32.xlu0 %v3050_v29, %s6239_s21  ;;  %3139 = vrot.lane.b32.xlu1 %v3110_v30, %s6239_s21 }
 0x3ce   : > { %v3285_v31 = vld [vmem:[#allocation6 + $0x20] sm:$0xff] }
 0x3cf   : > { %4260 = vmatprep.mubr.msk.f32.mxu1 %vm2216_vm9, %v3285_v31  ;;  %3197 = vrot.lane.b32.xlu0 %v3169_v33, %s4394_s22 }
 0x3d0   : > { %3199 = vrot.lane.b32.xlu1 %v3170_v32, %s4394_s22  ;;  %s6234_s22 = smov 96  }
 0x3d3   : > { %3257 = vrot.lane.b32.xlu0 %v3229_v35, %s4395_s23 }
 0x3d4   : > { %3259 = vrot.lane.b32.xlu1 %v3230_v34, %s4395_s23 }
 0x3e6   : > { %v4256_v37 = vpop.f32.mrf.mxu1 }
 0x3e7   : > { %v3409_v38 = vadd.f32 %v4256_v37, %v5885_v36 }
 0x3e8   : > { %v3403_v39 = vpop.f32.mrf.mxu1 }
 0x3e9   : > { %v3453_v40 = vmax.f32 %v3409_v38, 0.0  ;;  %v3404_v41 = vadd.f32 %v5885_v36, %v3403_v39 }
 0x3eb   : > { %3463 = vst.msk [vmem:[#allocation7 + $0x8] sm:$0xff] %vm349_vm10, %v3453_v40  ;;  %v3452_v42 = vmax.f32 %v3404_v41, 0.0 }
 0x3ed   : > { %3462 = vst.msk [vmem:[#allocation7] sm:$0xff] %vm349_vm10, %v3452_v42 }
 0x3f4   : > { %v3472_v43 = vld [vmem:[#allocation7] ss:$2 sm:$0xff]  ;;  %v3482_v44 = vld [vmem:[#allocation7 + $0x1] ss:$2 sm:$0xff] }
 0x3f5   : > { %v3491_v45 = vmax.f32 %v3472_v43, %v3482_v44 }
 0x3f7   : > { %3496 = vst.msk [vmem:[#allocation8] sm:$0xff] %vm349_vm10, %v3491_v45 }
 0x3f8   : > { %v2956_v46 = vpop.permute.xlu0 %2955 }
 0x3f9   : > { %v3016_v47 = vpop.permute.xlu1 %3015  ;;  %2978 = vst.msk [vmem:[#allocation6 + $0x38] sm:$0xff] %vm1042_vm3, %v2956_v46  ;;  %v3684_v46 = vld [vmem:[%s6223_s5 + $0x78] sm:$0xff] }
 0x3fa   : > { %3038 = vst.msk [vmem:[#allocation6 + $0x38] sm:$0xff] %vm1259_vm4, %v3016_v47  ;;  %v3683_v47 = vld [vmem:[%s6223_s5 + $0x70] sm:$0xff]  ;;  %3704 = vmatpush1.msra.mxu1 %v3684_v46 }
 0x3fb   : > { %3705 = vmatprep.subr.mxu1 %v4396_v22 }
 0x3fc   : > { %v3192_v49 = vpop.permute.xlu0 %3191  ;;  %3706 = vmatpush1.msra.mxu1 %v3683_v47 }
 0x3fd   : > { %v3252_v50 = vpop.permute.xlu1 %3251  ;;  %3216 = vst.msk [vmem:[#allocation6 + $0x28] sm:$0xff] %vm1910_vm7, %v3192_v49  ;;  %v3682_v49 = vld [vmem:[%s6223_s5 + $0x68] sm:$0xff]  ;;  %3707 = vmatprep.subr.mxu1 %v4396_v22 }
 0x3fe   : > { %3276 = vst.msk [vmem:[#allocation6 + $0x28] sm:$0xff] %vm2127_vm8, %v3252_v50  ;;  %v3501_v26 = vld [vmem:[#allocation8] sm:$0xf]  ;;  %3708 = vmatpush1.msra.mxu1 %v3682_v49 }
 0x3ff   : > { %3709 = vmatprep.subr.mxu1 %v4396_v22 }
 0x400   : > { %v2838_v51 = vpop.permute.xlu0 %2837 }
 0x401   : > { %v2898_v52 = vpop.permute.xlu1 %2897  ;;  %2859 = vst.msk [vmem:[#allocation6 + $0x40] sm:$0xff] %vm608_vm1, %v2838_v51 }
 0x402   : > { %2919 = vst.msk [vmem:[#allocation6 + $0x40] sm:$0xff] %vm825_vm2, %v2898_v52 }
 0x404   : > { %v3074_v53 = vpop.permute.xlu0 %3073 }
 0x405   : > { %v3134_v54 = vpop.permute.xlu1 %3133  ;;  %3097 = vst.msk [vmem:[#allocation6 + $0x30] sm:$0xff] %vm1476_vm5, %v3074_v53  ;;  %v3286_v55 = vld [vmem:[#allocation6 + $0x28] sm:$0xff]  ;;  %v3681_v53 = vld [vmem:[%s6223_s5 + $0x60] sm:$0xff] }
 0x406   : > { %3157 = vst.msk [vmem:[#allocation6 + $0x30] sm:$0xff] %vm1693_vm6, %v3134_v54  ;;  %4261 = vmatmul.mubr.msk.f32.gmra.mxu1 %vm2216_vm9, %v3286_v55  ;;  %v3680_v55 = vld [vmem:[%s6223_s5 + $0x58] sm:$0xff] }
 0x407   : > { %3710 = vmatpush1.msra.mxu1 %v3681_v53 }
 0x408   : > { %v2840_v56 = vpop.permute.xlu0 %2839  ;;  %3711 = vmatprep.subr.mxu1 %v4396_v22 }
 0x409   : > { %2860 = vst.msk [vmem:[#allocation6 + $0x48] sm:$0xff] %vm608_vm1, %v2840_v56  ;;  %v3679_v56 = vld [vmem:[%s6223_s5 + $0x50] sm:$0xff]  ;;  %3712 = vmatpush1.msra.mxu1 %v3680_v55  ;;  %vm3634_vm1 = vcmask 917248  }
 0x40a   : > { %3713 = vmatprep.subr.mxu1 %v4396_v22 }
 0x40b   : > { %3714 = vmatpush1.msra.mxu1 %v3679_v56 }
 0x40c   : > { %v3076_v58 = vpop.permute.xlu0 %3075  ;;  %3715 = vmatprep.subr.mxu1 %v4396_v22 }
 0x40d   : > { %3098 = vst.msk [vmem:[#allocation6 + $0x38] sm:$0xff] %vm1476_vm5, %v3076_v58 }
 0x425   : > { %v2900_v59 = vpop.permute.xlu0 %2899  ;;  %v2958_v60 = vpop.permute.xlu1 %2957 }
 0x426   : > { %2920 = vst.msk [vmem:[#allocation6 + $0x48] sm:$0xff] %vm825_vm2, %v2900_v59  ;;  %v3678_v59 = vld [vmem:[%s6223_s5 + $0x48] sm:$0xff]  ;;  %vm3653_vm2 = vcmask 1048448  }
 0x427   : > { %2979 = vst.msk [vmem:[#allocation6 + $0x40] sm:$0xff] %vm1042_vm3, %v2958_v60  ;;  %v3677_v60 = vld [vmem:[%s6223_s5 + $0x40] sm:$0xff]  ;;  %3716 = vmatpush1.msra.mxu1 %v3678_v59 }
 0x428   : > { %3717 = vmatprep.subr.mxu1 %v4396_v22 }
 0x429   : > { %v3136_v61 = vpop.permute.xlu0 %3135  ;;  %v3194_v62 = vpop.permute.xlu1 %3193  ;;  %3718 = vmatpush1.msra.mxu1 %v3677_v60 }
 0x42a   : > { %3158 = vst.msk [vmem:[#allocation6 + $0x38] sm:$0xff] %vm1693_vm6, %v3136_v61  ;;  %v3676_v61 = vld [vmem:[%s6223_s5 + $0x38] sm:$0xff]  ;;  %3719 = vmatprep.subr.mxu1 %v4396_v22 }
 0x42b   : > { %3217 = vst.msk [vmem:[#allocation6 + $0x30] sm:$0xff] %vm1910_vm7, %v3194_v62  ;;  %v3675_v62 = vld [vmem:[%s6223_s5 + $0x30] sm:$0xff]  ;;  %3720 = vmatpush1.msra.mxu1 %v3676_v61 }
 0x42c   : > { %3721 = vmatprep.subr.mxu1 %v4396_v22 }
 0x42d   : > { %v2960_v63 = vpop.permute.xlu0 %2959  ;;  %v3018_v0 = vpop.permute.xlu1 %3017  ;;  %3722 = vmatpush1.msra.mxu1 %v3675_v62 }
 0x42e   : > { %2980 = vst.msk [vmem:[#allocation6 + $0x48] sm:$0xff] %vm1042_vm3, %v2960_v63  ;;  %v3674_v63 = vld [vmem:[%s6223_s5 + $0x28] sm:$0xff]  ;;  %3723 = vmatprep.subr.mxu1 %v4396_v22  ;;  %vm3786_vm3 = vcmask 261120  }
 0x42f   : > { %3039 = vst.msk [vmem:[#allocation6 + $0x40] sm:$0xff] %vm1259_vm4, %v3018_v0  ;;  %v3673_v0 = vld [vmem:[%s6223_s5 + $0x20] sm:$0xff]  ;;  %3724 = vmatpush1.msra.mxu1 %v3674_v63 }
 0x430   : > { %3725 = vmatprep.subr.mxu1 %v4396_v22 }
 0x431   : > { %v3196_v1 = vpop.permute.xlu0 %3195  ;;  %v3254_v2 = vpop.permute.xlu1 %3253  ;;  %3726 = vmatpush1.msra.mxu1 %v3673_v0 }
 0x432   : > { %3218 = vst.msk [vmem:[#allocation6 + $0x38] sm:$0xff] %vm1910_vm7, %v3196_v1  ;;  %3727 = vmatprep.subr.mxu1 %v4396_v22 }
 0x433   : > { %3277 = vst.msk [vmem:[#allocation6 + $0x30] sm:$0xff] %vm2127_vm8, %v3254_v2 }
 0x435   : > { %v3020_v3 = vpop.permute.xlu0 %3019  ;;  %v3078_v4 = vpop.permute.xlu1 %3077 }
 0x436   : > { %3040 = vst.msk [vmem:[#allocation6 + $0x48] sm:$0xff] %vm1259_vm4, %v3020_v3  ;;  %vm3800_vm4 = vcmask 257024  }
 0x437   : > { %3099 = vst.msk [vmem:[#allocation6 + $0x40] sm:$0xff] %vm1476_vm5, %v3078_v4 }
 0x439   : > { %v3256_v5 = vpop.permute.xlu0 %3255  ;;  %v3080_v6 = vpop.permute.xlu1 %3079 }
 0x43a   : > { %v3287_v7 = vld [vmem:[#allocation6 + $0x30] sm:$0xff]  ;;  %3278 = vst.msk [vmem:[#allocation6 + $0x38] sm:$0xff] %vm2127_vm8, %v3256_v5 }
 0x43b   : > { %3100 = vst.msk [vmem:[#allocation6 + $0x48] sm:$0xff] %vm1476_vm5, %v3080_v6  ;;  %4263 = vmatprep.mubr.msk.f32.mxu1 %vm2216_vm9, %v3287_v7  ;;  %vm3805_vm5 = vcmask 253952  }
 0x43d   : > { %v3138_v8 = vpop.permute.xlu0 %3137  ;;  %v3140_v9 = vpop.permute.xlu1 %3139 }
 0x43e   : > { %3159 = vst.msk [vmem:[#allocation6 + $0x40] sm:$0xff] %vm1693_vm6, %v3138_v8  ;;  %3160 = vst.msk [vmem:[#allocation6 + $0x48] sm:$0xff] %vm1693_vm6, %v3140_v9  ;;  %vm3811_vm6 = vcmask 517377  }
 0x441   : > { %v3198_v10 = vpop.permute.xlu0 %3197  ;;  %v3288_v48 = vld [vmem:[#allocation6 + $0x38] sm:$0xff] }
 0x442   : > { %v3200_v12 = vpop.permute.xlu1 %3199  ;;  %3219 = vst.msk [vmem:[#allocation6 + $0x40] sm:$0xff] %vm1910_vm7, %v3198_v10  ;;  %4264 = vmatmul.mubr.msk.f32.gmra.mxu1 %vm2216_vm9, %v3288_v48 }
 0x443   : > { %3220 = vst.msk [vmem:[#allocation6 + $0x48] sm:$0xff] %vm1910_vm7, %v3200_v12  ;;  %vm3820_vm7 = vcmask 778752  }
 0x445   : > { %v3258_v57 = vpop.permute.xlu0 %3257 }
 0x446   : > { %v3260_v13 = vpop.permute.xlu1 %3259  ;;  %3279 = vst.msk [vmem:[#allocation6 + $0x40] sm:$0xff] %vm2127_vm8, %v3258_v57 }
 0x447   : > { %3280 = vst.msk [vmem:[#allocation6 + $0x48] sm:$0xff] %vm2127_vm8, %v3260_v13  ;;  %vm3825_vm8 = vcmask 1042177  }
 0x449   : > { %v4259_v14 = vpop.f32.mrf.mxu1 }
 0x44a   : > { %v3419_v15 = vadd.f32 %v4259_v14, %v5885_v36 }
 0x44b   : > { %v3413_v16 = vpop.f32.mrf.mxu1 }
 0x44c   : > { %v3455_v19 = vmax.f32 %v3419_v15, 0.0  ;;  %v3414_v20 = vadd.f32 %v5885_v36, %v3413_v16  ;;  %v3672_v15 = vld [vmem:[%s6223_s5 + $0x18] sm:$0xff]  ;;  %v3671_v16 = vld [vmem:[%s6223_s5 + $0x10] sm:$0xff] }
 0x44d   : > { %v3289_v17 = vld [vmem:[#allocation6 + $0x40] sm:$0xff]  ;;  %3728 = vmatpush1.msra.mxu1 %v3672_v15  ;;  %v3851_v15 = vld [vmem:[%s6225_s7 + $0xb0] sm:$0xff] }
 0x44e   : > { %v3290_v18 = vld [vmem:[#allocation6 + $0x48] sm:$0xff]  ;;  %4266 = vmatprep.mubr.msk.f32.mxu1 %vm2216_vm9, %v3289_v17  ;;  %3465 = vst.msk [vmem:[#allocation7 + $0x18] sm:$0xff] %vm349_vm10, %v3455_v19  ;;  %v3454_v21 = vmax.f32 %v3414_v20, 0.0  ;;  %3729 = vmatprep.subr.mxu1 %v4396_v22  ;;  %v3670_v19 = vld [vmem:[%s6223_s5 + $0x8] sm:$0xff]  ;;  %v3669_v20 = vld [vmem:[%s6223_s5] sm:$0xff] }
 0x44f   : > { %4267 = vmatmul.mubr.msk.f32.gmra.mxu1 %vm2216_vm9, %v3290_v18 }
 0x450   : > { %3464 = vst.msk [vmem:[#allocation7 + $0x10] sm:$0xff] %vm349_vm10, %v3454_v21  ;;  %3730 = vmatpush1.msra.mxu1 %v3671_v16  ;;  %v3850_v16 = vld [vmem:[%s6225_s7 + $0xa8] sm:$0xff] }
 0x451   : > { %3731 = vmatprep.subr.mxu1 %v4396_v22 }
 0x452   : > { %3732 = vmatpush1.msra.mxu1 %v3670_v19  ;;  %v4090_v19 = vld [vmem:[%s6224_s6] ss:$0 sm:$0xff] }
 0x453   : > { %3733 = vmatprep.subr.mxu1 %v4396_v22 }
 0x454   : > { %3734 = vmatpush1.msra.mxu1 %v3669_v20 }
 0x455   : > { %3763 = vmatprep.subr.mxu1 %v4396_v22 }
 0x457   : > { %v3474_v23 = vld [vmem:[#allocation7 + $0x10] ss:$2 sm:$0xff]  ;;  %v3484_v24 = vld [vmem:[#allocation7 + $0x11] ss:$2 sm:$0xff] }
 0x458   : > { %v3492_v25 = vmax.f32 %v3474_v23, %v3484_v24 }
 0x45a   : > { %3497 = vst.msk [vmem:[#allocation8 + $0x8] sm:$0xff] %vm349_vm10, %v3492_v25  ;;  %v3686_v25 = vld [vmem:[%s6223_s5 + $0x88] sm:$0xff] }
 0x45b   : > { %3764 = vmatpush2.msra.mxu1 %v3686_v25 }
 0x45c   : > { %3765 = vmatprep.subr.mxu1 %v4396_v22 }
 0x461   : > { %v3502_v27 = vld [vmem:[#allocation8 + $0x5] sm:$0xf]  ;;  %v3506_v41 = vld [vmem:[#allocation8 + $0xa] sm:$0xf] }
 0x462   : > { %v3503_v28 = vmax.f32 %v3501_v26, %v3502_v27  ;;  %v3685_v26 = vld [vmem:[%s6223_s5 + $0x80] sm:$0xff] }
 0x463   : > { %3766 = vmatpush2.msra.mxu1 %v3685_v26 }
 0x464   : > { %3505 = vst.msk [vmem:[#allocation9 + $0xc] sm:$0xf] %vm3504_vm11, %v3503_v28 }
 0x46b   : > { %v3543_v11 = vld [vmem:[#allocation9 + $0x7] sm:$0xff] }
 0x46c   : > { %v3524_v29 = vld [vmem:[#allocation9 + $0x6] sm:$0xff]  ;;  %3549 = vrot.lane.b32.xlu1 %v3543_v11, %s4391_s29 }
 0x46d   : > { %v3518_v30 = vld [vmem:[#allocation9 + $0x5] sm:$0xff]  ;;  %3530 = vrot.lane.b32.xlu0 %v3524_v29, %s6238_s17 }
 0x46e   : > { %3521 = vst.msk [vmem:[#allocation10] sm:$0xff] %vm349_vm10, %v3518_v30 }
 0x4c6   : > { %v4262_v31 = vpop.f32.mrf.mxu1 }
 0x4c7   : > { %v3429_v32 = vadd.f32 %v4262_v31, %v5885_v36 }
 0x4c8   : > { %v3423_v33 = vpop.f32.mrf.mxu1 }
 0x4c9   : > { %v3457_v34 = vmax.f32 %v3429_v32, 0.0  ;;  %v3424_v35 = vadd.f32 %v5885_v36, %v3423_v33 }
 0x4cb   : > { %3467 = vst.msk [vmem:[#allocation7 + $0x28] sm:$0xff] %vm349_vm10, %v3457_v34  ;;  %v3456_v37 = vmax.f32 %v3424_v35, 0.0 }
 0x4cd   : > { %3466 = vst.msk [vmem:[#allocation7 + $0x20] sm:$0xff] %vm349_vm10, %v3456_v37 }
 0x4d4   : > { %v3476_v38 = vld [vmem:[#allocation7 + $0x20] ss:$2 sm:$0xff]  ;;  %v3486_v39 = vld [vmem:[#allocation7 + $0x21] ss:$2 sm:$0xff] }
 0x4d5   : > { %v3493_v40 = vmax.f32 %v3476_v38, %v3486_v39 }
 0x4d7   : > { %3498 = vst.msk [vmem:[#allocation8 + $0x10] sm:$0xff] %vm349_vm10, %v3493_v40  ;;  %v3659_v40 = vld [vmem:[#allocation9 + $0x23] sm:$0xff] }
 0x4d8   : > { %3662 = vst.msk [vmem:[#allocation10 + $0x28] sm:$0xff] %vm349_vm10, %v3659_v40  ;;  %v3842_v40 = vld [vmem:[%s6225_s7 + $0x68] sm:$0xff] }
 0x4de   : > { %v3507_v42 = vld [vmem:[#allocation8 + $0xf] sm:$0xf]  ;;  %v3550_v44 = vpop.permute.xlu1 %3549  ;;  %v3510_v17 = vld [vmem:[#allocation8 + $0x14] sm:$0xf] }
 0x4df   : > { %v3508_v43 = vmax.f32 %v3506_v41, %v3507_v42  ;;  %v3531_v45 = vpop.permute.xlu0 %3530 }
 0x4e0   : > { %3540 = vst.msk [vmem:[#allocation10] sm:$0xff] %vm3539_vm12, %v3531_v45 }
 0x4e1   : > { %3509 = vst.msk [vmem:[#allocation9 + $0x12] sm:$0xf] %vm3504_vm11, %v3508_v43 }
 0x4e2   : > { %3559 = vst.msk [vmem:[#allocation10] sm:$0xff] %vm3558_vm13, %v3550_v44  ;;  %v3640_v44 = vld [vmem:[#allocation9 + $0x22] sm:$0xff] }
 0x4e8   : > { %v3581_v50 = vld [vmem:[#allocation9 + $0xc] sm:$0xff] }
 0x4e9   : > { %v3562_v51 = vld [vmem:[#allocation9 + $0xb] sm:$0xff]  ;;  %3587 = vrot.lane.b32.xlu1 %v3581_v50, %s4395_s23 }
 0x4ea   : > { %v3600_v52 = vld [vmem:[#allocation9 + $0xd] sm:$0xff]  ;;  %3568 = vrot.lane.b32.xlu0 %v3562_v51, %s6239_s21 }
 0x4eb   : > { %3522 = vst.msk [vmem:[#allocation10 + $0x10] sm:$0xff] %vm349_vm10, %v3600_v52  ;;  %v3525_v54 = vld [vmem:[#allocation9 + $0xe] sm:$0xff] }
 0x4ec   : > { %v3544_v58 = vld [vmem:[#allocation9 + $0xf] sm:$0xff] }
 0x4ed   : > { %3606 = vrot.lane.b32.xlu1 %v3600_v52, %s4397_s25 }
 0x4ee   : > { %3532 = vrot.lane.b32.xlu0 %v3525_v54, %s6238_s17 }
 0x4f2   : > { %3551 = vrot.lane.b32.xlu0 %v3544_v58, %s4391_s29 }
 0x502   : > { %v4265_v1 = vpop.f32.mrf.mxu1 }
 0x503   : > { %v3439_v2 = vadd.f32 %v4265_v1, %v5885_v36 }
 0x504   : > { %v3433_v3 = vpop.f32.mrf.mxu1 }
 0x505   : > { %v3459_v4 = vmax.f32 %v3439_v2, 0.0  ;;  %v3434_v5 = vadd.f32 %v5885_v36, %v3433_v3  ;;  %v3668_v3 = vld [vmem:[#allocation10 + $0x28] sm:$0xff] }
 0x507   : > { %3469 = vst.msk [vmem:[#allocation7 + $0x38] sm:$0xff] %vm349_vm10, %v3459_v4  ;;  %v3458_v6 = vmax.f32 %v3434_v5, 0.0 }
 0x509   : > { %3468 = vst.msk [vmem:[#allocation7 + $0x30] sm:$0xff] %vm349_vm10, %v3458_v6 }
 0x50f   : > { %v4268_v7 = vpop.f32.mrf.mxu1 }
 0x510   : > { %v3478_v8 = vld [vmem:[#allocation7 + $0x30] ss:$2 sm:$0xff]  ;;  %v3488_v9 = vld [vmem:[#allocation7 + $0x31] ss:$2 sm:$0xff]  ;;  %v3449_v10 = vadd.f32 %v4268_v7, %v5885_v36 }
 0x511   : > { %v3494_v12 = vmax.f32 %v3478_v8, %v3488_v9  ;;  %v3443_v48 = vpop.f32.mrf.mxu1  ;;  %v3860_v8 = vld [vmem:[%s6225_s7 + $0xf8] sm:$0xff]  ;;  %v3859_v9 = vld [vmem:[%s6225_s7 + $0xf0] sm:$0xff] }
 0x512   : > { %v3461_v57 = vmax.f32 %v3449_v10, 0.0  ;;  %v3444_v13 = vadd.f32 %v5885_v36, %v3443_v48  ;;  %v3858_v10 = vld [vmem:[%s6225_s7 + $0xe8] sm:$0xff]  ;;  %3861 = vmatprep.subr.mxu1 %v3860_v8  ;;  %v3855_v48 = vld [vmem:[%s6225_s7 + $0xd0] sm:$0xff] }
 0x513   : > { %3499 = vst.msk [vmem:[#allocation8 + $0x18] sm:$0xff] %vm349_vm10, %v3494_v12  ;;  %v3857_v12 = vld [vmem:[%s6225_s7 + $0xe0] sm:$0xff] }
 0x514   : > { %3471 = vst.msk [vmem:[#allocation7 + $0x48] sm:$0xff] %vm349_vm10, %v3461_v57  ;;  %v3460_v14 = vmax.f32 %v3444_v13, 0.0  ;;  %v3854_v57 = vld [vmem:[%s6225_s7 + $0xc8] sm:$0xff]  ;;  %v3853_v13 = vld [vmem:[%s6225_s7 + $0xc0] sm:$0xff] }
 0x516   : > { %3470 = vst.msk [vmem:[#allocation7 + $0x40] sm:$0xff] %vm349_vm10, %v3460_v14  ;;  %v3852_v14 = vld [vmem:[%s6225_s7 + $0xb8] sm:$0xff] }
 0x51a   : > { %v3511_v18 = vld [vmem:[#allocation8 + $0x19] sm:$0xf] }
 0x51b   : > { %v3512_v36 = vmax.f32 %v3510_v17, %v3511_v18  ;;  %v3849_v17 = vld [vmem:[%s6225_s7 + $0xa0] sm:$0xff]  ;;  %v3848_v18 = vld [vmem:[%s6225_s7 + $0x98] sm:$0xff] }
 0x51d   : > { %v3480_v21 = vld [vmem:[#allocation7 + $0x40] ss:$2 sm:$0xff]  ;;  %v3490_v23 = vld [vmem:[#allocation7 + $0x41] ss:$2 sm:$0xff]  ;;  %3513 = vst.msk [vmem:[#allocation9 + $0x18] sm:$0xf] %vm3504_vm11, %v3512_v36 }
 0x51e   : > { %v3495_v24 = vmax.f32 %v3480_v21, %v3490_v23  ;;  %v3847_v36 = vld [vmem:[%s6225_s7 + $0x90] sm:$0xff] }
 0x520   : > { %3500 = vst.msk [vmem:[#allocation8 + $0x20] sm:$0xff] %vm349_vm10, %v3495_v24 }
 0x524   : > { %v3619_v27 = vld [vmem:[#allocation9 + $0x11] sm:$0xff] }
 0x525   : > { %v3563_v28 = vld [vmem:[#allocation9 + $0x13] sm:$0xff]  ;;  %3625 = vrot.lane.b32.xlu1 %v3619_v27, %s6234_s22 }
 0x526   : > { %3570 = vrot.lane.b32.xlu0 %v3563_v28, %s6239_s21  ;;  %3660 = vst.msk [vmem:[#allocation10 + $0x8] sm:$0xff] %vm349_vm10, %v3563_v28  ;;  %v3601_v11 = vld [vmem:[#allocation9 + $0x15] sm:$0xff] }
 0x527   : > { %3523 = vst.msk [vmem:[#allocation10 + $0x20] sm:$0xff] %vm349_vm10, %v3601_v11  ;;  %v3514_v29 = vld [vmem:[#allocation8 + $0x1e] sm:$0xf]  ;;  %v3515_v30 = vld [vmem:[#allocation8 + $0x23] sm:$0xf] }
 0x528   : > { %v3638_v31 = vld [vmem:[#allocation9 + $0x12] sm:$0xff]  ;;  %v3516_v33 = vmax.f32 %v3514_v29, %v3515_v30 }
 0x529   : > { %v3582_v32 = vld [vmem:[#allocation9 + $0x14] sm:$0xff]  ;;  %3644 = vrot.lane.b32.xlu1 %v3638_v31, %s4399_s24 }
 0x52a   : > { %3589 = vrot.lane.b32.xlu0 %v3582_v32, %s4395_s23  ;;  %3517 = vst.msk [vmem:[#allocation9 + $0x1e] sm:$0xf] %vm3504_vm11, %v3516_v33  ;;  %v3526_v35 = vld [vmem:[#allocation9 + $0x16] sm:$0xff] }
 0x52d   : > { %v3664_v34 = vld [vmem:[#allocation10 + $0x8] sm:$0xff]  ;;  %3534 = vrot.lane.b32.xlu1 %v3526_v35, %s6238_s17 }
 0x52e   : > { %4091 = vmatprep.mubr.msk.f32.mxu1 %vm349_vm10, %v3664_v34  ;;  %3608 = vrot.lane.b32.xlu0 %v3601_v11, %s4397_s25  ;;  %v3846_v34 = vld [vmem:[%s6225_s7 + $0x88] sm:$0xff] }
 0x531   : > { %v3545_v37 = vld [vmem:[#allocation9 + $0x17] sm:$0xff]  ;;  %v3621_v45 = vld [vmem:[#allocation9 + $0x21] sm:$0xff] }
 0x532   : > { %v3620_v38 = vld [vmem:[#allocation9 + $0x19] sm:$0xff]  ;;  %3553 = vrot.lane.b32.xlu1 %v3545_v37, %s4391_s29  ;;  %v3845_v37 = vld [vmem:[%s6225_s7 + $0x80] sm:$0xff] }
 0x533   : > { %v3564_v39 = vld [vmem:[#allocation9 + $0x1b] sm:$0xff]  ;;  %3627 = vrot.lane.b32.xlu0 %v3620_v38, %s6234_s22  ;;  %v3844_v38 = vld [vmem:[%s6225_s7 + $0x78] sm:$0xff] }
 0x534   : > { %3661 = vst.msk [vmem:[#allocation10 + $0x18] sm:$0xff] %vm349_vm10, %v3564_v39  ;;  %v3639_v41 = vld [vmem:[#allocation9 + $0x1a] sm:$0xff] }
 0x535   : > { %v3583_v42 = vld [vmem:[#allocation9 + $0x1c] sm:$0xff] }
 0x536   : > { %3572 = vrot.lane.b32.xlu1 %v3564_v39, %s6239_s21  ;;  %v3602_v43 = vld [vmem:[#allocation9 + $0x1d] sm:$0xff] }
 0x537   : > { %3646 = vrot.lane.b32.xlu0 %v3639_v41, %s4399_s24  ;;  %v3843_v39 = vld [vmem:[%s6225_s7 + $0x70] sm:$0xff]  ;;  %v3841_v41 = vld [vmem:[%s6225_s7 + $0x60] sm:$0xff] }
 0x53a   : > { %3591 = vrot.lane.b32.xlu1 %v3583_v42, %s4395_s23  ;;  %v3840_v42 = vld [vmem:[%s6225_s7 + $0x58] sm:$0xff] }
 0x53b   : > { %3610 = vrot.lane.b32.xlu0 %v3602_v43, %s4397_s25  ;;  %v3666_v62 = vld [vmem:[#allocation10 + $0x18] sm:$0xff]  ;;  %v3839_v43 = vld [vmem:[%s6225_s7 + $0x50] sm:$0xff] }
 0x53e   : > { %3629 = vrot.lane.b32.xlu1 %v3621_v45, %s6234_s22  ;;  %s4040_s22 = sshll.u32 %s324_s28, 1 }
 0x53f   : > { %3648 = vrot.lane.b32.xlu0 %v3640_v44, %s4399_s24  ;;  %v3838_v44 = vld [vmem:[%s6225_s7 + $0x48] sm:$0xff]  ;;  %s4099_s24 = sshll.u32 %s4473_s13, 5  ;;  %s326_s17 = scalar_lea.vmem [#allocation14], %s4040_s22 }
 0x540   : > { %s3977_s21 = sshll.u32 %s326_s17, 4  ;;  %s3978_s21 = int_to_ptr.vmem [resolvable:$true] %s3977_s21 }
 0x55b   : > { %v3588_v46 = vpop.permute.xlu1 %3587 }
 0x55c   : > { %v3569_v47 = vpop.permute.xlu0 %3568 }
 0x55d   : > { %3578 = vst.msk [vmem:[#allocation10] sm:$0xff] %vm3577_vm14, %v3569_v47 }
 0x55e   : > { %3597 = vst.msk [vmem:[#allocation10] sm:$0xff] %vm3596_vm15, %v3588_v46 }
 0x55f   : > { %v3607_v49 = vpop.permute.xlu1 %3606 }
 0x560   : > { %v3533_v50 = vpop.permute.xlu0 %3532  ;;  %3616 = vst.msk [vmem:[#allocation10] sm:$0xff] %vm3615_vm0, %v3607_v49 }
 0x561   : > { %3541 = vst.msk [vmem:[#allocation10 + $0x10] sm:$0xff] %vm3539_vm12, %v3533_v50 }
 0x564   : > { %v3552_v51 = vpop.permute.xlu0 %3551 }
 0x565   : > { %3560 = vst.msk [vmem:[#allocation10 + $0x10] sm:$0xff] %vm3558_vm13, %v3552_v51 }
 0x597   : > { %v3626_v52 = vpop.permute.xlu1 %3625 }
 0x598   : > { %v3571_v53 = vpop.permute.xlu0 %3570  ;;  %3635 = vst.msk [vmem:[#allocation10] sm:$0xff] %vm3634_vm1, %v3626_v52  ;;  %v3837_v52 = vld [vmem:[%s6225_s7 + $0x40] sm:$0xff] }
 0x599   : > { %3579 = vst.msk [vmem:[#allocation10 + $0x10] sm:$0xff] %vm3577_vm14, %v3571_v53  ;;  %v3836_v53 = vld [vmem:[%s6225_s7 + $0x38] sm:$0xff] }
 0x59b   : > { %v3645_v54 = vpop.permute.xlu1 %3644 }
 0x59c   : > { %v3590_v55 = vpop.permute.xlu0 %3589  ;;  %3654 = vst.msk [vmem:[#allocation10] sm:$0xff] %vm3653_vm2, %v3645_v54  ;;  %v3835_v54 = vld [vmem:[%s6225_s7 + $0x30] sm:$0xff] }
 0x59d   : > { %3598 = vst.msk [vmem:[#allocation10 + $0x10] sm:$0xff] %vm3596_vm15, %v3590_v55  ;;  %v3834_v55 = vld [vmem:[%s6225_s7 + $0x28] sm:$0xff] }
 0x59f   : > { %v3535_v56 = vpop.permute.xlu1 %3534 }
 0x5a0   : > { %3542 = vst.msk [vmem:[#allocation10 + $0x20] sm:$0xff] %vm3539_vm12, %v3535_v56  ;;  %v3609_v58 = vpop.permute.xlu0 %3608  ;;  %v3833_v56 = vld [vmem:[%s6225_s7 + $0x20] sm:$0xff] }
 0x5a1   : > { %3617 = vst.msk [vmem:[#allocation10 + $0x10] sm:$0xff] %vm3615_vm0, %v3609_v58  ;;  %v3832_v58 = vld [vmem:[%s6225_s7 + $0x18] sm:$0xff] }
 0x5a3   : > { %v3663_v59 = vld [vmem:[#allocation10] sm:$0xff] }
 0x5a4   : > { %v3554_v60 = vpop.permute.xlu1 %3553  ;;  %3768 = vmatmul.mubr.f32.vlgmr.msra.gmra.mxu1 %v3663_v59  ;;  %v3831_v59 = vld [vmem:[%s6225_s7 + $0x10] sm:$0xff] }
 0x5a5   : > { %v3628_v61 = vpop.permute.xlu0 %3627  ;;  %3561 = vst.msk [vmem:[#allocation10 + $0x20] sm:$0xff] %vm3558_vm13, %v3554_v60  ;;  %4092 = vmatprep.mubr.msk.f32.mxu1 %vm349_vm10, %v3666_v62  ;;  %3862 = vmatpush1.msra.mxu1 %v3859_v9  ;;  %v3830_v60 = vld [vmem:[%s6225_s7 + $0x8] sm:$0xff] }
 0x5a6   : > { %3636 = vst.msk [vmem:[#allocation10 + $0x10] sm:$0xff] %vm3634_vm1, %v3628_v61  ;;  %3863 = vmatprep.subr.mxu1 %v3858_v10  ;;  %v3829_v61 = vld [vmem:[%s6225_s7] sm:$0xff] }
 0x5a7   : > { %3864 = vmatpush1.msra.mxu1 %v3857_v12 }
 0x5a8   : > { %v3573_v63 = vpop.permute.xlu1 %3572 }
 0x5a9   : > { %v3647_v0 = vpop.permute.xlu0 %3646  ;;  %3580 = vst.msk [vmem:[#allocation10 + $0x20] sm:$0xff] %vm3577_vm14, %v3573_v63 }
 0x5aa   : > { %3655 = vst.msk [vmem:[#allocation10 + $0x10] sm:$0xff] %vm3653_vm2, %v3647_v0 }
 0x5ac   : > { %v3592_v1 = vpop.permute.xlu1 %3591 }
 0x5ad   : > { %v3611_v2 = vpop.permute.xlu0 %3610  ;;  %3599 = vst.msk [vmem:[#allocation10 + $0x20] sm:$0xff] %vm3596_vm15, %v3592_v1 }
 0x5ae   : > { %3618 = vst.msk [vmem:[#allocation10 + $0x20] sm:$0xff] %vm3615_vm0, %v3611_v2 }
 0x5b0   : > { %v3630_v4 = vpop.permute.xlu1 %3629 }
 0x5b1   : > { %v3649_v5 = vpop.permute.xlu0 %3648  ;;  %v3665_v6 = vld [vmem:[#allocation10 + $0x10] sm:$0xff]  ;;  %3637 = vst.msk [vmem:[#allocation10 + $0x20] sm:$0xff] %vm3634_vm1, %v3630_v4 }
 0x5b2   : > { %3773 = vmatmul.mubr.f32.gmra.mxu1 %v3665_v6  ;;  %3656 = vst.msk [vmem:[#allocation10 + $0x20] sm:$0xff] %vm3653_vm2, %v3649_v5  ;;  %v4400_v5 = vmov 1966171168  }
 0x5b3   : > { %4093 = vmatprep.mubr.msk.f32.mxu1 %vm349_vm10, %v3668_v3  ;;  %v3936_v6 = vunpack.c.l.s4 %v4400_v5 }
 0x5b5   : > { %v3937_v8 = vunpack.c.0.s8 %v3936_v6 }
 0x5b9   : > { %v3667_v7 = vld [vmem:[#allocation10 + $0x20] sm:$0xff] }
 0x5ba   : > { %3778 = vmatmul.mubr.f32.gmra.mxu1 %v3667_v7  ;;  %v3938_v7 = vlaneseq }
 0x5bb   : > { %3925 = vmatprep.mubr.f32.mxu1 %v4396_v22  ;;  %v3856_v22 = vld [vmem:[%s6225_s7 + $0xd8] sm:$0xff] }
 0x5bc   : > { %3865 = vmatprep.subr.mxu1 %v3856_v22  ;;  %v3939_v9 = vshrl.u32 %v3938_v7, 7  ;;  %vm3959_vm9 = vcmp.lt.s32.totalorder %v3938_v7, 256 }
 0x5bd   : > { %3866 = vmatpush1.msra.mxu1 %v3855_v48 }
 0x5be   : > { %3867 = vmatprep.subr.mxu1 %v3854_v57  ;;  %v3940_v12 = vsub.s32 %v3937_v8, %v3939_v9 }
 0x5bf   : > { %3868 = vmatpush1.msra.mxu1 %v3853_v13  ;;  %v3827_v13 = vld [vmem:[%s6226_s8] sm:$0x3] }
 0x5c0   : > { %3869 = vmatprep.subr.mxu1 %v3852_v14 }
 0x5c1   : > { %3870 = vmatpush1.msra.mxu1 %v3851_v15 }
 0x5c2   : > { %3871 = vmatprep.subr.mxu1 %v3850_v16 }
 0x5c3   : > { %3872 = vmatpush1.msra.mxu1 %v3849_v17 }
 0x5c4   : > { %3873 = vmatprep.subr.mxu1 %v3848_v18 }
 0x5c5   : > { %3874 = vmatpush1.msra.mxu1 %v3847_v36 }
 0x5c6   : > { %3875 = vmatprep.subr.mxu1 %v3846_v34 }
 0x5c7   : > { %3876 = vmatpush1.msra.mxu1 %v3845_v37 }
 0x5c8   : > { %3877 = vmatprep.subr.mxu1 %v3844_v38 }
 0x5c9   : > { %3878 = vmatpush1.msra.mxu1 %v3843_v39 }
 0x5ca   : > { %3879 = vmatprep.subr.mxu1 %v3842_v40 }
 0x5cb   : > { %3880 = vmatpush1.msra.mxu1 %v3841_v41 }
 0x5cc   : > { %3881 = vmatprep.subr.mxu1 %v3840_v42 }
 0x5cd   : > { %3882 = vmatpush1.msra.mxu1 %v3839_v43 }
 0x5ce   : > { %3883 = vmatprep.subr.mxu1 %v3838_v44 }
 0x5cf   : > { %3884 = vmatpush1.msra.mxu1 %v3837_v52 }
 0x5d0   : > { %3885 = vmatprep.subr.mxu1 %v3836_v53 }
 0x5d1   : > { %3886 = vmatpush1.msra.mxu1 %v3835_v54 }
 0x5d2   : > { %3887 = vmatprep.subr.mxu1 %v3834_v55 }
 0x5d3   : > { %3888 = vmatpush1.msra.mxu1 %v3833_v56 }
 0x5d4   : > { %3889 = vmatprep.subr.mxu1 %v3832_v58 }
 0x5d5   : > { %3890 = vmatpush1.msra.mxu1 %v3831_v59 }
 0x5d6   : > { %3891 = vmatprep.subr.mxu1 %v3830_v60 }
 0x5d7   : > { %3892 = vmatpush1.msra.mxu1 %v3829_v61 }
 0x664   : > { %v3769_v20 = vpop.f32.mrf.mxu1 }
 0x665   : > { %v3770_v21 = vadd.f32 %v4090_v19, %v3769_v20 }
 0x666   : > { %v3771_v23 = vpop.f32.mrf.mxu1 }
 0x667   : > { %v3783_v24 = vmax.f32 %v3770_v21, 0.0 }
 0x669   : > { %3787 = vst.msk [vmem:[#allocation11] sm:$0xff] %vm3786_vm3, %v3783_v24 }
 0x672   : > { %v3774_v25 = vpop.f32.mrf.mxu1 }
 0x673   : > { %v3775_v26 = vadd.f32 %v4090_v19, %v3774_v25 }
 0x674   : > { %v3776_v27 = vpop.f32.mrf.mxu1 }
 0x675   : > { %v3784_v28 = vmax.f32 %v3775_v26, 0.0 }
 0x677   : > { %3788 = vst.msk [vmem:[#allocation11 + $0x8] sm:$0xff] %vm3786_vm3, %v3784_v28 }
 0x67a   : > { %v3779_v11 = vpop.f32.mrf.mxu1 }
 0x67b   : > { %v3780_v29 = vadd.f32 %v4090_v19, %v3779_v11 }
 0x67c   : > { %v3781_v30 = vpop.f32.mrf.mxu1 }
 0x67d   : > { %v3785_v33 = vmax.f32 %v3780_v29, 0.0 }
 0x67e   : > { %v3790_v31 = vld [vmem:[#allocation11] ss:$2 sm:$0xff]  ;;  %v3794_v32 = vld [vmem:[#allocation11 + $0x1] ss:$2 sm:$0xff] }
 0x67f   : > { %v3797_v35 = vmax.f32 %v3790_v31, %v3794_v32  ;;  %3789 = vst.msk [vmem:[#allocation11 + $0x10] sm:$0xff] %vm3786_vm3, %v3785_v33 }
 0x681   : > { %3799 = vst.msk [vmem:[#allocation12] sm:$0xff] %vm3786_vm3, %v3797_v35 }
 0x686   : > { %v3792_v45 = vld [vmem:[#allocation11 + $0x10] ss:$2 sm:$0xf]  ;;  %v3796_v46 = vld [vmem:[#allocation11 + $0x11] ss:$2 sm:$0xf] }
 0x687   : > { %v3798_v47 = vmax.f32 %v3792_v45, %v3796_v46 }
 0x688   : > { %v3802_v49 = vld [vmem:[#allocation12] sm:$0x3]  ;;  %v3803_v50 = vld [vmem:[#allocation12 + $0x3] sm:$0x3]  ;;  %v3813_v62 = vld [vmem:[#allocation12 + $0x6] sm:$0x3] }
 0x689   : > { %v3804_v51 = vmax.f32 %v3802_v49, %v3803_v50  ;;  %3801 = vst.msk [vmem:[#allocation12 + $0x8] sm:$0xf] %vm3800_vm4, %v3798_v47 }
 0x68b   : > { %3808 = vrot.lane.b32.xlu1 %v3804_v51, %s4391_s29  ;;  %3806 = vst.msk [vmem:[#allocation13] sm:$0x1] %vm3805_vm5, %v3804_v51  ;;  %s6183_s29 = scalar_lea.hbm %s6227_s9, %s4099_s24 }
 0x690   : > { %v3814_v63 = vld [vmem:[#allocation12 + $0x9] sm:$0x3] }
 0x691   : > { %v3815_v0 = vmax.f32 %v3813_v62, %v3814_v63 }
 0x693   : > { %3817 = vrot.lane.b32.xlu0 %v3815_v0, %s4395_s23  ;;  %3822 = vrot.lane.b32.xlu1 %v3815_v0, %s6240_s16  ;;  %s4326_s16 = scalar_lea.vmem %s3978_s21, 32  ;;  %s4401_s23 = smov [#allocation14]  }
 0x694   : > { %p4327_p11 = scmp.ne.s32.totalorder %s3978_s21, %s4326_s16  ;;  %s4330_s27 = sshll.u32 %s4401_s23, 4  ;;  %s4331_s27 = int_to_ptr.vmem [resolvable:$false] %s4330_s27 }
 0x695   : > { %s4332_s13 = scalar_lea.vmem %s4331_s27, 64  ;;  %p4333_p0 = scmp.lt.s32.totalorder %s3978_s21, %s4331_s27 }
 0x696   : > { %p4328_p12 = pnand %p4327_p11, %p4490_p5  ;;  %p4334_p1 = scmp.lt.s32.totalorder %s4332_s13, %s4326_s16 }
 0x698   : > { %p4329_p13 = pneg %p4328_p12  ;;  %p4335_p2 = por %p4334_p1, %p4333_p0 }
 0x69a   : > { %p4336_p3 = pnand %p4335_p2, %p4329_p13 }
 0x6fd   : > { %v3809_v1 = vpop.permute.xlu1 %3808 }
 0x6fe   : > { %3812 = vst.msk [vmem:[#allocation13 - $0x1] sm:$0x2] %vm3811_vm6, %v3809_v1 }
 0x705   : > { %v3818_v2 = vpop.permute.xlu0 %3817  ;;  %v3823_v3 = vpop.permute.xlu1 %3822 }
 0x706   : > { %3821 = vst.msk [vmem:[#allocation13] sm:$0x1] %vm3820_vm7, %v3818_v2 }
 0x707   : > { %3826 = vst.msk [vmem:[#allocation13 - $0x1] sm:$0x2] %vm3825_vm8, %v3823_v3 }
 0x70e   : > { %v3828_v4 = vld [vmem:[#allocation13] sm:$0x1] }
 0x70f   : > { %3926 = vmatmul.mubr.f32.vlgmr.msra.gmra.mxu1 %v3828_v4 }
 0x7cf   : > { %v3927_v10 = vpop.f32.mrf.mxu1 }
 0x7d1   : > { %v3929_v22 = vpop.f32.mrf.mxu1 }
 0x7d2   : > { %v3934_v48 = vcombine.low %v3927_v10, %v3929_v22 }
 0x7d4   : > { %v3941_v57 = vrot.slane %v3934_v48, %v3940_v12 }
 0x7d6   : > { %v3948_v14 = vrot.slane %v3941_v57, %v3940_v12 }
 0x7d8   : > { %v3950_v15 = vadd.f32 %v3948_v14, %v3827_v13 }
 0x7da   : > { %v3951_v16 = vsub.f32 0.0, %v3950_v15 }
 0x7dc   : > { %v3952_v17 = vmul.f32 1.442695, %v3951_v16 }
 0x7de   : > { %4321 = vpow2.f32 %v3952_v17 }
 0x7eb   : > { %v4322_v18 = vpop.eup %4321 }
 0x7ec   : > { %v3954_v36 = vadd.f32 1.0, %v4322_v18 }
 0x7ee   : > { %4323 = vrcp.f32 %v3954_v36 }
 0x7fb   : > { %v4324_v19 = vpop.eup %4323 }
 0x7fc   : > { %3961 = vst.msk [vmem:[%s326_s17] sm:$0x3] %vm3959_vm9, %v4324_v19 }
 0x7fd   : > { %4339 = shalt.err (!%p4336_p3)
}
 0x7fe   : > { %s4340_s22 = scalar_lea.hbm %s6183_s29, 32  ;;  %s4344_s17 = scalar_lea.hbm %s6227_s9, 64 }
 0x7ff   : > { %p4341_p4 = scmp.ne.s32.totalorder %s6183_s29, %s4340_s22  ;;  %p4345_p9 = scmp.lt.s32.totalorder %s6183_s29, %s6227_s9 }
 0x800   : > { %p4346_p10 = scmp.lt.s32.totalorder %s4344_s17, %s4340_s22 }
 0x801   : > { %p4342_p7 = pnand %p4341_p4, %p4490_p5 }
 0x802   : > { %p4347_p11 = por %p4346_p10, %p4345_p9 }
 0x803   : > { %p4343_p8 = pneg %p4342_p7 }
 0x805   : > { %p4348_p12 = pnand %p4347_p11, %p4343_p8 }
 0x807   : > { %4351 = shalt.err (!%p4348_p12)
}
 0x808   : > { %4269 = dma.vmem_to_hbm [thread:$0]  (%p4490_p5), %s3978_s21, 32, %s6183_s29, %s3963_s26  }
 0x809 PF: > { %p4275_p13 = scmp.ge.s32.totalorder %s4386_s12, 2  ;;  %s3989_s16 = sand.u32 1, %s4374_s30  }
 0x80a   : > { %s3990_s23 = scalar_lea.sflag [#allocation15], %s3989_s16 }
 0x80b   : > { %p4272_p0 = pnand %p4275_p13, %p4494_p6 }
 0x80d   : > { %p4273_p1 = pneg %p4272_p0 }
 0x80f   : > { %4369 = dma.done.wait (%p4273_p1), %s3990_s23, 32  }
 0x810   : > { %4371 = vsyncadd (%p4273_p1), %s3990_s23, 4294967264  ;;  %p19_p2 = scmp.ge.s32.totalorder %s4477_s15, 4   ;;  %s6241_s30 = smov %s4378_s10 }
 0x811   : > { %s6242_s10 = smov %s4382_s11  ;;  %s6243_s11 = smov %s4488_s18 }
 0x812   : > { %s6244_s12 = smov %s4477_s15  ;;  %21 = sbr.rel (!%p19_p2) target bundleno = 3 (0x3), region = 138 }
 0x817   :  { %3995 = vsyncpa [#allocation15], 1 }
 0x818   :  { %3997 = vsyncpa [#allocation15 + $0x1], 1 }

</bundles_post_ra>
